<compile_context>
chip_gen: v7x
topology: tpu7x:2x2x1
jax: 0.10.0
libtpu: 0.0.40
codegen_flags: <defaults>
</compile_context>

<pallas_src>
import jax
import jax.numpy as jnp
from jax.experimental import pallas as pl
from jax.experimental.pallas import tpu as pltpu

BN_EPS = 1e-5
LRELU_SLOPE = 0.01          # F.leaky_relu default

B = 2                       # batch
Z = 8                       # z_dim
H_IN = 28                   # Linear(32*20*20, .) forces 28x28 inputs
C1, C2 = 16, 32
K = 5
H1 = H_IN - K + 1           # 24  (conv1 output grid)
H2 = H1 - K + 1             # 20  (conv2 output grid)
P1 = H1 * H1                # 576 valid conv1 positions per image
PB = 640                    # padded per-image position block (5 * 128 lanes)
NP = B * PB                 # 1280 total lanes (position axis)
N1V = B * P1                # 1152 valid conv1 positions  (BN1 count)
NV2 = B * H2 * H2           # 800  valid conv2 positions  (BN2 count)
PAD = 128                   # lane tail pad so shifted im2col reads stay in-bounds
ZC = 2 * Z * C2             # 512  (mu+var latent rows, channel-major columns)


# -----------------------------------------------------------------------------
# Fused kernel: conv1 -> BN1 -> lrelu -> (in-VMEM im2col) -> conv2 -> BN2 ->
#               lrelu -> latent_mu / latent_var (MXU) -> reparameterize
# -----------------------------------------------------------------------------
def _encoder_kernel(p1t_ref, w1_ref, g1_ref, be1_ref,
                    w2_ref, g2_ref, be2_ref, msk_ref,
                    wlat_ref, dmask_ref, sel_ref, bcat_ref, eps_ref,
                    z_ref, mu_ref, lv_ref, y1pad, pbuf):
    # ---- conv1 (bf16 MXU) + BatchNorm(batch stats, single pass) + lrelu ----
    # NOTE: conv bias omitted — it cancels exactly against the train-mode BN
    # mean.  Zero-padded lanes contribute 0 to the sums, so dividing by the
    # true valid count (N1V) gives exact batch statistics.
    c1 = jnp.dot(w1_ref[...], p1t_ref[...],
                 preferred_element_type=jnp.float32)            # (C1, NP) f32
    inv1 = 1.0 / float(N1V)
    m1 = jnp.sum(c1, axis=1, keepdims=True) * inv1
    v1 = jnp.sum(c1 * c1, axis=1, keepdims=True) * inv1 - m1 * m1
    y1 = g1_ref[...] * (c1 - m1) * jax.lax.rsqrt(v1 + BN_EPS) + be1_ref[...]
    y1 = jnp.where(y1 > 0, y1, LRELU_SLOPE * y1)                # (C1, NP) f32

    # ---- bf16 once, then in-VMEM im2col: 25 statically shifted copies ------
    # shift d = kh*H1 + kw; for valid output lanes (h<H2, w<H2) the shifted
    # read stays inside the image's own 640-lane block; other lanes read
    # finite junk that is masked out (BN2 mask / zero latent weights).
    y1pad[:, NP:] = jnp.zeros((C1, PAD), jnp.bfloat16)          # zero the tail
    y1pad[:, :NP] = y1.astype(jnp.bfloat16)                     # cast ONCE
    for kh in range(K):
        for kw in range(K):
            k = kh * K + kw
            d = kh * H1 + kw
            pbuf[k * C1:(k + 1) * C1, :] = y1pad[:, d:d + NP]

    # ---- conv2 (bf16 MXU) + masked single-pass BatchNorm + lrelu -----------
    acc = jnp.dot(w2_ref[...], pbuf[...],
                  preferred_element_type=jnp.float32)           # (C2, NP) f32
    am = acc * msk_ref[...]                                     # masked copy
    inv2 = 1.0 / float(NV2)
    m2 = jnp.sum(am, axis=1, keepdims=True) * inv2
    v2 = jnp.sum(am * am, axis=1, keepdims=True) * inv2 - m2 * m2
    y2 = g2_ref[...] * (acc - m2) * jax.lax.rsqrt(v2 + BN_EPS) + be2_ref[...]
    y2 = jnp.where(y2 > 0, y2, LRELU_SLOPE * y2)                # (C2, NP) f32

    # ---- latent_mu / latent_var on the MXU + reparameterize ----------------
    # wlat[p, z*C2 + c] = W[z, c, p] (zero-padded grid).  Per batch:
    #   G[c', z*C2+c] = sum_p y2[c',p] * W[z,c,p]        (one MXU matmul)
    #   keep only c'==c via the 0/1 diag mask, then sum the z-blocks with a
    #   tiny selector matmul + sublane reduce.
    rs = []
    for b in range(B):
        yb = y2[:, b * PB:(b + 1) * PB].astype(jnp.bfloat16)    # (C2, PB) aligned
        g = jnp.dot(yb, wlat_ref[...],
                    preferred_element_type=jnp.float32)         # (C2, ZC)
        t = jnp.dot(g * dmask_ref[...], sel_ref[...],
                    preferred_element_type=jnp.float32)         # (C2, 2Z)
        rs.append(jnp.sum(t, axis=0, keepdims=True) + bcat_ref[...])   # (1, 2Z)
    r = jnp.concatenate(rs, axis=0)                             # (B, 2Z)
    mu = r[:, :Z]
    lv = r[:, Z:]
    std = jnp.exp(0.5 * lv)
    z_ref[...] = mu + std * eps_ref[...]
    mu_ref[...] = mu
    lv_ref[...] = lv


def _encoder_pallas(p1t, prep, eps):
    out = jax.ShapeDtypeStruct((B, Z), jnp.float32)
    vspec = lambda: pl.BlockSpec(memory_space=pltpu.MemorySpace.VMEM)
    return pl.pallas_call(
        _encoder_kernel,
        out_shape=(out, out, out),
        in_specs=[vspec() for _ in range(13)],
        out_specs=(vspec(), vspec(), vspec()),
        scratch_shapes=[pltpu.VMEM((C1, NP + PAD), jnp.bfloat16),       # padded y1
                        pltpu.VMEM((K * K * C1, NP), jnp.bfloat16)],    # conv2 patches
        compiler_params=pltpu.CompilerParams(vmem_limit_bytes=32 * 1024 * 1024),
    )(p1t,
      prep["w1"], prep["g1"], prep["b1"],
      prep["w2"], prep["g2"], prep["b2"], prep["mask"],
      prep["wlat"], prep["dmask"], prep["sel"], prep["bcat"],
      eps)


def encoder_forward(x, prep, eps):
    """x: (B, 1, 28, 28) f32  ->  (z, mu, logvar), each (B, Z)."""
    # conv1 im2col (transposed, lane-dense, 640-lane-aligned per image):
    # rows (kh,kw); cols b*640 + h*24 + w, lanes [576,640) per image zero-padded.
    rows = []
    for kh in range(K):
        for kw in range(K):
            patch = x[:, 0, kh:kh + H1, kw:kw + H1].reshape(B, P1)
            patch = jnp.pad(patch, ((0, 0), (0, PB - P1)))
            rows.append(patch.reshape(NP))
    p1t = jnp.stack(rows, axis=0).astype(jnp.bfloat16)          # (25, 1280) bf16
    return _encoder_pallas(p1t, prep, eps)


# -----------------------------------------------------------------------------
# Parameter handling
# -----------------------------------------------------------------------------
def init_params(key, z_dim=Z):
    ks = jax.random.split(key, 6)
    f = C2 * H2 * H2
    # NOTE: conv biases omitted — bias + train-mode BatchNorm cancels exactly.
    return {
        "conv1_w": jax.random.normal(ks[0], (C1, 1, K, K), jnp.float32) * 0.05,
        "bn1_g": jnp.ones((C1,), jnp.float32),
        "bn1_b": jnp.zeros((C1,), jnp.float32),
        "conv2_w": jax.random.normal(ks[1], (C2, C1, K, K), jnp.float32) * 0.02,
        "bn2_g": jnp.ones((C2,), jnp.float32),
        "bn2_b": jnp.zeros((C2,), jnp.float32),
        # torch Linear layout: (out_features, in_features), features in (c,h,w) order
        "mu_w": jax.random.normal(ks[2], (z_dim, f), jnp.float32) * 0.01,
        "mu_b": jax.random.normal(ks[3], (z_dim,), jnp.float32) * 0.01,
        "var_w": jax.random.normal(ks[4], (z_dim, f), jnp.float32) * 0.01,
        "var_b": jax.random.normal(ks[5], (z_dim,), jnp.float32) * 0.01,
    }


def prepare_params(p):
    """One-time re-layout of torch-style weights into kernel-ready form."""
    # conv1: (C1,1,K,K) -> (C1, K*K) bf16; column order (kh,kw) matches p1t rows.
    w1 = p["conv1_w"].reshape(C1, K * K).astype(jnp.bfloat16)
    # conv2: (C2,C1,K,K) -> (C2, (kh,kw,ci)) bf16, matching pbuf's patch rows.
    w2 = jnp.transpose(p["conv2_w"], (0, 2, 3, 1)).reshape(C2, K * K * C1)
    w2 = w2.astype(jnp.bfloat16)

    # latent weights: torch (Z, c*400+h*20+w) -> (PB, 2Z*C2) bf16, zero-padded
    # onto the kernel's (c, 24x24 -> 640) position grid, mu and var concatenated.
    w = jnp.concatenate([p["mu_w"], p["var_w"]], axis=0)              # (2Z, 12800)
    w = w.reshape(2 * Z, C2, H2, H2)
    w = jnp.pad(w, ((0, 0), (0, 0), (0, H1 - H2), (0, H1 - H2)))      # (2Z,C2,24,24)
    w = w.reshape(2 * Z, C2, P1)
    w = jnp.pad(w, ((0, 0), (0, 0), (0, PB - P1)))                    # (2Z,C2,640)
    wlat = jnp.transpose(w, (2, 0, 1)).reshape(PB, ZC).astype(jnp.bfloat16)

    # BN2 / padding mask over the 1280-lane position axis (valid conv2 outputs).
    hw = ((jnp.arange(H1) < H2)[:, None]
          & (jnp.arange(H1) < H2)[None, :]).astype(jnp.float32)       # (24,24)
    blk = jnp.concatenate([hw.reshape(-1), jnp.zeros((PB - P1,), jnp.float32)])
    mask = jnp.tile(blk, (B,)).reshape(1, NP)

    # diagonal-extraction mask (c'==c) and per-z block-sum selector.
    dmask = jnp.tile(jnp.eye(C2, dtype=jnp.float32), (1, 2 * Z))      # (C2, ZC)
    sel = jnp.repeat(jnp.eye(2 * Z, dtype=jnp.float32), C2, axis=0)   # (ZC, 2Z)
    bcat = jnp.concatenate([p["mu_b"], p["var_b"]]).reshape(1, 2 * Z)

    return {
        "w1": w1,
        "g1": p["bn1_g"].reshape(C1, 1),
        "b1": p["bn1_b"].reshape(C1, 1),
        "w2": w2,
        "g2": p["bn2_g"].reshape(C2, 1),
        "b2": p["bn2_b"].reshape(C2, 1),
        "mask": mask,
        "wlat": wlat,
        "dmask": dmask,
        "sel": sel,
        "bcat": bcat,
    }


# -----------------------------------------------------------------------------
# Pure-JAX reference (f32) for a correctness check
# -----------------------------------------------------------------------------
def encoder_reference(x, p, eps):
    def conv(a, w):
        return jax.lax.conv_general_dilated(
            a, w, window_strides=(1, 1), padding="VALID",
            dimension_numbers=("NCHW", "OIHW", "NCHW"))

    def bn_lrelu(a, g, b):
        m = jnp.mean(a, axis=(0, 2, 3), keepdims=True)
        v = jnp.mean((a - m) ** 2, axis=(0, 2, 3), keepdims=True)
        y = (g.reshape(1, -1, 1, 1) * (a - m) * jax.lax.rsqrt(v + BN_EPS)
             + b.reshape(1, -1, 1, 1))
        return jnp.where(y > 0, y, LRELU_SLOPE * y)

    h = bn_lrelu(conv(x, p["conv1_w"]), p["bn1_g"], p["bn1_b"])
    h = bn_lrelu(conv(h, p["conv2_w"]), p["bn2_g"], p["bn2_b"])
    h = h.reshape(x.shape[0], -1)                       # (B, 32*20*20), (c,h,w)
    mu = h @ p["mu_w"].T + p["mu_b"]
    lv = h @ p["var_w"].T + p["var_b"]
    z = mu + jnp.exp(0.5 * lv) * eps
    return z, mu, lv


if __name__ == "__main__":
    key = jax.random.PRNGKey(0)
    k_x, k_p, k_eps = jax.random.split(key, 3)

    x = jax.random.normal(k_x, (B, 1, H_IN, H_IN), jnp.float32)
    params = init_params(k_p)
    prep = prepare_params(params)                        # one-time weight re-layout
    eps = jax.random.normal(k_eps, (B, Z), jnp.float32)  # randn_like(std), df == 0
    # TODO(synk): Student-T eps path (df != 0) not implemented; Gaussian path only.

    fwd = jax.jit(encoder_forward)
    z, mu, logvar = fwd(x, prep, eps)
    jax.block_until_ready((z, mu, logvar))

    assert z.shape == (B, Z) and mu.shape == (B, Z) and logvar.shape == (B, Z)

    zr, mur, lvr = jax.jit(encoder_reference)(x, params, eps)
    ok = (bool(jnp.allclose(mu, mur, rtol=0.1, atol=0.1))
          and bool(jnp.allclose(logvar, lvr, rtol=0.1, atol=0.1))
          and bool(jnp.allclose(z, zr, rtol=0.1, atol=0.15)))
    assert ok, "Pallas encoder does not match the pure-JAX reference"
    print("KERNEL_OK")
</pallas_src>

<mosaic_0001>
module attributes {stable_mosaic.version = 11 : i64} {
  func.func @_encoder_kernel(%arg0: memref<25x1280xbf16, #tpu.memory_space<vmem>>, %arg1: memref<16x25xbf16, #tpu.memory_space<vmem>>, %arg2: memref<16x1xf32, #tpu.memory_space<vmem>>, %arg3: memref<16x1xf32, #tpu.memory_space<vmem>>, %arg4: memref<32x400xbf16, #tpu.memory_space<vmem>>, %arg5: memref<32x1xf32, #tpu.memory_space<vmem>>, %arg6: memref<32x1xf32, #tpu.memory_space<vmem>>, %arg7: memref<1x1280xf32, #tpu.memory_space<vmem>>, %arg8: memref<640x512xbf16, #tpu.memory_space<vmem>>, %arg9: memref<32x512xf32, #tpu.memory_space<vmem>>, %arg10: memref<512x16xf32, #tpu.memory_space<vmem>>, %arg11: memref<1x16xf32, #tpu.memory_space<vmem>>, %arg12: memref<2x8xf32, #tpu.memory_space<vmem>>, %arg13: memref<2x8xf32, #tpu.memory_space<vmem>>, %arg14: memref<2x8xf32, #tpu.memory_space<vmem>>, %arg15: memref<2x8xf32, #tpu.memory_space<vmem>>, %arg16: memref<16x1408xbf16, #tpu.memory_space<vmem>>, %arg17: memref<400x1280xbf16, #tpu.memory_space<vmem>>) attributes {dimension_semantics = [], scalar_prefetch = 0 : i64, scratch_operands = 2 : i64, tpu.core_type = #tpu.core_type<tc>} {
    %c0 = arith.constant 0 : index
    %c0_0 = arith.constant 0 : index
    %0 = vector.load %arg1[%c0, %c0_0] : memref<16x25xbf16, #tpu.memory_space<vmem>>, vector<16x25xbf16>
    %c0_1 = arith.constant 0 : index
    %c0_2 = arith.constant 0 : index
    %1 = vector.load %arg0[%c0_1, %c0_2] : memref<25x1280xbf16, #tpu.memory_space<vmem>>, vector<25x1280xbf16>
    %cst = arith.constant dense<0.000000e+00> : vector<16x1280xf32>
    %2 = tpu.matmul %0, %1, %cst {dimension_numbers = #tpu.dot_dimension_numbers<[1], [0], [0], [1], [0, 0, 1, 1], [], []>} : vector<16x25xbf16>, vector<25x1280xbf16>, vector<16x1280xf32> -> vector<16x1280xf32>
    %cst_3 = arith.constant dense<0.000000e+00> : vector<16xf32>
    %3 = vector.multi_reduction <add>, %2, %cst_3 [1] : vector<16x1280xf32> to vector<16xf32>
    %4 = vector.shape_cast %3 : vector<16xf32> to vector<16x1xf32>
    %cst_4 = arith.constant 8.68055562E-4 : f32
    %5 = vector.broadcast %cst_4 : f32 to vector<16x1xf32>
    %6 = arith.mulf %4, %5 : vector<16x1xf32>
    %7 = arith.mulf %2, %2 : vector<16x1280xf32>
    %cst_5 = arith.constant dense<0.000000e+00> : vector<16xf32>
    %8 = vector.multi_reduction <add>, %7, %cst_5 [1] : vector<16x1280xf32> to vector<16xf32>
    %9 = vector.shape_cast %8 : vector<16xf32> to vector<16x1xf32>
    %cst_6 = arith.constant 8.68055562E-4 : f32
    %10 = vector.broadcast %cst_6 : f32 to vector<16x1xf32>
    %11 = arith.mulf %9, %10 : vector<16x1xf32>
    %12 = arith.mulf %6, %6 : vector<16x1xf32>
    %13 = arith.subf %11, %12 : vector<16x1xf32>
    %c0_7 = arith.constant 0 : index
    %c0_8 = arith.constant 0 : index
    %14 = vector.load %arg2[%c0_7, %c0_8] : memref<16x1xf32, #tpu.memory_space<vmem>>, vector<16x1xf32>
    %15 = vector.broadcast %6 : vector<16x1xf32> to vector<16x1280xf32>
    %16 = arith.subf %2, %15 : vector<16x1280xf32>
    %17 = vector.broadcast %14 : vector<16x1xf32> to vector<16x1280xf32>
    %18 = arith.mulf %17, %16 : vector<16x1280xf32>
    %cst_9 = arith.constant 9.99999974E-6 : f32
    %19 = vector.broadcast %cst_9 : f32 to vector<16x1xf32>
    %20 = arith.addf %13, %19 : vector<16x1xf32>
    %21 = math.rsqrt %20 : vector<16x1xf32>
    %22 = vector.broadcast %21 : vector<16x1xf32> to vector<16x1280xf32>
    %23 = arith.mulf %18, %22 : vector<16x1280xf32>
    %c0_10 = arith.constant 0 : index
    %c0_11 = arith.constant 0 : index
    %24 = vector.load %arg3[%c0_10, %c0_11] : memref<16x1xf32, #tpu.memory_space<vmem>>, vector<16x1xf32>
    %25 = vector.broadcast %24 : vector<16x1xf32> to vector<16x1280xf32>
    %26 = arith.addf %23, %25 : vector<16x1280xf32>
    %cst_12 = arith.constant 0.000000e+00 : f32
    %27 = vector.broadcast %cst_12 : f32 to vector<16x1280xf32>
    %28 = arith.cmpf ogt, %26, %27 : vector<16x1280xf32>
    %cst_13 = arith.constant 0.00999999977 : f32
    %29 = vector.broadcast %cst_13 : f32 to vector<16x1280xf32>
    %30 = arith.mulf %29, %26 : vector<16x1280xf32>
    %31 = arith.select %28, %26, %30 : vector<16x1280xi1>, vector<16x1280xf32>
    %cst_14 = arith.constant 0.000000e+00 : bf16
    %32 = vector.broadcast %cst_14 : bf16 to vector<16x128xbf16>
    %c0_15 = arith.constant 0 : index
    %c1280 = arith.constant 1280 : index
    %33 = vector.load %arg16[%c0_15, %c1280] : memref<16x1408xbf16, #tpu.memory_space<vmem>>, vector<16x128xbf16>
    tpu.vector_store %arg16[%c0_15, %c1280], %32 {strides = array<i32>} : memref<16x1408xbf16, #tpu.memory_space<vmem>>, vector<16x128xbf16>,
    %34 = arith.truncf %31 : vector<16x1280xf32> to vector<16x1280xbf16>
    %c0_16 = arith.constant 0 : index
    %c0_17 = arith.constant 0 : index
    %35 = vector.load %arg16[%c0_16, %c0_17] : memref<16x1408xbf16, #tpu.memory_space<vmem>>, vector<16x1280xbf16>
    tpu.vector_store %arg16[%c0_16, %c0_17], %34 {strides = array<i32>} : memref<16x1408xbf16, #tpu.memory_space<vmem>>, vector<16x1280xbf16>,
    %c0_18 = arith.constant 0 : index
    %c0_19 = arith.constant 0 : index
    %36 = vector.load %arg16[%c0_18, %c0_19] : memref<16x1408xbf16, #tpu.memory_space<vmem>>, vector<16x1280xbf16>
    %c0_20 = arith.constant 0 : index
    %c0_21 = arith.constant 0 : index
    %37 = vector.load %arg17[%c0_20, %c0_21] : memref<400x1280xbf16, #tpu.memory_space<vmem>>, vector<16x1280xbf16>
    tpu.vector_store %arg17[%c0_20, %c0_21], %36 {strides = array<i32>} : memref<400x1280xbf16, #tpu.memory_space<vmem>>, vector<16x1280xbf16>,
    %c0_22 = arith.constant 0 : index
    %c1 = arith.constant 1 : index
    %38 = vector.load %arg16[%c0_22, %c1] : memref<16x1408xbf16, #tpu.memory_space<vmem>>, vector<16x1280xbf16>
    %c16 = arith.constant 16 : index
    %c0_23 = arith.constant 0 : index
    %39 = vector.load %arg17[%c16, %c0_23] : memref<400x1280xbf16, #tpu.memory_space<vmem>>, vector<16x1280xbf16>
    tpu.vector_store %arg17[%c16, %c0_23], %38 {strides = array<i32>} : memref<400x1280xbf16, #tpu.memory_space<vmem>>, vector<16x1280xbf16>,
    %c0_24 = arith.constant 0 : index
    %c2 = arith.constant 2 : index
    %40 = vector.load %arg16[%c0_24, %c2] : memref<16x1408xbf16, #tpu.memory_space<vmem>>, vector<16x1280xbf16>
    %c32 = arith.constant 32 : index
    %c0_25 = arith.constant 0 : index
    %41 = vector.load %arg17[%c32, %c0_25] : memref<400x1280xbf16, #tpu.memory_space<vmem>>, vector<16x1280xbf16>
    tpu.vector_store %arg17[%c32, %c0_25], %40 {strides = array<i32>} : memref<400x1280xbf16, #tpu.memory_space<vmem>>, vector<16x1280xbf16>,
    %c0_26 = arith.constant 0 : index
    %c3 = arith.constant 3 : index
    %42 = vector.load %arg16[%c0_26, %c3] : memref<16x1408xbf16, #tpu.memory_space<vmem>>, vector<16x1280xbf16>
    %c48 = arith.constant 48 : index
    %c0_27 = arith.constant 0 : index
    %43 = vector.load %arg17[%c48, %c0_27] : memref<400x1280xbf16, #tpu.memory_space<vmem>>, vector<16x1280xbf16>
    tpu.vector_store %arg17[%c48, %c0_27], %42 {strides = array<i32>} : memref<400x1280xbf16, #tpu.memory_space<vmem>>, vector<16x1280xbf16>,
    %c0_28 = arith.constant 0 : index
    %c4 = arith.constant 4 : index
    %44 = vector.load %arg16[%c0_28, %c4] : memref<16x1408xbf16, #tpu.memory_space<vmem>>, vector<16x1280xbf16>
    %c64 = arith.constant 64 : index
    %c0_29 = arith.constant 0 : index
    %45 = vector.load %arg17[%c64, %c0_29] : memref<400x1280xbf16, #tpu.memory_space<vmem>>, vector<16x1280xbf16>
    tpu.vector_store %arg17[%c64, %c0_29], %44 {strides = array<i32>} : memref<400x1280xbf16, #tpu.memory_space<vmem>>, vector<16x1280xbf16>,
    %c0_30 = arith.constant 0 : index
    %c24 = arith.constant 24 : index
    %46 = vector.load %arg16[%c0_30, %c24] : memref<16x1408xbf16, #tpu.memory_space<vmem>>, vector<16x1280xbf16>
    %c80 = arith.constant 80 : index
    %c0_31 = arith.constant 0 : index
    %47 = vector.load %arg17[%c80, %c0_31] : memref<400x1280xbf16, #tpu.memory_space<vmem>>, vector<16x1280xbf16>
    tpu.vector_store %arg17[%c80, %c0_31], %46 {strides = array<i32>} : memref<400x1280xbf16, #tpu.memory_space<vmem>>, vector<16x1280xbf16>,
    %c0_32 = arith.constant 0 : index
    %c25 = arith.constant 25 : index
    %48 = vector.load %arg16[%c0_32, %c25] : memref<16x1408xbf16, #tpu.memory_space<vmem>>, vector<16x1280xbf16>
    %c96 = arith.constant 96 : index
    %c0_33 = arith.constant 0 : index
    %49 = vector.load %arg17[%c96, %c0_33] : memref<400x1280xbf16, #tpu.memory_space<vmem>>, vector<16x1280xbf16>
    tpu.vector_store %arg17[%c96, %c0_33], %48 {strides = array<i32>} : memref<400x1280xbf16, #tpu.memory_space<vmem>>, vector<16x1280xbf16>,
    %c0_34 = arith.constant 0 : index
    %c26 = arith.constant 26 : index
    %50 = vector.load %arg16[%c0_34, %c26] : memref<16x1408xbf16, #tpu.memory_space<vmem>>, vector<16x1280xbf16>
    %c112 = arith.constant 112 : index
    %c0_35 = arith.constant 0 : index
    %51 = vector.load %arg17[%c112, %c0_35] : memref<400x1280xbf16, #tpu.memory_space<vmem>>, vector<16x1280xbf16>
    tpu.vector_store %arg17[%c112, %c0_35], %50 {strides = array<i32>} : memref<400x1280xbf16, #tpu.memory_space<vmem>>, vector<16x1280xbf16>,
    %c0_36 = arith.constant 0 : index
    %c27 = arith.constant 27 : index
    %52 = vector.load %arg16[%c0_36, %c27] : memref<16x1408xbf16, #tpu.memory_space<vmem>>, vector<16x1280xbf16>
    %c128 = arith.constant 128 : index
    %c0_37 = arith.constant 0 : index
    %53 = vector.load %arg17[%c128, %c0_37] : memref<400x1280xbf16, #tpu.memory_space<vmem>>, vector<16x1280xbf16>
    tpu.vector_store %arg17[%c128, %c0_37], %52 {strides = array<i32>} : memref<400x1280xbf16, #tpu.memory_space<vmem>>, vector<16x1280xbf16>,
    %c0_38 = arith.constant 0 : index
    %c28 = arith.constant 28 : index
    %54 = vector.load %arg16[%c0_38, %c28] : memref<16x1408xbf16, #tpu.memory_space<vmem>>, vector<16x1280xbf16>
    %c144 = arith.constant 144 : index
    %c0_39 = arith.constant 0 : index
    %55 = vector.load %arg17[%c144, %c0_39] : memref<400x1280xbf16, #tpu.memory_space<vmem>>, vector<16x1280xbf16>
    tpu.vector_store %arg17[%c144, %c0_39], %54 {strides = array<i32>} : memref<400x1280xbf16, #tpu.memory_space<vmem>>, vector<16x1280xbf16>,
    %c0_40 = arith.constant 0 : index
    %c48_41 = arith.constant 48 : index
    %56 = vector.load %arg16[%c0_40, %c48_41] : memref<16x1408xbf16, #tpu.memory_space<vmem>>, vector<16x1280xbf16>
    %c160 = arith.constant 160 : index
    %c0_42 = arith.constant 0 : index
    %57 = vector.load %arg17[%c160, %c0_42] : memref<400x1280xbf16, #tpu.memory_space<vmem>>, vector<16x1280xbf16>
    tpu.vector_store %arg17[%c160, %c0_42], %56 {strides = array<i32>} : memref<400x1280xbf16, #tpu.memory_space<vmem>>, vector<16x1280xbf16>,
    %c0_43 = arith.constant 0 : index
    %c49 = arith.constant 49 : index
    %58 = vector.load %arg16[%c0_43, %c49] : memref<16x1408xbf16, #tpu.memory_space<vmem>>, vector<16x1280xbf16>
    %c176 = arith.constant 176 : index
    %c0_44 = arith.constant 0 : index
    %59 = vector.load %arg17[%c176, %c0_44] : memref<400x1280xbf16, #tpu.memory_space<vmem>>, vector<16x1280xbf16>
    tpu.vector_store %arg17[%c176, %c0_44], %58 {strides = array<i32>} : memref<400x1280xbf16, #tpu.memory_space<vmem>>, vector<16x1280xbf16>,
    %c0_45 = arith.constant 0 : index
    %c50 = arith.constant 50 : index
    %60 = vector.load %arg16[%c0_45, %c50] : memref<16x1408xbf16, #tpu.memory_space<vmem>>, vector<16x1280xbf16>
    %c192 = arith.constant 192 : index
    %c0_46 = arith.constant 0 : index
    %61 = vector.load %arg17[%c192, %c0_46] : memref<400x1280xbf16, #tpu.memory_space<vmem>>, vector<16x1280xbf16>
    tpu.vector_store %arg17[%c192, %c0_46], %60 {strides = array<i32>} : memref<400x1280xbf16, #tpu.memory_space<vmem>>, vector<16x1280xbf16>,
    %c0_47 = arith.constant 0 : index
    %c51 = arith.constant 51 : index
    %62 = vector.load %arg16[%c0_47, %c51] : memref<16x1408xbf16, #tpu.memory_space<vmem>>, vector<16x1280xbf16>
    %c208 = arith.constant 208 : index
    %c0_48 = arith.constant 0 : index
    %63 = vector.load %arg17[%c208, %c0_48] : memref<400x1280xbf16, #tpu.memory_space<vmem>>, vector<16x1280xbf16>
    tpu.vector_store %arg17[%c208, %c0_48], %62 {strides = array<i32>} : memref<400x1280xbf16, #tpu.memory_space<vmem>>, vector<16x1280xbf16>,
    %c0_49 = arith.constant 0 : index
    %c52 = arith.constant 52 : index
    %64 = vector.load %arg16[%c0_49, %c52] : memref<16x1408xbf16, #tpu.memory_space<vmem>>, vector<16x1280xbf16>
    %c224 = arith.constant 224 : index
    %c0_50 = arith.constant 0 : index
    %65 = vector.load %arg17[%c224, %c0_50] : memref<400x1280xbf16, #tpu.memory_space<vmem>>, vector<16x1280xbf16>
    tpu.vector_store %arg17[%c224, %c0_50], %64 {strides = array<i32>} : memref<400x1280xbf16, #tpu.memory_space<vmem>>, vector<16x1280xbf16>,
    %c0_51 = arith.constant 0 : index
    %c72 = arith.constant 72 : index
    %66 = vector.load %arg16[%c0_51, %c72] : memref<16x1408xbf16, #tpu.memory_space<vmem>>, vector<16x1280xbf16>
    %c240 = arith.constant 240 : index
    %c0_52 = arith.constant 0 : index
    %67 = vector.load %arg17[%c240, %c0_52] : memref<400x1280xbf16, #tpu.memory_space<vmem>>, vector<16x1280xbf16>
    tpu.vector_store %arg17[%c240, %c0_52], %66 {strides = array<i32>} : memref<400x1280xbf16, #tpu.memory_space<vmem>>, vector<16x1280xbf16>,
    %c0_53 = arith.constant 0 : index
    %c73 = arith.constant 73 : index
    %68 = vector.load %arg16[%c0_53, %c73] : memref<16x1408xbf16, #tpu.memory_space<vmem>>, vector<16x1280xbf16>
    %c256 = arith.constant 256 : index
    %c0_54 = arith.constant 0 : index
    %69 = vector.load %arg17[%c256, %c0_54] : memref<400x1280xbf16, #tpu.memory_space<vmem>>, vector<16x1280xbf16>
    tpu.vector_store %arg17[%c256, %c0_54], %68 {strides = array<i32>} : memref<400x1280xbf16, #tpu.memory_space<vmem>>, vector<16x1280xbf16>,
    %c0_55 = arith.constant 0 : index
    %c74 = arith.constant 74 : index
    %70 = vector.load %arg16[%c0_55, %c74] : memref<16x1408xbf16, #tpu.memory_space<vmem>>, vector<16x1280xbf16>
    %c272 = arith.constant 272 : index
    %c0_56 = arith.constant 0 : index
    %71 = vector.load %arg17[%c272, %c0_56] : memref<400x1280xbf16, #tpu.memory_space<vmem>>, vector<16x1280xbf16>
    tpu.vector_store %arg17[%c272, %c0_56], %70 {strides = array<i32>} : memref<400x1280xbf16, #tpu.memory_space<vmem>>, vector<16x1280xbf16>,
    %c0_57 = arith.constant 0 : index
    %c75 = arith.constant 75 : index
    %72 = vector.load %arg16[%c0_57, %c75] : memref<16x1408xbf16, #tpu.memory_space<vmem>>, vector<16x1280xbf16>
    %c288 = arith.constant 288 : index
    %c0_58 = arith.constant 0 : index
    %73 = vector.load %arg17[%c288, %c0_58] : memref<400x1280xbf16, #tpu.memory_space<vmem>>, vector<16x1280xbf16>
    tpu.vector_store %arg17[%c288, %c0_58], %72 {strides = array<i32>} : memref<400x1280xbf16, #tpu.memory_space<vmem>>, vector<16x1280xbf16>,
    %c0_59 = arith.constant 0 : index
    %c76 = arith.constant 76 : index
    %74 = vector.load %arg16[%c0_59, %c76] : memref<16x1408xbf16, #tpu.memory_space<vmem>>, vector<16x1280xbf16>
    %c304 = arith.constant 304 : index
    %c0_60 = arith.constant 0 : index
    %75 = vector.load %arg17[%c304, %c0_60] : memref<400x1280xbf16, #tpu.memory_space<vmem>>, vector<16x1280xbf16>
    tpu.vector_store %arg17[%c304, %c0_60], %74 {strides = array<i32>} : memref<400x1280xbf16, #tpu.memory_space<vmem>>, vector<16x1280xbf16>,
    %c0_61 = arith.constant 0 : index
    %c96_62 = arith.constant 96 : index
    %76 = vector.load %arg16[%c0_61, %c96_62] : memref<16x1408xbf16, #tpu.memory_space<vmem>>, vector<16x1280xbf16>
    %c320 = arith.constant 320 : index
    %c0_63 = arith.constant 0 : index
    %77 = vector.load %arg17[%c320, %c0_63] : memref<400x1280xbf16, #tpu.memory_space<vmem>>, vector<16x1280xbf16>
    tpu.vector_store %arg17[%c320, %c0_63], %76 {strides = array<i32>} : memref<400x1280xbf16, #tpu.memory_space<vmem>>, vector<16x1280xbf16>,
    %c0_64 = arith.constant 0 : index
    %c97 = arith.constant 97 : index
    %78 = vector.load %arg16[%c0_64, %c97] : memref<16x1408xbf16, #tpu.memory_space<vmem>>, vector<16x1280xbf16>
    %c336 = arith.constant 336 : index
    %c0_65 = arith.constant 0 : index
    %79 = vector.load %arg17[%c336, %c0_65] : memref<400x1280xbf16, #tpu.memory_space<vmem>>, vector<16x1280xbf16>
    tpu.vector_store %arg17[%c336, %c0_65], %78 {strides = array<i32>} : memref<400x1280xbf16, #tpu.memory_space<vmem>>, vector<16x1280xbf16>,
    %c0_66 = arith.constant 0 : index
    %c98 = arith.constant 98 : index
    %80 = vector.load %arg16[%c0_66, %c98] : memref<16x1408xbf16, #tpu.memory_space<vmem>>, vector<16x1280xbf16>
    %c352 = arith.constant 352 : index
    %c0_67 = arith.constant 0 : index
    %81 = vector.load %arg17[%c352, %c0_67] : memref<400x1280xbf16, #tpu.memory_space<vmem>>, vector<16x1280xbf16>
    tpu.vector_store %arg17[%c352, %c0_67], %80 {strides = array<i32>} : memref<400x1280xbf16, #tpu.memory_space<vmem>>, vector<16x1280xbf16>,
    %c0_68 = arith.constant 0 : index
    %c99 = arith.constant 99 : index
    %82 = vector.load %arg16[%c0_68, %c99] : memref<16x1408xbf16, #tpu.memory_space<vmem>>, vector<16x1280xbf16>
    %c368 = arith.constant 368 : index
    %c0_69 = arith.constant 0 : index
    %83 = vector.load %arg17[%c368, %c0_69] : memref<400x1280xbf16, #tpu.memory_space<vmem>>, vector<16x1280xbf16>
    tpu.vector_store %arg17[%c368, %c0_69], %82 {strides = array<i32>} : memref<400x1280xbf16, #tpu.memory_space<vmem>>, vector<16x1280xbf16>,
    %c0_70 = arith.constant 0 : index
    %c100 = arith.constant 100 : index
    %84 = vector.load %arg16[%c0_70, %c100] : memref<16x1408xbf16, #tpu.memory_space<vmem>>, vector<16x1280xbf16>
    %c384 = arith.constant 384 : index
    %c0_71 = arith.constant 0 : index
    %85 = vector.load %arg17[%c384, %c0_71] : memref<400x1280xbf16, #tpu.memory_space<vmem>>, vector<16x1280xbf16>
    tpu.vector_store %arg17[%c384, %c0_71], %84 {strides = array<i32>} : memref<400x1280xbf16, #tpu.memory_space<vmem>>, vector<16x1280xbf16>,
    %c0_72 = arith.constant 0 : index
    %c0_73 = arith.constant 0 : index
    %86 = vector.load %arg4[%c0_72, %c0_73] : memref<32x400xbf16, #tpu.memory_space<vmem>>, vector<32x400xbf16>
    %c0_74 = arith.constant 0 : index
    %c0_75 = arith.constant 0 : index
    %87 = vector.load %arg17[%c0_74, %c0_75] : memref<400x1280xbf16, #tpu.memory_space<vmem>>, vector<400x1280xbf16>
    %cst_76 = arith.constant dense<0.000000e+00> : vector<32x1280xf32>
    %88 = tpu.matmul %86, %87, %cst_76 {dimension_numbers = #tpu.dot_dimension_numbers<[1], [0], [0], [1], [0, 0, 1, 1], [], []>} : vector<32x400xbf16>, vector<400x1280xbf16>, vector<32x1280xf32> -> vector<32x1280xf32>
    %c0_77 = arith.constant 0 : index
    %c0_78 = arith.constant 0 : index
    %89 = vector.load %arg7[%c0_77, %c0_78] : memref<1x1280xf32, #tpu.memory_space<vmem>>, vector<1x1280xf32>
    %90 = vector.broadcast %89 : vector<1x1280xf32> to vector<32x1280xf32>
    %91 = arith.mulf %88, %90 : vector<32x1280xf32>
    %cst_79 = arith.constant dense<0.000000e+00> : vector<32xf32>
    %92 = vector.multi_reduction <add>, %91, %cst_79 [1] : vector<32x1280xf32> to vector<32xf32>
    %93 = vector.shape_cast %92 : vector<32xf32> to vector<32x1xf32>
    %cst_80 = arith.constant 1.250000e-03 : f32
    %94 = vector.broadcast %cst_80 : f32 to vector<32x1xf32>
    %95 = arith.mulf %93, %94 : vector<32x1xf32>
    %96 = arith.mulf %91, %91 : vector<32x1280xf32>
    %cst_81 = arith.constant dense<0.000000e+00> : vector<32xf32>
    %97 = vector.multi_reduction <add>, %96, %cst_81 [1] : vector<32x1280xf32> to vector<32xf32>
    %98 = vector.shape_cast %97 : vector<32xf32> to vector<32x1xf32>
    %cst_82 = arith.constant 1.250000e-03 : f32
    %99 = vector.broadcast %cst_82 : f32 to vector<32x1xf32>
    %100 = arith.mulf %98, %99 : vector<32x1xf32>
    %101 = arith.mulf %95, %95 : vector<32x1xf32>
    %102 = arith.subf %100, %101 : vector<32x1xf32>
    %c0_83 = arith.constant 0 : index
    %c0_84 = arith.constant 0 : index
    %103 = vector.load %arg5[%c0_83, %c0_84] : memref<32x1xf32, #tpu.memory_space<vmem>>, vector<32x1xf32>
    %104 = vector.broadcast %95 : vector<32x1xf32> to vector<32x1280xf32>
    %105 = arith.subf %88, %104 : vector<32x1280xf32>
    %106 = vector.broadcast %103 : vector<32x1xf32> to vector<32x1280xf32>
    %107 = arith.mulf %106, %105 : vector<32x1280xf32>
    %cst_85 = arith.constant 9.99999974E-6 : f32
    %108 = vector.broadcast %cst_85 : f32 to vector<32x1xf32>
    %109 = arith.addf %102, %108 : vector<32x1xf32>
    %110 = math.rsqrt %109 : vector<32x1xf32>
    %111 = vector.broadcast %110 : vector<32x1xf32> to vector<32x1280xf32>
    %112 = arith.mulf %107, %111 : vector<32x1280xf32>
    %c0_86 = arith.constant 0 : index
    %c0_87 = arith.constant 0 : index
    %113 = vector.load %arg6[%c0_86, %c0_87] : memref<32x1xf32, #tpu.memory_space<vmem>>, vector<32x1xf32>
    %114 = vector.broadcast %113 : vector<32x1xf32> to vector<32x1280xf32>
    %115 = arith.addf %112, %114 : vector<32x1280xf32>
    %cst_88 = arith.constant 0.000000e+00 : f32
    %116 = vector.broadcast %cst_88 : f32 to vector<32x1280xf32>
    %117 = arith.cmpf ogt, %115, %116 : vector<32x1280xf32>
    %cst_89 = arith.constant 0.00999999977 : f32
    %118 = vector.broadcast %cst_89 : f32 to vector<32x1280xf32>
    %119 = arith.mulf %118, %115 : vector<32x1280xf32>
    %120 = arith.select %117, %115, %119 : vector<32x1280xi1>, vector<32x1280xf32>
    %121 = vector.extract_strided_slice %120 {offsets = [0, 0], sizes = [32, 640], strides = [1, 1]} : vector<32x1280xf32> to vector<32x640xf32>
    %122 = arith.truncf %121 : vector<32x640xf32> to vector<32x640xbf16>
    %c0_90 = arith.constant 0 : index
    %c0_91 = arith.constant 0 : index
    %123 = vector.load %arg8[%c0_90, %c0_91] : memref<640x512xbf16, #tpu.memory_space<vmem>>, vector<640x512xbf16>
    %cst_92 = arith.constant dense<0.000000e+00> : vector<32x512xf32>
    %124 = tpu.matmul %122, %123, %cst_92 {dimension_numbers = #tpu.dot_dimension_numbers<[1], [0], [0], [1], [0, 0, 1, 1], [], []>} : vector<32x640xbf16>, vector<640x512xbf16>, vector<32x512xf32> -> vector<32x512xf32>
    %c0_93 = arith.constant 0 : index
    %c0_94 = arith.constant 0 : index
    %125 = vector.load %arg9[%c0_93, %c0_94] : memref<32x512xf32, #tpu.memory_space<vmem>>, vector<32x512xf32>
    %126 = arith.mulf %124, %125 : vector<32x512xf32>
    %c0_95 = arith.constant 0 : index
    %c0_96 = arith.constant 0 : index
    %127 = vector.load %arg10[%c0_95, %c0_96] : memref<512x16xf32, #tpu.memory_space<vmem>>, vector<512x16xf32>
    %cst_97 = arith.constant dense<0.000000e+00> : vector<32x16xf32>
    %128 = tpu.matmul %126, %127, %cst_97 {dimension_numbers = #tpu.dot_dimension_numbers<[1], [0], [0], [1], [0, 0, 1, 1], [], []>} : vector<32x512xf32>, vector<512x16xf32>, vector<32x16xf32> -> vector<32x16xf32>
    %cst_98 = arith.constant dense<0.000000e+00> : vector<16xf32>
    %129 = vector.multi_reduction <add>, %128, %cst_98 [0] : vector<32x16xf32> to vector<16xf32>
    %130 = vector.shape_cast %129 : vector<16xf32> to vector<1x16xf32>
    %c0_99 = arith.constant 0 : index
    %c0_100 = arith.constant 0 : index
    %131 = vector.load %arg11[%c0_99, %c0_100] : memref<1x16xf32, #tpu.memory_space<vmem>>, vector<1x16xf32>
    %132 = arith.addf %130, %131 : vector<1x16xf32>
    %133 = vector.extract_strided_slice %120 {offsets = [0, 640], sizes = [32, 640], strides = [1, 1]} : vector<32x1280xf32> to vector<32x640xf32>
    %134 = arith.truncf %133 : vector<32x640xf32> to vector<32x640xbf16>
    %c0_101 = arith.constant 0 : index
    %c0_102 = arith.constant 0 : index
    %135 = vector.load %arg8[%c0_101, %c0_102] : memref<640x512xbf16, #tpu.memory_space<vmem>>, vector<640x512xbf16>
    %cst_103 = arith.constant dense<0.000000e+00> : vector<32x512xf32>
    %136 = tpu.matmul %134, %135, %cst_103 {dimension_numbers = #tpu.dot_dimension_numbers<[1], [0], [0], [1], [0, 0, 1, 1], [], []>} : vector<32x640xbf16>, vector<640x512xbf16>, vector<32x512xf32> -> vector<32x512xf32>
    %c0_104 = arith.constant 0 : index
    %c0_105 = arith.constant 0 : index
    %137 = vector.load %arg9[%c0_104, %c0_105] : memref<32x512xf32, #tpu.memory_space<vmem>>, vector<32x512xf32>
    %138 = arith.mulf %136, %137 : vector<32x512xf32>
    %c0_106 = arith.constant 0 : index
    %c0_107 = arith.constant 0 : index
    %139 = vector.load %arg10[%c0_106, %c0_107] : memref<512x16xf32, #tpu.memory_space<vmem>>, vector<512x16xf32>
    %cst_108 = arith.constant dense<0.000000e+00> : vector<32x16xf32>
    %140 = tpu.matmul %138, %139, %cst_108 {dimension_numbers = #tpu.dot_dimension_numbers<[1], [0], [0], [1], [0, 0, 1, 1], [], []>} : vector<32x512xf32>, vector<512x16xf32>, vector<32x16xf32> -> vector<32x16xf32>
    %cst_109 = arith.constant dense<0.000000e+00> : vector<16xf32>
    %141 = vector.multi_reduction <add>, %140, %cst_109 [0] : vector<32x16xf32> to vector<16xf32>
    %142 = vector.shape_cast %141 : vector<16xf32> to vector<1x16xf32>
    %c0_110 = arith.constant 0 : index
    %c0_111 = arith.constant 0 : index
    %143 = vector.load %arg11[%c0_110, %c0_111] : memref<1x16xf32, #tpu.memory_space<vmem>>, vector<1x16xf32>
    %144 = arith.addf %142, %143 : vector<1x16xf32>
    %145 = tpu.concatenate %132, %144 in 0 : vector<1x16xf32>, vector<1x16xf32> -> vector<2x16xf32>
    %146 = vector.extract_strided_slice %145 {offsets = [0, 0], sizes = [2, 8], strides = [1, 1]} : vector<2x16xf32> to vector<2x8xf32>
    %147 = vector.extract_strided_slice %145 {offsets = [0, 8], sizes = [2, 8], strides = [1, 1]} : vector<2x16xf32> to vector<2x8xf32>
    %cst_112 = arith.constant 5.000000e-01 : f32
    %148 = vector.broadcast %cst_112 : f32 to vector<2x8xf32>
    %149 = arith.mulf %148, %147 : vector<2x8xf32>
    %150 = math.exp %149 : vector<2x8xf32>
    %c0_113 = arith.constant 0 : index
    %c0_114 = arith.constant 0 : index
    %151 = vector.load %arg12[%c0_113, %c0_114] : memref<2x8xf32, #tpu.memory_space<vmem>>, vector<2x8xf32>
    %152 = arith.mulf %150, %151 : vector<2x8xf32>
    %153 = arith.addf %146, %152 : vector<2x8xf32>
    %c0_115 = arith.constant 0 : index
    %c0_116 = arith.constant 0 : index
    %154 = vector.load %arg13[%c0_115, %c0_116] : memref<2x8xf32, #tpu.memory_space<vmem>>, vector<2x8xf32>
    tpu.vector_store %arg13[%c0_115, %c0_116], %153 {strides = array<i32>} : memref<2x8xf32, #tpu.memory_space<vmem>>, vector<2x8xf32>,
    %c0_117 = arith.constant 0 : index
    %c0_118 = arith.constant 0 : index
    %155 = vector.load %arg14[%c0_117, %c0_118] : memref<2x8xf32, #tpu.memory_space<vmem>>, vector<2x8xf32>
    tpu.vector_store %arg14[%c0_117, %c0_118], %146 {strides = array<i32>} : memref<2x8xf32, #tpu.memory_space<vmem>>, vector<2x8xf32>,
    %c0_119 = arith.constant 0 : index
    %c0_120 = arith.constant 0 : index
    %156 = vector.load %arg15[%c0_119, %c0_120] : memref<2x8xf32, #tpu.memory_space<vmem>>, vector<2x8xf32>
    tpu.vector_store %arg15[%c0_119, %c0_120], %147 {strides = array<i32>} : memref<2x8xf32, #tpu.memory_space<vmem>>, vector<2x8xf32>,
    return
  }
}

</mosaic_0001>

<bundles_post_ra>
// kernel: squeeze.19
= control target key start
LH: loop header
LB: loop body
LE: loop exit
PB: predicated region body
PF: predicated region fallthrough
CT: control target
= control target key end

     0   :  { %s153_s12 = smov 3  ;;  %s137_s13 = smov 3  ;;  %vm127_vm0 = vcmask 130048   ;;  %vm113_vm1 = vcmask 1043458   ;;  %vm123_vm2 = vcmask 64512   ;;  %vm99_vm3 = vcmask 195584   ;;  %s439_s0 = inlined_call_operand.vmem [shape: bf16[2,24,24], index: 0, kind: input, shape index: {}]   ;;  %s440_s1 = inlined_call_operand.vmem [shape: bf16[2,576], index: 1, kind: output, shape index: {}]  }
   0x1   :  { %v357_v0 = vld [vmem:[%s439_s0 + $0x10] sm:$0xff]   ;;  %v354_v1 = vld [vmem:[%s439_s0] sm:$0xff]   ;;  %v358_v2 = vld [vmem:[%s439_s0 + $0x8] sm:$0xff]   ;;  %s175_s0 = smov 3  ;;  %s140_s14 = smov 3  ;;  %vm157_vm4 = vcmask 1048384  }
   0x2   :  { %v347_v3 = vunpack.c.l.bf16 %v357_v0  ;;  %v356_v4 = vunpack.c.h.bf16 %v354_v1  ;;  %v348_v5 = vunpack.c.h.bf16 %v357_v0  ;;  %v355_v6 = vunpack.c.l.bf16 %v354_v1  ;;  %s183_s15 = smov 3  ;;  %s191_s16 = smov 3 }
   0x3   :  { %v351_v7 = vunpack.c.l.bf16 %v358_v2  ;;  %v352_v8 = vunpack.c.h.bf16 %v358_v2  ;;  %s194_s17 = smov 12  ;;  %s205_s18 = smov 3  ;;  %vm187_vm5 = vcmask 851584   ;;  %vm132_vm6 = vcmask 1048512  }
   0x4   :  { %36 = vst [vmem:[#allocation1 + $0x20] sm:$0xff] %v347_v3  ;;  %83 = vst [vmem:[#allocation1 + $0x8] sm:$0xff] %v356_v4  ;;  %s108_s19 = smov 3  ;;  %s111_s20 = smov 12  ;;  %vm149_vm7 = vcmask 1048448   ;;  %vm170_vm8 = vcmask 982784  }
   0x5   :  { %20 = vst [vmem:[#allocation1 + $0x28] sm:$0xff] %v348_v5  ;;  %96 = vst [vmem:[#allocation1] sm:$0xff] %v355_v6  ;;  %s375_s21 = smov 88   ;;  %s376_s22 = smov 104   ;;  %vm179_vm9 = vcmask 917184   ;;  %vm200_vm10 = vcmask 785984  }
   0x6   :  { %52 = vst [vmem:[#allocation1 + $0x18] sm:$0xff] %v352_v8  ;;  %68 = vst [vmem:[#allocation1 + $0x10] sm:$0xff] %v351_v7  ;;  %s116_s23 = smov 3  ;;  %s119_s24 = smov 12  ;;  %vm209_vm11 = vcmask 720384   ;;  %vm217_vm12 = vcmask 654784  }
   0x7   :  { %s161_s25 = smov 3  ;;  %s164_s26 = smov 12  ;;  %vm230_vm13 = vcmask 589184   ;;  %vm244_vm14 = vcmask 523584   ;;  %vm254_vm15 = vcmask 457984   ;;  %v390_v0 = vmov 0.0  }
   0x8   :  { %s377_s27 = smov 112   ;;  %s378_s28 = smov 80  }
   0x9   :  { %s221_s29 = smov 3  ;;  %s224_s30 = smov 12 }
   0xa   :  { %s379_s2 = smov 72   ;;  %s380_s3 = smov 64  }
   0xb   :  { %v176_v9 = vld [vmem:[#allocation1 + $0x9] ss:$24 sm:%s175_s0]   ;;  %v154_v10 = vld [vmem:[#allocation1 + $0xf] ss:$24 sm:%s153_s12]   ;;  %v138_v11 = vld [vmem:[#allocation1 + $0xa] ss:$24 sm:%s137_s13]  }
   0xc   :  { %177 = vrot.lane.b32.xlu0 %v176_v9, %s375_s21  ;;  %155 = vrot.lane.b32.xlu1 %v154_v10, %s376_s22  ;;  %v141_v12 = vld [vmem:[#allocation1 + $0xa] ss:$24 sm:%s140_s14]   ;;  %v184_v14 = vld [vmem:[#allocation1 + $0xe] ss:$24 sm:%s183_s15]   ;;  %s213_s4 = smov 3  ;;  %s235_s5 = smov 3 }
   0xd   :  { %v143_v13 = vsel %vm127_vm0, %v141_v12, %v138_v11  ;;  %v192_v15 = vld [vmem:[#allocation1 + $0x3] ss:$24 sm:%s191_s16]   ;;  %v109_v17 = vld [vmem:[#allocation1 + $0x15] ss:$24 sm:%s108_s19]   ;;  %v206_v22 = vld [vmem:[#allocation1 + $0x8] ss:$24 sm:%s205_s18]  }
   0xe   :  { %v195_v16 = vld [vmem:[#allocation1 - $0x1d] ss:$24 sm:%s194_s17]   ;;  %v112_v18 = vld [vmem:[#allocation1 - $0x2b] ss:$24 sm:%s111_s20]   ;;  %v162_v25 = vld [vmem:[#allocation1 + $0x4] ss:$24 sm:%s161_s25]  }
   0xf   :  { %v117_v19 = vld [vmem:[#allocation1 + $0x5] ss:$24 sm:%s116_s23]   ;;  %v197_v21 = vsel %vm113_vm1, %v195_v16, %v192_v15  ;;  %v114_v23 = vsel %vm113_vm1, %v112_v18, %v109_v17  ;;  %v165_v26 = vld [vmem:[#allocation1 - $0x1c] ss:$24 sm:%s164_s26]   ;;  %v222_v29 = vld [vmem:[#allocation1 + $0x2] ss:$24 sm:%s221_s29]  }
  0x10   :  { %v120_v20 = vld [vmem:[#allocation1 - $0x1b] ss:$24 sm:%s119_s24]   ;;  %144 = vrot.lane.b32.xlu0 %v143_v13, %s377_s27  ;;  %185 = vrot.lane.b32.xlu1 %v184_v14, %s378_s28  ;;  %v167_v28 = vsel %vm113_vm1, %v165_v26, %v162_v25  ;;  %v225_v30 = vld [vmem:[#allocation1 - $0x1e] ss:$24 sm:%s224_s30]   ;;  %s238_s6 = smov 12  ;;  %s381_s7 = smov 120  }
  0x11   :  { %v122_v24 = vsel %vm113_vm1, %v120_v20, %v117_v19  ;;  %s382_s8 = smov 96   ;;  %v214_v31 = vld [vmem:[#allocation1 + $0xd] ss:$24 sm:%s213_s4]   ;;  %s250_s9 = smov 3  ;;  %v227_v32 = vsel %vm113_vm1, %v225_v30, %v222_v29  ;;  %v236_v33 = vld [vmem:[#allocation1 + $0x17] ss:$24 sm:%s235_s5]  }
  0x12   :  { %v124_v27 = vsel %vm123_vm2, %v122_v24, %v114_v23  ;;  %v239_v34 = vld [vmem:[#allocation1 - $0x29] ss:$24 sm:%s238_s6]   ;;  %s97_s10 = smov 3  ;;  %s102_s11 = smov 3  ;;  %v251_v38 = vld [vmem:[#allocation1 + $0xc] ss:$24 sm:%s250_s9]  }
  0x13   :  { %s258_s0 = smov 3  ;;  %s261_s12 = smov 12  ;;  %v103_v35 = vld [vmem:[#allocation1 + $0x18] ss:$16 sm:%s102_s11]   ;;  %v98_v36 = vld [vmem:[#allocation1] ss:$16 sm:%s97_s10]   ;;  %v241_v37 = vsel %vm113_vm1, %v239_v34, %v236_v33 }
  0x14   :  { %198 = vrot.lane.b32.xlu0 %v197_v21, %s379_s2  ;;  %207 = vrot.lane.b32.xlu1 %v206_v22, %s380_s3  ;;  %s272_s13 = smov 3  ;;  %s275_s14 = smov 12  ;;  %106 = vst.msk [vmem:[#allocation0 + $0x1] ss:$24 sm:$0x3] %vm99_vm3, %v103_v35  }
  0x15   :  { %100 = vst.msk [vmem:[#allocation0] ss:$24 sm:$0x3] %vm99_vm3, %v98_v36   ;;  %s383_s15 = smov 56   ;;  %s384_s16 = smov 48  }
  0x16   :  { %v259_v39 = vld [vmem:[#allocation1 + $0x1] ss:$24 sm:%s258_s0]   ;;  %v273_v41 = vld [vmem:[#allocation1 + $0x16] ss:$24 sm:%s272_s13]   ;;  %s385_s17 = smov 40   ;;  %s386_s18 = smov 32  }
  0x17   :  { %v262_v40 = vld [vmem:[#allocation1 - $0x1f] ss:$24 sm:%s261_s12]   ;;  %v276_v42 = vld [vmem:[#allocation1 - $0x2a] ss:$24 sm:%s275_s14]   ;;  %s287_s19 = smov 3  ;;  %s387_s20 = smov 24  }
  0x18   :  { %125 = vrot.lane.b32.xlu0 %v124_v27, %s381_s7  ;;  %168 = vrot.lane.b32.xlu1 %v167_v28, %s382_s8  ;;  %v264_v43 = vsel %vm113_vm1, %v262_v40, %v259_v39  ;;  %v278_v44 = vsel %vm113_vm1, %v276_v42, %v273_v41  ;;  %s388_s21 = smov 16   ;;  %v288_v45 = vld [vmem:[#allocation1 + $0xb] ss:$24 sm:%s287_s19]   ;;  %s389_s22 = smov 8   ;;  %vm281_vm1 = vcmask 326784  }
  0x1c   :  { %215 = vrot.lane.b32.xlu0 %v214_v31, %s383_s15  ;;  %228 = vrot.lane.b32.xlu1 %v227_v32, %s384_s16 }
  0x20   :  { %242 = vrot.lane.b32.xlu0 %v241_v37, %s385_s17  ;;  %252 = vrot.lane.b32.xlu1 %v251_v38, %s386_s18 }
  0x24   :  { %265 = vrot.lane.b32.xlu0 %v264_v43, %s387_s20  ;;  %279 = vrot.lane.b32.xlu1 %v278_v44, %s388_s21 }
  0x28   :  { %289 = vrot.lane.b32.xlu0 %v288_v45, %s389_s22 }
  0x7e   :  { %v178_v46 = vpop.permute.xlu0 %177   ;;  %v156_v47 = vpop.permute.xlu1 %155  }
  0x82   :  { %v145_v48 = vpop.permute.xlu0 %144   ;;  %v186_v49 = vpop.permute.xlu1 %185  }
  0x83   :  { %148 = vst.msk [vmem:[#allocation0 + $0x10] sm:$0x3] %vm123_vm2, %v145_v48   ;;  %vm291_vm2 = vcmask 261184  }
  0x84   :  { %159 = vst.msk [vmem:[#allocation0 + $0x10] sm:$0x3] %vm157_vm4, %v156_v47  }
  0x85   :  { %189 = vst.msk [vmem:[#allocation0 + $0x10] sm:$0x3] %vm187_vm5, %v186_v49  }
  0x86   :  { %v199_v50 = vpop.permute.xlu0 %198   ;;  %v208_v51 = vpop.permute.xlu1 %207  }
  0x8a   :  { %v126_v52 = vpop.permute.xlu0 %125   ;;  %v169_v53 = vpop.permute.xlu1 %168  }
  0x8b   :  { %129 = vst.msk [vmem:[#allocation0 + $0x20] sm:$0x3] %vm127_vm0, %v126_v52   ;;  %131 = vst.msk [vmem:[#allocation0 + $0x6] sm:$0xc] %vm127_vm0, %v126_v52   ;;  %vm267_vm0 = vcmask 392384  }
  0x8c   :  { %133 = vst.msk [vmem:[#allocation0] sm:$0x3] %vm132_vm6, %v126_v52   ;;  %135 = vst.msk [vmem:[#allocation0 + $0x16] sm:$0xc] %vm132_vm6, %v126_v52  }
  0x8d   :  { %171 = vst.msk [vmem:[#allocation0] sm:$0x3] %vm170_vm8, %v169_v53   ;;  %173 = vst.msk [vmem:[#allocation0 + $0x16] sm:$0xc] %vm170_vm8, %v169_v53  }
  0x8e   :  { %151 = vst.msk [vmem:[#allocation0 + $0x8] sm:$0x3] %vm149_vm7, %v145_v48   ;;  %v216_v54 = vpop.permute.xlu0 %215   ;;  %v229_v55 = vpop.permute.xlu1 %228  }
  0x8f   :  { %201 = vst.msk [vmem:[#allocation0] sm:$0x3] %vm200_vm10, %v199_v50   ;;  %203 = vst.msk [vmem:[#allocation0 + $0x16] sm:$0xc] %vm200_vm10, %v199_v50  }
  0x90   :  { %181 = vst.msk [vmem:[#allocation0 + $0x8] sm:$0x3] %vm179_vm9, %v178_v46  }
  0x91   :  { %211 = vst.msk [vmem:[#allocation0 + $0x8] sm:$0x3] %vm209_vm11, %v208_v51  }
  0x92   :  { %219 = vst.msk [vmem:[#allocation0 + $0x10] sm:$0x3] %vm217_vm12, %v216_v54   ;;  %v243_v56 = vpop.permute.xlu0 %242   ;;  %v253_v57 = vpop.permute.xlu1 %252  }
  0x93   :  { %231 = vst.msk [vmem:[#allocation0] sm:$0x3] %vm230_vm13, %v229_v55   ;;  %233 = vst.msk [vmem:[#allocation0 + $0x16] sm:$0xc] %vm230_vm13, %v229_v55  }
  0x94   :  { %246 = vst.msk [vmem:[#allocation0 + $0x20] sm:$0x3] %vm244_vm14, %v243_v56   ;;  %248 = vst.msk [vmem:[#allocation0 + $0x6] sm:$0xc] %vm244_vm14, %v243_v56  }
  0x95   :  { %256 = vst.msk [vmem:[#allocation0 + $0x10] sm:$0x3] %vm254_vm15, %v253_v57  }
  0x96   :  { %v266_v58 = vpop.permute.xlu0 %265   ;;  %v280_v59 = vpop.permute.xlu1 %279  }
  0x97   :  { %268 = vst.msk [vmem:[#allocation0] sm:$0x3] %vm267_vm0, %v266_v58   ;;  %270 = vst.msk [vmem:[#allocation0 + $0x16] sm:$0xc] %vm267_vm0, %v266_v58  }
  0x98   :  { %283 = vst.msk [vmem:[#allocation0 + $0x20] sm:$0x3] %vm281_vm1, %v280_v59   ;;  %285 = vst.msk [vmem:[#allocation0 + $0x6] sm:$0xc] %vm281_vm1, %v280_v59  }
  0x9a   :  { %v290_v60 = vpop.permute.xlu0 %289  }
  0x9b   :  { %293 = vst.msk [vmem:[#allocation0 + $0x10] sm:$0x3] %vm291_vm2, %v290_v60  }
  0x9e   :  { %v298_v61 = vld [vmem:[#allocation0] sm:$0x3]  ;;  %v316_v62 = vld [vmem:[#allocation0 + $0x18] sm:$0x3] }
  0x9f   :  { %v303_v63 = vld [vmem:[#allocation0 + $0x8] sm:$0x3]  ;;  %v299_v1 = vpack.c.bf16 %v390_v0, %v298_v61  ;;  %v317_v2 = vpack.c.bf16 %v390_v0, %v316_v62  ;;  %v323_v4 = vld [vmem:[#allocation0 + $0x20] sm:$0x3] }
  0xa0   :  { %v304_v3 = vpack.c.bf16 %v390_v0, %v303_v63  ;;  %v324_v5 = vpack.c.bf16 %v390_v0, %v323_v4 }
  0xa1   :  { %301 = vst [vmem:[%s440_s1] sm:$0x1] %v299_v1  ;;  %343 = vst [vmem:[%s440_s1 + $0x3] sm:$0x1] %v317_v2 }
  0xa2   :  { %341 = vst [vmem:[%s440_s1 + $0x1] sm:$0x1] %v304_v3  ;;  %344 = vst [vmem:[%s440_s1 + $0x4] sm:$0x1] %v324_v5  ;;  %v309_v6 = vld [vmem:[#allocation0 + $0x10] sm:$0x3] }
  0xa3   :  { %v310_v7 = vpack.c.bf16 %v390_v0, %v309_v6 }
  0xa5   :  { %342 = vst [vmem:[%s440_s1 + $0x2] sm:$0x1] %v310_v7 }

// kernel: encoder_forward.1
= control target key start
LH: loop header
LB: loop body
LE: loop exit
PB: predicated region body
PF: predicated region fallthrough
CT: control target
= control target key end

     0   :  { %21 = vsyncpa [#allocation5], 0  ;;  %vm171_vm0 = vcmask 1043456   ;;  %vm172_vm1 = vcmask 1044480   ;;  %v7197_v3 = vmov 65535   ;;  %v10942_v7 = vmov 0   ;;  %s10885_s0 = inlined_call_operand.vmem [shape: bf16[25,1280], index: 0, kind: input, shape index: {}]   ;;  %s10886_s1 = inlined_call_operand.vmem [shape: bf16[16,25], index: 1, kind: input, shape index: {}]   ;;  %s10887_s2 = inlined_call_operand.vmem [shape: f32[16,1], index: 2, kind: input, shape index: {}]   ;;  %s10888_s3 = inlined_call_operand.vmem [shape: f32[16,1], index: 3, kind: input, shape index: {}]   ;;  %s10889_s4 = inlined_call_operand.vmem [shape: bf16[32,400], index: 4, kind: input, shape index: {}]   ;;  %s10890_s5 = inlined_call_operand.vmem [shape: f32[32,1], index: 5, kind: input, shape index: {}]   ;;  %s10891_s6 = inlined_call_operand.vmem [shape: f32[32,1], index: 6, kind: input, shape index: {}]   ;;  %s10892_s7 = inlined_call_operand.vmem [shape: f32[1,1280], index: 7, kind: input, shape index: {}]   ;;  %s10893_s8 = inlined_call_operand.vmem [shape: bf16[640,512], index: 8, kind: input, shape index: {}]   ;;  %s10894_s9 = inlined_call_operand.vmem [shape: f32[32,512], index: 9, kind: input, shape index: {}]   ;;  %s10895_s10 = inlined_call_operand.vmem [shape: f32[512,16], index: 10, kind: input, shape index: {}]   ;;  %s10896_s11 = inlined_call_operand.vmem [shape: f32[1,16], index: 11, kind: input, shape index: {}]   ;;  %s10897_s12 = inlined_call_operand.vmem [shape: f32[2,8], index: 12, kind: input, shape index: {}]   ;;  %s10898_s13 = inlined_call_operand.hbm [shape: f32[2,8], index: 13, kind: output, shape index: {0}]   ;;  %s10899_s14 = inlined_call_operand.hbm [shape: f32[2,8], index: 14, kind: output, shape index: {1}]   ;;  %s10900_s15 = inlined_call_operand.hbm [shape: f32[2,8], index: 15, kind: output, shape index: {2}]  }
   0x1   :  { %v6718_v0 = vld [vmem:[%s10885_s0 + $0x4] ss:$40 sps:$4 sm:$0xff]   ;;  %v6720_v1 = vld [vmem:[%s10885_s0] ss:$40 sps:$4 sm:$0xff]   ;;  %v173_v4 = vsel %vm171_vm0, 4294967295, %v7197_v3  ;;  %237 = vmatprep.mubr.bf16.mxu0 %v10942_v7  ;;  %6716 = vset.pattern.permute.xlu0 %v10942_v7  ;;  %vm167_vm2 = vcmask 203776  }
   0x2   :  { %205 = vmatprep.subr.bf16.mxu0 %v6718_v0  ;;  %v6721_v2 = vld [vmem:[%s10885_s0 + $0x54] ss:$40 sps:$4 sm:$0x1f]   ;;  %v7317_v5 = vsel %vm172_vm1, %v173_v4, 0  ;;  %6717 = vset.pattern.permute.xlu1 %v10942_v7  ;;  %v7330_v10 = vld [vmem:[%s10886_s1] sm:$0xff]   ;;  %v493_v23 = vld [vmem:[%s10887_s2 + $0x8] sm:$0xff] }
   0x3   :  { %206 = vmatpush1.bf16.msra.mxu0 %v6720_v1  ;;  %v6723_v6 = vld [vmem:[%s10885_s0 + $0x50] ss:$40 sps:$4 sm:$0x1f]   ;;  %v179_v8 = vand.u32 %v6721_v2, %v7317_v5  ;;  %v6727_v11 = vld [vmem:[%s10885_s0 + $0xc] ss:$40 sps:$4 sm:$0xff]   ;;  %v492_v22 = vld [vmem:[%s10887_s2] sm:$0xff]  ;;  %521 = vperm.xlu1 %6717, %v493_v23  }
   0x4   :  { %v176_v9 = vand.u32 %v6723_v6, %v7317_v5  ;;  %v6728_v12 = vld [vmem:[%s10885_s0 + $0x58] ss:$40 sps:$4 sm:$0x1f]   ;;  %v6725_v13 = vld [vmem:[%s10885_s0 + $0x8] ss:$40 sps:$4 sm:$0xff]   ;;  %516 = vperm.xlu0 %6716, %v492_v22   ;;  %s7199_s27 = smov 127  }
   0x5   :  { %207 = vmatprep.subr.bf16.mxu0 %v179_v8  ;;  %v6730_v14 = vld [vmem:[%s10885_s0 + $0x5c] ss:$40 sps:$4 sm:$0x1f]   ;;  %v182_v16 = vand.u32 %v6728_v12, %v7317_v5  ;;  %v6731_v19 = vld [vmem:[%s10885_s0 + $0x10] ss:$40 sps:$4 sm:$0xff]   ;;  %v569_v28 = vld [vmem:[%s10888_s3 + $0x8] sm:$0xff] }
   0x6   :  { %v185_v15 = vand.u32 %v6730_v14, %v7317_v5  ;;  %v6733_v17 = vld [vmem:[%s10885_s0 + $0x14] ss:$40 sps:$4 sm:$0xff]   ;;  %v6736_v18 = vld [vmem:[%s10885_s0 + $0x64] ss:$40 sps:$4 sm:$0x1f]   ;;  %s7200_s28 = smov 126  }
   0x7   :  { %208 = vmatpush1.bf16.msra.mxu0 %v176_v9  ;;  %v6734_v20 = vld [vmem:[%s10885_s0 + $0x60] ss:$40 sps:$4 sm:$0x1f]   ;;  %v191_v21 = vand.u32 %v6736_v18, %v7317_v5  ;;  %v6739_v25 = vld [vmem:[%s10885_s0 + $0x1c] ss:$40 sps:$4 sm:$0xff]   ;;  %s7201_s1 = smov 125  }
   0x8   :  { %248 = vmatprep.subr.bf16.mxu0 %v6727_v11  ;;  %v568_v24 = vld [vmem:[%s10888_s3] sm:$0xff]  ;;  %v6742_v26 = vld [vmem:[%s10885_s0 + $0x6c] ss:$40 sps:$4 sm:$0x1f]   ;;  %v188_v27 = vand.u32 %v6734_v20, %v7317_v5  ;;  %743 = vrot.lane.b32.xlu0 %v10942_v7, %s7199_s27  ;;  %s10917_s21 = smov 124  }
   0x9   :  { %v6737_v29 = vld [vmem:[%s10885_s0 + $0x18] ss:$40 sps:$4 sm:$0xff]   ;;  %v6740_v30 = vld [vmem:[%s10885_s0 + $0x68] ss:$40 sps:$4 sm:$0x1f]   ;;  %572 = vperm.xlu1 %6717, %v568_v24   ;;  %v197_v31 = vand.u32 %v6742_v26, %v7317_v5 }
   0xa   :  { %6094 = vmatmul.mubr.msk.bf16.vlgmr.msra.gmra.mrb[0].mxu0 %vm167_vm2, %v7330_v10  ;;  %v6745_v32 = vld [vmem:[%s10885_s0 + $0x24] ss:$40 sps:$4 sm:$0xff]   ;;  %v6748_v33 = vld [vmem:[%s10885_s0 + $0x74] ss:$40 sps:$4 sm:$0x1f]   ;;  %v194_v34 = vand.u32 %v6740_v30, %v7317_v5 }
   0xb   :  { %249 = vmatpush1.bf16.msra.mxu0 %v6725_v13  ;;  %280 = vmatprep.mubr.bf16.mxu0 %v10942_v7  ;;  %v6743_v35 = vld [vmem:[%s10885_s0 + $0x20] ss:$40 sps:$4 sm:$0xff]   ;;  %v6746_v36 = vld [vmem:[%s10885_s0 + $0x70] ss:$40 sps:$4 sm:$0x1f]   ;;  %v203_v37 = vand.u32 %v6748_v33, %v7317_v5 }
   0xc   :  { %250 = vmatprep.subr.bf16.mxu0 %v185_v15  ;;  %818 = vrot.lane.b32.xlu0 %v10942_v7, %s7200_s28  ;;  %v200_v38 = vand.u32 %v6746_v36, %v7317_v5 }
   0xd   :  { %577 = vperm.xlu1 %6717, %v569_v28  }
   0xf   :  { %251 = vmatpush1.bf16.msra.mxu0 %v182_v16 }
  0x10   :  { %291 = vmatprep.subr.bf16.mxu0 %v6733_v17  ;;  %893 = vrot.lane.b32.xlu0 %v10942_v7, %s7201_s1 }
  0x12   :  { %6095 = vmatmul.mubr.msk.bf16.vlgmr.msra.gmra.mrb[4].mxu0 %vm167_vm2, %v7330_v10 }
  0x13   :  { %292 = vmatpush1.bf16.msra.mxu0 %v6731_v19  ;;  %323 = vmatprep.mubr.bf16.mxu0 %v10942_v7 }
  0x14   :  { %293 = vmatprep.subr.bf16.mxu0 %v191_v21  ;;  %968 = vrot.lane.b32.xlu0 %v10942_v7, %s10917_s21 }
  0x17   :  { %294 = vmatpush1.bf16.msra.mxu0 %v188_v27 }
  0x18   :  { %334 = vmatprep.subr.bf16.mxu0 %v6739_v25 }
  0x1a   :  { %6096 = vmatmul.mubr.msk.bf16.vlgmr.msra.gmra.mrb[8].mxu0 %vm167_vm2, %v7330_v10 }
  0x1b   :  { %335 = vmatpush1.bf16.msra.mxu0 %v6737_v29  ;;  %366 = vmatprep.mubr.bf16.mxu0 %v10942_v7 }
  0x1c   :  { %336 = vmatprep.subr.bf16.mxu0 %v197_v31 }
  0x1f   :  { %337 = vmatpush1.bf16.msra.mxu0 %v194_v34 }
  0x20   :  { %377 = vmatprep.subr.bf16.mxu0 %v6745_v32 }
  0x22   :  { %6097 = vmatmul.mubr.msk.bf16.vlgmr.msra.gmra.mrb[12].mxu0 %vm167_vm2, %v7330_v10 }
  0x23   :  { %378 = vmatpush1.bf16.msra.mxu0 %v6743_v35  ;;  %409 = vmatprep.mubr.bf16.mxu0 %v10942_v7 }
  0x24   :  { %379 = vmatprep.subr.bf16.mxu0 %v203_v37 }
  0x27   :  { %380 = vmatpush1.bf16.msra.mxu0 %v200_v38 }
  0x2a   :  { %6098 = vmatmul.mubr.msk.bf16.vlgmr.msra.gmra.mrb[16].mxu0 %vm167_vm2, %v7330_v10 }
  0x2b   :  { %22 = vsyncpa [#allocation7], 0  ;;  %s10915_s0 = smov 104   ;;  %s10913_s2 = smov 103  }
  0x2c   :  { %1043 = vrot.lane.b32.xlu0 %v10942_v7, %s10915_s0  ;;  %s10911_s22 = smov 102   ;;  %s7206_s23 = smov 101  }
  0x2d   :  { %s7207_s24 = smov 100   ;;  %s7208_s25 = smov 80  }
  0x2e   :  { %s10932_s26 = smov 79   ;;  %s10930_s3 = smov 78  }
  0x2f   :  { %s10901_s29 = smov 77   ;;  %s10928_s30 = smov 76  }
  0x30   :  { %1118 = vrot.lane.b32.xlu0 %v10942_v7, %s10913_s2  ;;  %s10905_s16 = smov 56   ;;  %s10903_s17 = smov 55  }
  0x31   :  { %s7215_s20 = smov 54   ;;  %s10909_s18 = smov 52  }
  0x32   :  { %s7218_s19 = smov 32  }
  0xdd   :  { %v7426_v39 = vpop.f32.mrb[0].mxu0 }
  0xde   :  { %v444_v40 = vmul.f32 %v7426_v39, %v7426_v39  ;;  %v7430_v41 = vpop.f32.mrb[1].mxu0 }
  0xdf   :  { %v420_v42 = vadd.f32 %v7430_v41, %v7426_v39  ;;  %v445_v43 = vmul.f32 %v7430_v41, %v7430_v41  ;;  %v7436_v44 = vpop.f32.mrb[2].mxu0 }
  0xe0   :  { %v454_v45 = vmul.f32 %v7436_v44, %v7436_v44  ;;  %v7440_v46 = vpop.f32.mrb[3].mxu0 }
  0xe1   :  { %v464_v47 = vadd.f32 %v445_v43, %v444_v40  ;;  %v431_v48 = vadd.f32 %v7440_v46, %v7436_v44  ;;  %v455_v49 = vmul.f32 %v7440_v46, %v7440_v46 }
  0xe3   :  { %v475_v50 = vadd.f32 %v455_v49, %v454_v45 }
  0xe5   :  { %v7446_v51 = vpop.f32.mrb[4].mxu0 }
  0xe6   :  { %v421_v52 = vadd.f32 %v420_v42, %v7446_v51  ;;  %v446_v53 = vmul.f32 %v7446_v51, %v7446_v51  ;;  %v7451_v54 = vpop.f32.mrb[5].mxu0 }
  0xe7   :  { %v447_v55 = vmul.f32 %v7451_v54, %v7451_v54  ;;  %v7455_v56 = vpop.f32.mrb[6].mxu0 }
  0xe8   :  { %v465_v57 = vadd.f32 %v464_v47, %v446_v53  ;;  %v422_v58 = vadd.f32 %v421_v52, %v7451_v54  ;;  %v432_v59 = vadd.f32 %v431_v48, %v7455_v56  ;;  %v456_v60 = vmul.f32 %v7455_v56, %v7455_v56  ;;  %v7461_v61 = vpop.f32.mrb[7].mxu0 }
  0xe9   :  { %v457_v62 = vmul.f32 %v7461_v61, %v7461_v61 }
  0xea   :  { %v466_v63 = vadd.f32 %v465_v57, %v447_v55  ;;  %v476_v0 = vadd.f32 %v475_v50, %v456_v60  ;;  %v433_v1 = vadd.f32 %v432_v59, %v7461_v61  ;;  %v517_v59 = vpop.permute.xlu0 %516 }
  0xec   :  { %v477_v2 = vadd.f32 %v476_v0, %v457_v62 }
  0xed   :  { %v7466_v3 = vpop.f32.mrb[8].mxu0 }
  0xee   :  { %v423_v4 = vadd.f32 %v422_v58, %v7466_v3  ;;  %v448_v5 = vmul.f32 %v7466_v3, %v7466_v3  ;;  %v7471_v6 = vpop.f32.mrb[9].mxu0  ;;  %v7526_v60 = vpop.permute.xlu0 %743 }
  0xef   :  { %v449_v8 = vmul.f32 %v7471_v6, %v7471_v6  ;;  %v7475_v9 = vpop.f32.mrb[10].mxu0 }
  0xf0   :  { %v467_v10 = vadd.f32 %v466_v63, %v448_v5  ;;  %v424_v11 = vadd.f32 %v423_v4, %v7471_v6  ;;  %v434_v12 = vadd.f32 %v433_v1, %v7475_v9  ;;  %v458_v13 = vmul.f32 %v7475_v9, %v7475_v9  ;;  %v7481_v14 = vpop.f32.mrb[11].mxu0  ;;  %v7534_v1 = vpop.permute.xlu1 %521 }
  0xf1   :  { %v459_v15 = vmul.f32 %v7481_v14, %v7481_v14 }
  0xf2   :  { %v468_v16 = vadd.f32 %v467_v10, %v449_v8  ;;  %v478_v17 = vadd.f32 %v477_v2, %v458_v13  ;;  %v435_v18 = vadd.f32 %v434_v12, %v7481_v14  ;;  %v7528_v62 = vpop.permute.xlu0 %818 }
  0xf4   :  { %v479_v19 = vadd.f32 %v478_v17, %v459_v15  ;;  %v7538_v4 = vpop.permute.xlu1 %572 }
  0xf5   :  { %v7486_v20 = vpop.f32.mrb[12].mxu0 }
  0xf6   :  { %v425_v21 = vadd.f32 %v424_v11, %v7486_v20  ;;  %v450_v22 = vmul.f32 %v7486_v20, %v7486_v20  ;;  %v7491_v23 = vpop.f32.mrb[13].mxu0  ;;  %v7530_v63 = vpop.permute.xlu0 %893 }
  0xf7   :  { %v451_v24 = vmul.f32 %v7491_v23, %v7491_v23  ;;  %v7495_v25 = vpop.f32.mrb[14].mxu0 }
  0xf8   :  { %v469_v26 = vadd.f32 %v468_v16, %v450_v22  ;;  %v426_v27 = vadd.f32 %v425_v21, %v7491_v23  ;;  %v436_v28 = vadd.f32 %v435_v18, %v7495_v25  ;;  %v460_v29 = vmul.f32 %v7495_v25, %v7495_v25  ;;  %v7501_v30 = vpop.f32.mrb[15].mxu0  ;;  %v7542_v8 = vpop.permute.xlu1 %577 }
  0xf9   :  { %v461_v31 = vmul.f32 %v7501_v30, %v7501_v30 }
  0xfa   :  { %v480_v32 = vadd.f32 %v479_v19, %v460_v29  ;;  %v437_v33 = vadd.f32 %v436_v28, %v7501_v30  ;;  %v470_v34 = vadd.f32 %v469_v26, %v451_v24  ;;  %v7532_v0 = vpop.permute.xlu0 %968 }
  0xfc   :  { %v481_v35 = vadd.f32 %v480_v32, %v461_v31 }
  0xfd   :  { %v7506_v36 = vpop.f32.mrb[16].mxu0 }
  0xfe   :  { %v452_v37 = vmul.f32 %v7506_v36, %v7506_v36  ;;  %v7510_v38 = vpop.f32.mrb[17].mxu0  ;;  %v427_v40 = vadd.f32 %v426_v27, %v7506_v36  ;;  %v7536_v2 = vpop.permute.xlu0 %1043 }
  0xff   :  { %v7513_v42 = vpop.f32.mrb[18].mxu0  ;;  %v453_v43 = vmul.f32 %v7510_v38, %v7510_v38 }
 0x100   :  { %v462_v45 = vmul.f32 %v7513_v42, %v7513_v42  ;;  %v7519_v47 = vpop.f32.mrb[19].mxu0  ;;  %v428_v48 = vadd.f32 %v427_v40, %v7510_v38  ;;  %v471_v49 = vadd.f32 %v470_v34, %v452_v37  ;;  %v438_v50 = vadd.f32 %v437_v33, %v7513_v42 }
 0x101   :  { %v463_v52 = vmul.f32 %v7519_v47, %v7519_v47 }
 0x102   :  { %429 = vadd.xlane.f32.xlu0 %v428_v48  ;;  %v472_v53 = vadd.f32 %v471_v49, %v453_v43  ;;  %v439_v55 = vadd.f32 %v438_v50, %v7519_v47  ;;  %v482_v57 = vadd.f32 %v481_v35, %v462_v45  ;;  %v7540_v5 = vpop.permute.xlu0 %1118 }
 0x104   :  { %473 = vadd.xlane.f32.xlu1 %v472_v53  ;;  %v483_v58 = vadd.f32 %v482_v57, %v463_v52 }
 0x106   :  { %440 = vadd.xlane.f32.xlu0 %v439_v55 }
 0x108   :  { %484 = vadd.xlane.f32.xlu1 %v483_v58 }
 0x18f   :  { %v430_v10 = vpop.xlane.xlu0 %429 }
 0x190   :  { %v442_v11 = vmul.f32 0.00086805556, %v430_v10 }
 0x191   :  { %v474_v17 = vpop.xlane.xlu1 %473 }
 0x192   :  { %v498_v12 = vsub.f32 %v7466_v3, %v442_v11  ;;  %v499_v13 = vsub.f32 %v7471_v6, %v442_v11  ;;  %v500_v15 = vsub.f32 %v7486_v20, %v442_v11  ;;  %v501_v16 = vsub.f32 %v7491_v23, %v442_v11 }
 0x193   :  { %v502_v18 = vsub.f32 %v7506_v36, %v442_v11  ;;  %v503_v19 = vsub.f32 %v7510_v38, %v442_v11  ;;  %v441_v21 = vpop.xlane.xlu0 %440  ;;  %v486_v22 = vmul.f32 0.00086805556, %v474_v17  ;;  %v488_v24 = vmul.f32 %v442_v11, %v442_v11 }
 0x194   :  { %v7550_v26 = vmul.f32 0.00086805556, %v441_v21  ;;  %v495_v34 = vsub.f32 %v7430_v41, %v442_v11  ;;  %v497_v35 = vsub.f32 %v7451_v54, %v442_v11  ;;  %v528_v48 = vmul.f32 %v517_v59, %v498_v12 }
 0x195   :  { %v490_v27 = vsub.f32 %v486_v22, %v488_v24  ;;  %v485_v28 = vpop.xlane.xlu1 %484  ;;  %v529_v54 = vmul.f32 %v517_v59, %v499_v13  ;;  %v530_v49 = vmul.f32 %v517_v59, %v500_v15  ;;  %v531_v50 = vmul.f32 %v517_v59, %v501_v16 }
 0x196   :  { %v508_v3 = vsub.f32 %v7475_v9, %v7550_v26  ;;  %v509_v6 = vsub.f32 %v7481_v14, %v7550_v26  ;;  %v510_v20 = vsub.f32 %v7495_v25, %v7550_v26  ;;  %v511_v29 = vsub.f32 %v7501_v30, %v7550_v26 }
 0x197   :  { %v544_v23 = vadd.f32 1e-05, %v490_v27  ;;  %v512_v31 = vsub.f32 %v7513_v42, %v7550_v26  ;;  %v513_v32 = vsub.f32 %v7519_v47, %v7550_v26  ;;  %v487_v33 = vmul.f32 0.00086805556, %v485_v28 }
 0x198   :  { %v489_v9 = vmul.f32 %v7550_v26, %v7550_v26  ;;  %v494_v14 = vsub.f32 %v7426_v39, %v442_v11  ;;  %v496_v25 = vsub.f32 %v7446_v51, %v442_v11  ;;  %v504_v36 = vsub.f32 %v7436_v44, %v7550_v26 }
 0x199   :  { %7001 = vrsqrt.f32 %v544_v23  ;;  %v505_v37 = vsub.f32 %v7440_v46, %v7550_v26  ;;  %v506_v43 = vsub.f32 %v7455_v56, %v7550_v26  ;;  %v507_v39 = vsub.f32 %v7461_v61, %v7550_v26 }
 0x19a   :  { %v491_v30 = vsub.f32 %v487_v33, %v489_v9  ;;  %v524_v40 = vmul.f32 %v517_v59, %v494_v14  ;;  %v525_v41 = vmul.f32 %v517_v59, %v495_v34  ;;  %v526_v45 = vmul.f32 %v517_v59, %v496_v25 }
 0x19b   :  { %v527_v51 = vmul.f32 %v517_v59, %v497_v35  ;;  %v532_v44 = vmul.f32 %v517_v59, %v502_v18  ;;  %v533_v52 = vmul.f32 %v517_v59, %v503_v19  ;;  %v534_v46 = vmul.f32 %v7534_v1, %v504_v36 }
 0x19c   :  { %v545_v38 = vadd.f32 1e-05, %v491_v30  ;;  %v535_v53 = vmul.f32 %v7534_v1, %v505_v37  ;;  %v536_v56 = vmul.f32 %v7534_v1, %v506_v43  ;;  %v537_v57 = vmul.f32 %v7534_v1, %v507_v39 }
 0x19d   :  { %v538_v61 = vmul.f32 %v7534_v1, %v508_v3  ;;  %v539_v58 = vmul.f32 %v7534_v1, %v509_v6  ;;  %v540_v33 = vmul.f32 %v7534_v1, %v510_v20  ;;  %v541_v9 = vmul.f32 %v7534_v1, %v511_v29 }
 0x19e   :  { %7003 = vrsqrt.f32 %v545_v38  ;;  %v543_v43 = vmul.f32 %v7534_v1, %v513_v32 }
 0x1a3   :  { %v7002_v55 = vpop.eup %7001 }
 0x1a4   :  { %v548_v10 = vmul.f32 %v7002_v55, %v524_v40  ;;  %v549_v11 = vmul.f32 %v7002_v55, %v525_v41  ;;  %v550_v12 = vmul.f32 %v7002_v55, %v526_v45  ;;  %v551_v13 = vmul.f32 %v7002_v55, %v527_v51 }
 0x1a5   :  { %v552_v15 = vmul.f32 %v7002_v55, %v528_v48  ;;  %v553_v16 = vmul.f32 %v7002_v55, %v529_v54  ;;  %v554_v59 = vmul.f32 %v7002_v55, %v530_v49  ;;  %v555_v17 = vmul.f32 %v7002_v55, %v531_v50 }
 0x1a6   :  { %v556_v18 = vmul.f32 %v7002_v55, %v532_v44  ;;  %v557_v19 = vmul.f32 %v7002_v55, %v533_v52  ;;  %v580_v21 = vadd.f32 %v7538_v4, %v548_v10  ;;  %v581_v22 = vadd.f32 %v7538_v4, %v549_v11 }
 0x1a7   :  { %v582_v24 = vadd.f32 %v7538_v4, %v550_v12  ;;  %v583_v27 = vadd.f32 %v7538_v4, %v551_v13  ;;  %v584_v28 = vadd.f32 %v7538_v4, %v552_v15  ;;  %v585_v3 = vadd.f32 %v7538_v4, %v553_v16 }
 0x1a8   :  { %v586_v6 = vadd.f32 %v7538_v4, %v554_v59  ;;  %v587_v23 = vadd.f32 %v7538_v4, %v555_v17  ;;  %v7595_v14 = vadd.f32 %v7538_v4, %v556_v18  ;;  %v7598_v34 = vadd.f32 %v7538_v4, %v557_v19  ;;  %v7004_v25 = vpop.eup %7003 }
 0x1a9   :  { %vm600_vm3 = vcmp.gt.f32.partialorder %v580_v21, 0.0  ;;  %vm601_vm4 = vcmp.gt.f32.partialorder %v581_v22, 0.0  ;;  %vm602_vm5 = vcmp.gt.f32.partialorder %v582_v24, 0.0  ;;  %vm603_vm6 = vcmp.gt.f32.partialorder %v583_v27, 0.0 }
 0x1aa   :  { %vm604_vm7 = vcmp.gt.f32.partialorder %v584_v28, 0.0  ;;  %vm605_vm8 = vcmp.gt.f32.partialorder %v585_v3, 0.0  ;;  %vm606_vm9 = vcmp.gt.f32.partialorder %v586_v6, 0.0  ;;  %vm607_vm10 = vcmp.gt.f32.partialorder %v587_v23, 0.0 }
 0x1ab   :  { %v620_v35 = vmul.f32 0.01, %v580_v21  ;;  %v621_v30 = vmul.f32 0.01, %v581_v22  ;;  %v622_v20 = vmul.f32 0.01, %v582_v24  ;;  %v542_v4 = vmul.f32 %v7534_v1, %v512_v31 }
 0x1ac   :  { %v623_v36 = vmul.f32 0.01, %v583_v27  ;;  %v624_v29 = vmul.f32 0.01, %v584_v28  ;;  %vm608_vm11 = vcmp.gt.f32.partialorder %v7595_v14, 0.0  ;;  %vm609_vm12 = vcmp.gt.f32.partialorder %v7598_v34, 0.0 }
 0x1ad   :  { %v625_v37 = vmul.f32 0.01, %v585_v3  ;;  %v626_v38 = vmul.f32 0.01, %v586_v6  ;;  %v627_v40 = vmul.f32 0.01, %v587_v23  ;;  %v640_v42 = vsel %vm600_vm3, %v580_v21, %v620_v35 }
 0x1ae   :  { %v628_v39 = vmul.f32 0.01, %v7595_v14  ;;  %v629_v41 = vmul.f32 0.01, %v7598_v34  ;;  %v558_v45 = vmul.f32 %v7004_v25, %v534_v46  ;;  %v641_v31 = vsel %vm601_vm4, %v581_v22, %v621_v30 }
 0x1af   :  { %v642_v51 = vsel %vm602_vm5, %v582_v24, %v622_v20  ;;  %v643_v48 = vsel %vm603_vm6, %v583_v27, %v623_v36  ;;  %v644_v54 = vsel %vm604_vm7, %v584_v28, %v624_v29  ;;  %v645_v47 = vsel %vm605_vm8, %v585_v3, %v625_v37 }
 0x1b0   :  { %v646_v1 = vsel %vm606_vm9, %v586_v6, %v626_v38  ;;  %v647_v26 = vsel %vm607_vm10, %v587_v23, %v627_v40  ;;  %v559_v32 = vmul.f32 %v7004_v25, %v535_v53  ;;  %v560_v49 = vmul.f32 %v7004_v25, %v536_v56 }
 0x1b1   :  { %v561_v50 = vmul.f32 %v7004_v25, %v537_v57  ;;  %v562_v44 = vmul.f32 %v7004_v25, %v538_v61  ;;  %v563_v52 = vmul.f32 %v7004_v25, %v539_v58  ;;  %v564_v46 = vmul.f32 %v7004_v25, %v540_v33 }
 0x1b2   :  { %v565_v55 = vmul.f32 %v7004_v25, %v541_v9  ;;  %v566_v10 = vmul.f32 %v7004_v25, %v542_v4  ;;  %v567_v11 = vmul.f32 %v7004_v25, %v543_v43  ;;  %v590_v12 = vadd.f32 %v7542_v8, %v558_v45 }
 0x1b3   :  { %v591_v13 = vadd.f32 %v7542_v8, %v559_v32  ;;  %v592_v15 = vadd.f32 %v7542_v8, %v560_v49  ;;  %v593_v16 = vadd.f32 %v7542_v8, %v561_v50  ;;  %v594_v59 = vadd.f32 %v7542_v8, %v562_v44 }
 0x1b4   :  { %v595_v53 = vadd.f32 %v7542_v8, %v563_v52  ;;  %v596_v56 = vadd.f32 %v7542_v8, %v564_v46  ;;  %v597_v57 = vadd.f32 %v7542_v8, %v565_v55  ;;  %v598_v61 = vadd.f32 %v7542_v8, %v566_v10 }
 0x1b5   :  { %v599_v58 = vadd.f32 %v7542_v8, %v567_v11  ;;  %vm610_vm13 = vcmp.gt.f32.partialorder %v590_v12, 0.0  ;;  %vm611_vm14 = vcmp.gt.f32.partialorder %v591_v13, 0.0  ;;  %vm612_vm15 = vcmp.gt.f32.partialorder %v592_v15, 0.0 }
 0x1b6   :  { %vm613_vm0 = vcmp.gt.f32.partialorder %v593_v16, 0.0  ;;  %vm614_vm1 = vcmp.gt.f32.partialorder %v594_v59, 0.0  ;;  %vm615_vm2 = vcmp.gt.f32.partialorder %v595_v53, 0.0  ;;  %vm616_vm3 = vcmp.gt.f32.partialorder %v596_v56, 0.0 }
 0x1b7   :  { %vm617_vm4 = vcmp.gt.f32.partialorder %v597_v57, 0.0  ;;  %vm618_vm5 = vcmp.gt.f32.partialorder %v598_v61, 0.0  ;;  %vm619_vm6 = vcmp.gt.f32.partialorder %v599_v58, 0.0  ;;  %v648_v17 = vsel %vm608_vm11, %v7595_v14, %v628_v39 }
 0x1b8   :  { %v630_v18 = vmul.f32 0.01, %v590_v12  ;;  %v631_v19 = vmul.f32 0.01, %v591_v13  ;;  %v632_v21 = vmul.f32 0.01, %v592_v15  ;;  %v649_v8 = vsel %vm609_vm12, %v7598_v34, %v629_v41 }
 0x1b9   :  { %v633_v22 = vmul.f32 0.01, %v593_v16  ;;  %v634_v24 = vmul.f32 0.01, %v594_v59  ;;  %v635_v27 = vmul.f32 0.01, %v595_v53 }
 0x1ba   :  { %v636_v28 = vmul.f32 0.01, %v596_v56  ;;  %v637_v3 = vmul.f32 0.01, %v597_v57  ;;  %v638_v6 = vmul.f32 0.01, %v598_v61  ;;  %v650_v23 = vsel %vm610_vm13, %v590_v12, %v630_v18 }
 0x1bb   :  { %v639_v33 = vmul.f32 0.01, %v599_v58  ;;  %v651_v9 = vsel %vm611_vm14, %v591_v13, %v631_v19  ;;  %v652_v14 = vsel %vm612_vm15, %v592_v15, %v632_v21  ;;  %v653_v25 = vsel %vm613_vm0, %v593_v16, %v633_v22 }
 0x1bc   :  { %v654_v35 = vsel %vm614_vm1, %v594_v59, %v634_v24  ;;  %v655_v30 = vsel %vm615_vm2, %v595_v53, %v635_v27  ;;  %v656_v34 = vsel %vm616_vm3, %v596_v56, %v636_v28  ;;  %v657_v20 = vsel %vm617_vm4, %v597_v57, %v637_v3 }
 0x1bd   :  { %v658_v36 = vsel %vm618_vm5, %v598_v61, %v638_v6  ;;  %v659_v29 = vsel %vm619_vm6, %v599_v58, %v639_v33  ;;  %v7646_v4 = vpack.c.bf16 %v650_v23, %v640_v42  ;;  %v7648_v37 = vpack.c.bf16 %v651_v9, %v641_v31  ;;  %v7763_v42 = vld [vmem:[%s10889_s4 + $0x4] ss:$16 sps:$4 sm:$0xff]  }
 0x1be   :  { %v7650_v38 = vpack.c.bf16 %v652_v14, %v642_v51  ;;  %v7652_v40 = vpack.c.bf16 %v653_v25, %v643_v48  ;;  %v7654_v43 = vpack.c.bf16 %v654_v35, %v644_v54  ;;  %v7656_v39 = vpack.c.bf16 %v655_v30, %v645_v47  ;;  %2836 = vmatprep.mubr.bf16.mxu1 %v7763_v42 }
 0x1bf   :  { %v7658_v41 = vpack.c.bf16 %v656_v34, %v646_v1  ;;  %v7660_v45 = vpack.c.bf16 %v657_v20, %v647_v26  ;;  %v7662_v32 = vpack.c.bf16 %v658_v36, %v648_v17  ;;  %v7664_v49 = vpack.c.bf16 %v659_v29, %v649_v8  ;;  %725 = vrot.lane.b32.xlu1 %v7648_v37, %s7199_s27 }
 0x1c0   :  { %2910 = vmatprep.subr.bf16.mxu0 %v7652_v40  ;;  %2804 = vmatprep.subr.bf16.mxu1 %v7648_v37  ;;  %vm745_vm7 = vcmask 1039360   ;;  %vm820_vm8 = vcmask 1031168   ;;  %vm895_vm9 = vcmask 1022976   ;;  %vm970_vm10 = vcmask 1014784  }
 0x1c1   :  { %798 = vrot.lane.b32.xlu0 %v7646_v4, %s7200_s28  ;;  %2805 = vmatpush1.bf16.msra.mxu1 %v7646_v4  ;;  %vm1045_vm11 = vcmask 850944   ;;  %vm1120_vm12 = vcmask 842752   ;;  %vm1195_vm13 = vcmask 834560   ;;  %vm1270_vm14 = vcmask 826368  }
 0x1c2   :  { %2911 = vmatpush1.bf16.msra.mxu0 %v7650_v38  ;;  %2942 = vmatprep.mubr.bf16.mxu0 %v7763_v42  ;;  %vm1345_vm15 = vcmask 818176   ;;  %vm10941_vm0 = vcmask 654336   ;;  %vm10939_vm1 = vcmask 646144   ;;  %vm10938_vm2 = vcmask 637952  }
 0x1c3   :  { %727 = vrot.lane.b32.xlu1 %v7650_v38, %s7199_s27  ;;  %vm10940_vm3 = vcmask 629760   ;;  %vm10921_vm4 = vcmask 621568   ;;  %vm10919_vm5 = vcmask 457728   ;;  %vm10920_vm6 = vcmask 449536  }
 0x1c5   :  { %877 = vrot.lane.b32.xlu0 %v7650_v38, %s7201_s1 }
 0x1c7   :  { %723 = vrot.lane.b32.xlu1 %v7646_v4, %s7199_s27 }
 0x1c9   :  { %950 = vrot.lane.b32.xlu0 %v7648_v37, %s10917_s21 }
 0x1cb   :  { %800 = vrot.lane.b32.xlu1 %v7648_v37, %s7200_s28 }
 0x1cd   :  { %948 = vrot.lane.b32.xlu0 %v7646_v4, %s10917_s21 }
 0x1cf   :  { %802 = vrot.lane.b32.xlu1 %v7650_v38, %s7200_s28 }
 0x1d1   :  { %1027 = vrot.lane.b32.xlu0 %v7650_v38, %s10915_s0 }
 0x1d3   :  { %875 = vrot.lane.b32.xlu1 %v7648_v37, %s7201_s1 }
 0x1d5   :  { %1100 = vrot.lane.b32.xlu0 %v7648_v37, %s10913_s2 }
 0x1d7   :  { %873 = vrot.lane.b32.xlu1 %v7646_v4, %s7201_s1 }
 0x1d9   :  { %1098 = vrot.lane.b32.xlu0 %v7646_v4, %s10913_s2 }
 0x1db   :  { %952 = vrot.lane.b32.xlu1 %v7650_v38, %s10917_s21 }
 0x1dd   :  { %1177 = vrot.lane.b32.xlu0 %v7650_v38, %s10911_s22 }
 0x1df   :  { %1025 = vrot.lane.b32.xlu1 %v7648_v37, %s10915_s0 }
 0x1e1   :  { %1250 = vrot.lane.b32.xlu0 %v7648_v37, %s7206_s23 }
 0x1e3   :  { %1023 = vrot.lane.b32.xlu1 %v7646_v4, %s10915_s0 }
 0x1e5   :  { %1248 = vrot.lane.b32.xlu0 %v7646_v4, %s7206_s23 }
 0x1e7   :  { %1102 = vrot.lane.b32.xlu1 %v7650_v38, %s10913_s2 }
 0x1e9   :  { %1327 = vrot.lane.b32.xlu0 %v7650_v38, %s7207_s24 }
 0x1eb   :  { %1175 = vrot.lane.b32.xlu1 %v7648_v37, %s10911_s22 }
 0x1ed   :  { %1400 = vrot.lane.b32.xlu0 %v7648_v37, %s7208_s25 }
 0x1ef   :  { %1173 = vrot.lane.b32.xlu1 %v7646_v4, %s10911_s22 }
 0x1f1   :  { %1398 = vrot.lane.b32.xlu0 %v7646_v4, %s7208_s25 }
 0x1f3   :  { %1252 = vrot.lane.b32.xlu1 %v7650_v38, %s7206_s23 }
 0x1f5   :  { %1477 = vrot.lane.b32.xlu0 %v7650_v38, %s10932_s26 }
 0x1f7   :  { %1325 = vrot.lane.b32.xlu1 %v7648_v37, %s7207_s24 }
 0x1f9   :  { %1550 = vrot.lane.b32.xlu0 %v7648_v37, %s10930_s3 }
 0x1fb   :  { %1323 = vrot.lane.b32.xlu1 %v7646_v4, %s7207_s24 }
 0x1fd   :  { %1548 = vrot.lane.b32.xlu0 %v7646_v4, %s10930_s3 }
 0x1ff   :  { %1402 = vrot.lane.b32.xlu1 %v7650_v38, %s7208_s25 }
 0x201   :  { %1627 = vrot.lane.b32.xlu0 %v7650_v38, %s10901_s29 }
 0x203   :  { %1475 = vrot.lane.b32.xlu1 %v7648_v37, %s10932_s26 }
 0x205   :  { %1700 = vrot.lane.b32.xlu0 %v7648_v37, %s10928_s30 }
 0x207   :  { %1473 = vrot.lane.b32.xlu1 %v7646_v4, %s10932_s26 }
 0x209   :  { %1698 = vrot.lane.b32.xlu0 %v7646_v4, %s10928_s30 }
 0x20b   :  { %1552 = vrot.lane.b32.xlu1 %v7650_v38, %s10930_s3 }
 0x20d   :  { %1777 = vrot.lane.b32.xlu0 %v7650_v38, %s10905_s16 }
 0x20f   :  { %1625 = vrot.lane.b32.xlu1 %v7648_v37, %s10901_s29 }
 0x211   :  { %1850 = vrot.lane.b32.xlu0 %v7648_v37, %s10903_s17 }
 0x213   :  { %1623 = vrot.lane.b32.xlu1 %v7646_v4, %s10901_s29  ;;  %s10907_s29 = smov 53  }
 0x215   :  { %1848 = vrot.lane.b32.xlu0 %v7646_v4, %s10903_s17 }
 0x217   :  { %1702 = vrot.lane.b32.xlu1 %v7650_v38, %s10928_s30 }
 0x219   :  { %1927 = vrot.lane.b32.xlu0 %v7650_v38, %s7215_s20 }
 0x21b   :  { %1775 = vrot.lane.b32.xlu1 %v7648_v37, %s10905_s16 }
 0x21d   :  { %2000 = vrot.lane.b32.xlu0 %v7648_v37, %s10907_s29 }
 0x21f   :  { %1773 = vrot.lane.b32.xlu1 %v7646_v4, %s10905_s16  ;;  %s7220_s16 = smov 30  }
 0x221   :  { %1998 = vrot.lane.b32.xlu0 %v7646_v4, %s10907_s29 }
 0x223   :  { %1852 = vrot.lane.b32.xlu1 %v7650_v38, %s10903_s17  ;;  %s7219_s17 = smov 31  }
 0x225   :  { %2077 = vrot.lane.b32.xlu0 %v7650_v38, %s10909_s18 }
 0x227   :  { %1925 = vrot.lane.b32.xlu1 %v7648_v37, %s7215_s20 }
 0x229   :  { %2150 = vrot.lane.b32.xlu0 %v7648_v37, %s7218_s19 }
 0x22b   :  { %1923 = vrot.lane.b32.xlu1 %v7646_v4, %s7215_s20 }
 0x22d   :  { %2148 = vrot.lane.b32.xlu0 %v7646_v4, %s7218_s19 }
 0x22f   :  { %2002 = vrot.lane.b32.xlu1 %v7650_v38, %s10907_s29  ;;  %s10936_s29 = smov 29  }
 0x231   :  { %2227 = vrot.lane.b32.xlu0 %v7650_v38, %s7219_s17  ;;  %v726_v31 = vpop.permute.xlu1 %725 }
 0x233   :  { %v799_v51 = vpop.permute.xlu0 %798  ;;  %2075 = vrot.lane.b32.xlu1 %v7648_v37, %s10909_s18 }
 0x235   :  { %2300 = vrot.lane.b32.xlu0 %v7648_v37, %s7220_s16  ;;  %v7797_v48 = vpop.permute.xlu1 %727 }
 0x236   :  { %v747_v54 = vsel %vm745_vm7, %v726_v31, %v7797_v48 }
 0x237   :  { %v7801_v47 = vpop.permute.xlu0 %877  ;;  %2073 = vrot.lane.b32.xlu1 %v7646_v4, %s10909_s18  ;;  %2806 = vmatprep.subr.bf16.mxu1 %v747_v54  ;;  %s10934_s18 = smov 28  }
 0x239   :  { %2298 = vrot.lane.b32.xlu0 %v7646_v4, %s7220_s16  ;;  %v724_v1 = vpop.permute.xlu1 %723 }
 0x23a   :  { %v746_v26 = vsel %vm745_vm7, %v724_v1, %v726_v31 }
 0x23b   :  { %v951_v50 = vpop.permute.xlu0 %950  ;;  %2152 = vrot.lane.b32.xlu1 %v7650_v38, %s7218_s19  ;;  %2807 = vmatpush1.bf16.msra.mxu1 %v746_v26 }
 0x23d   :  { %2377 = vrot.lane.b32.xlu0 %v7650_v38, %s10936_s29  ;;  %v801_v44 = vpop.permute.xlu1 %800 }
 0x23e   :  { %v821_v11 = vsel %vm820_vm8, %v799_v51, %v801_v44 }
 0x23f   :  { %v949_v52 = vpop.permute.xlu0 %948  ;;  %2225 = vrot.lane.b32.xlu1 %v7648_v37, %s7219_s17 }
 0x240   :  { %v971_v58 = vsel %vm970_vm10, %v949_v52, %v951_v50 }
 0x241   :  { %2450 = vrot.lane.b32.xlu0 %v7648_v37, %s10934_s18  ;;  %v7816_v46 = vpop.permute.xlu1 %802 }
 0x242   :  { %v822_v55 = vsel %vm820_vm8, %v801_v44, %v7816_v46 }
 0x243   :  { %v7820_v10 = vpop.permute.xlu0 %1027  ;;  %2223 = vrot.lane.b32.xlu1 %v7646_v4, %s7219_s17  ;;  %2808 = vmatprep.subr.bf16.mxu1 %v822_v55 }
 0x244   :  { %2809 = vmatpush1.bf16.msra.mxu1 %v821_v11 }
 0x245   :  { %2448 = vrot.lane.b32.xlu0 %v7646_v4, %s10934_s18  ;;  %v876_v12 = vpop.permute.xlu1 %875 }
 0x246   :  { %v897_v13 = vsel %vm895_vm9, %v876_v12, %v7801_v47 }
 0x247   :  { %v1101_v15 = vpop.permute.xlu0 %1100  ;;  %2302 = vrot.lane.b32.xlu1 %v7650_v38, %s7220_s16  ;;  %2810 = vmatprep.subr.bf16.mxu1 %v897_v13 }
 0x249   :  { %731 = vrot.lane.b32.xlu0 %v7654_v43, %s7199_s27  ;;  %v874_v16 = vpop.permute.xlu1 %873 }
 0x24a   :  { %v896_v59 = vsel %vm895_vm9, %v874_v16, %v876_v12 }
 0x24b   :  { %v1099_v53 = vpop.permute.xlu0 %1098  ;;  %2375 = vrot.lane.b32.xlu1 %v7648_v37, %s10936_s29  ;;  %2811 = vmatpush1.bf16.msra.mxu1 %v896_v59 }
 0x24c   :  { %v1121_v3 = vsel %vm1120_vm12, %v1099_v53, %v1101_v15 }
 0x24d   :  { %735 = vrot.lane.b32.xlu0 %v7658_v41, %s7199_s27  ;;  %v7838_v56 = vpop.permute.xlu1 %952 }
 0x24e   :  { %v972_v57 = vsel %vm970_vm10, %v951_v50, %v7838_v56 }
 0x24f   :  { %v7842_v61 = vpop.permute.xlu0 %1177  ;;  %2373 = vrot.lane.b32.xlu1 %v7646_v4, %s10936_s29  ;;  %2812 = vmatprep.subr.bf16.mxu1 %v972_v57 }
 0x250   :  { %2813 = vmatpush1.bf16.msra.mxu1 %v971_v58 }
 0x251   :  { %806 = vrot.lane.b32.xlu0 %v7654_v43, %s7200_s28  ;;  %v1026_v17 = vpop.permute.xlu1 %1025 }
 0x252   :  { %v1047_v18 = vsel %vm1045_vm11, %v1026_v17, %v7820_v10 }
 0x253   :  { %v1251_v19 = vpop.permute.xlu0 %1250  ;;  %2452 = vrot.lane.b32.xlu1 %v7650_v38, %s10934_s18  ;;  %2814 = vmatprep.subr.bf16.mxu1 %v1047_v18 }
 0x255   :  { %810 = vrot.lane.b32.xlu0 %v7658_v41, %s7200_s28  ;;  %v1024_v21 = vpop.permute.xlu1 %1023 }
 0x256   :  { %v1046_v8 = vsel %vm1045_vm11, %v1024_v21, %v1026_v17 }
 0x257   :  { %v1249_v22 = vpop.permute.xlu0 %1248  ;;  %729 = vrot.lane.b32.xlu1 %v7652_v40, %s7199_s27  ;;  %2815 = vmatpush1.bf16.msra.mxu1 %v1046_v8 }
 0x258   :  { %v1271_v20 = vsel %vm1270_vm14, %v1249_v22, %v1251_v19 }
 0x259   :  { %881 = vrot.lane.b32.xlu0 %v7654_v43, %s7201_s1  ;;  %v7860_v24 = vpop.permute.xlu1 %1102 }
 0x25a   :  { %v1122_v27 = vsel %vm1120_vm12, %v1101_v15, %v7860_v24 }
 0x25b   :  { %v7864_v28 = vpop.permute.xlu0 %1327  ;;  %733 = vrot.lane.b32.xlu1 %v7656_v39, %s7199_s27  ;;  %2816 = vmatprep.subr.bf16.mxu1 %v1122_v27 }
 0x25c   :  { %2817 = vmatpush1.bf16.msra.mxu1 %v1121_v3 }
 0x25d   :  { %885 = vrot.lane.b32.xlu0 %v7658_v41, %s7201_s1  ;;  %v1176_v6 = vpop.permute.xlu1 %1175 }
 0x25e   :  { %v1197_v23 = vsel %vm1195_vm13, %v1176_v6, %v7842_v61 }
 0x25f   :  { %v1401_v33 = vpop.permute.xlu0 %1400  ;;  %804 = vrot.lane.b32.xlu1 %v7652_v40, %s7200_s28  ;;  %2818 = vmatprep.subr.bf16.mxu1 %v1197_v23 }
 0x261   :  { %956 = vrot.lane.b32.xlu0 %v7654_v43, %s10917_s21  ;;  %v1174_v9 = vpop.permute.xlu1 %1173 }
 0x262   :  { %v1196_v14 = vsel %vm1195_vm13, %v1174_v9, %v1176_v6 }
 0x263   :  { %v1399_v25 = vpop.permute.xlu0 %1398  ;;  %808 = vrot.lane.b32.xlu1 %v7656_v39, %s7200_s28  ;;  %2819 = vmatpush1.bf16.msra.mxu1 %v1196_v14  ;;  %v7969_v14 = vld [vmem:[%s10889_s4] ss:$16 sps:$4 sm:$0xff]  }
 0x264   :  { %v1421_v26 = vsel %vm10941_vm0, %v1399_v25, %v1401_v33 }
 0x265   :  { %960 = vrot.lane.b32.xlu0 %v7658_v41, %s10917_s21  ;;  %v7882_v35 = vpop.permute.xlu1 %1252 }
 0x266   :  { %v1272_v30 = vsel %vm1270_vm14, %v1251_v19, %v7882_v35 }
 0x267   :  { %v7886_v34 = vpop.permute.xlu0 %1477  ;;  %879 = vrot.lane.b32.xlu1 %v7652_v40, %s7201_s1  ;;  %2820 = vmatprep.subr.bf16.mxu1 %v1272_v30  ;;  %v7976_v30 = vld [vmem:[%s10889_s4 + $0x24] ss:$16 sps:$4 sm:$0xff]  }
 0x268   :  { %2821 = vmatpush1.bf16.msra.mxu1 %v1271_v20 }
 0x269   :  { %1031 = vrot.lane.b32.xlu0 %v7654_v43, %s10915_s0  ;;  %v1326_v36 = vpop.permute.xlu1 %1325 }
 0x26a   :  { %v1347_v29 = vsel %vm1345_vm15, %v1326_v36, %v7864_v28 }
 0x26b   :  { %v1551_v4 = vpop.permute.xlu0 %1550  ;;  %883 = vrot.lane.b32.xlu1 %v7656_v39, %s7201_s1  ;;  %2822 = vmatprep.subr.bf16.mxu1 %v1347_v29 }
 0x26d   :  { %1035 = vrot.lane.b32.xlu0 %v7658_v41, %s10915_s0  ;;  %v1324_v37 = vpop.permute.xlu1 %1323 }
 0x26e   :  { %v1346_v38 = vsel %vm1345_vm15, %v1324_v37, %v1326_v36 }
 0x26f   :  { %v1549_v31 = vpop.permute.xlu0 %1548  ;;  %954 = vrot.lane.b32.xlu1 %v7652_v40, %s10917_s21  ;;  %2823 = vmatpush1.bf16.msra.mxu1 %v1346_v38 }
 0x270   :  { %v1571_v59 = vsel %vm10938_vm2, %v1549_v31, %v1551_v4  ;;  %v7998_v31 = vld [vmem:[%s10889_s4 + $0x20] ss:$16 sps:$4 sm:$0xff]  }
 0x271   :  { %1106 = vrot.lane.b32.xlu0 %v7654_v43, %s10913_s2  ;;  %v7904_v51 = vpop.permute.xlu1 %1402 }
 0x272   :  { %v1422_v54 = vsel %vm10941_vm0, %v1401_v33, %v7904_v51 }
 0x273   :  { %v7908_v1 = vpop.permute.xlu0 %1627  ;;  %958 = vrot.lane.b32.xlu1 %v7656_v39, %s10917_s21  ;;  %2824 = vmatprep.subr.bf16.mxu1 %v1422_v54  ;;  %s10970_s21 = smov 77  }
 0x274   :  { %2825 = vmatpush1.bf16.msra.mxu1 %v1421_v26  ;;  %v8005_v26 = vld [vmem:[%s10889_s4 + $0xc] ss:$16 sps:$4 sm:$0xff]  }
 0x275   :  { %1110 = vrot.lane.b32.xlu0 %v7658_v41, %s10913_s2  ;;  %v1476_v50 = vpop.permute.xlu1 %1475 }
 0x276   :  { %v1497_v44 = vsel %vm10939_vm1, %v1476_v50, %v7886_v34 }
 0x277   :  { %v1701_v52 = vpop.permute.xlu0 %1700  ;;  %1029 = vrot.lane.b32.xlu1 %v7652_v40, %s10915_s0  ;;  %2826 = vmatprep.subr.bf16.mxu1 %v1497_v44 }
 0x279   :  { %1181 = vrot.lane.b32.xlu0 %v7654_v43, %s10911_s22  ;;  %v1474_v55 = vpop.permute.xlu1 %1473 }
 0x27a   :  { %v1496_v11 = vsel %vm10939_vm1, %v1474_v55, %v1476_v50 }
 0x27b   :  { %v1699_v12 = vpop.permute.xlu0 %1698  ;;  %1033 = vrot.lane.b32.xlu1 %v7656_v39, %s10915_s0  ;;  %2827 = vmatpush1.bf16.msra.mxu1 %v1496_v11  ;;  %s10971_s0 = smov 56  }
 0x27c   :  { %v1721_v27 = vsel %vm10921_vm4, %v1699_v12, %v1701_v52 }
 0x27d   :  { %1185 = vrot.lane.b32.xlu0 %v7658_v41, %s10911_s22  ;;  %v7926_v13 = vpop.permute.xlu1 %1552 }
 0x27e   :  { %v1572_v15 = vsel %vm10938_vm2, %v1551_v4, %v7926_v13 }
 0x27f   :  { %v7930_v16 = vpop.permute.xlu0 %1777  ;;  %1104 = vrot.lane.b32.xlu1 %v7652_v40, %s10913_s2  ;;  %2828 = vmatprep.subr.bf16.mxu1 %v1572_v15 }
 0x280   :  { %2829 = vmatpush1.bf16.msra.mxu1 %v1571_v59 }
 0x281   :  { %1256 = vrot.lane.b32.xlu0 %v7654_v43, %s7206_s23  ;;  %v1626_v53 = vpop.permute.xlu1 %1625 }
 0x282   :  { %v1647_v57 = vsel %vm10940_vm3, %v1626_v53, %v7908_v1 }
 0x283   :  { %v1851_v58 = vpop.permute.xlu0 %1850  ;;  %1108 = vrot.lane.b32.xlu1 %v7656_v39, %s10913_s2  ;;  %2830 = vmatprep.subr.bf16.mxu1 %v1647_v57  ;;  %s10972_s2 = smov 55  }
 0x285   :  { %1260 = vrot.lane.b32.xlu0 %v7658_v41, %s7206_s23  ;;  %v1624_v17 = vpop.permute.xlu1 %1623 }
 0x286   :  { %v1646_v18 = vsel %vm10940_vm3, %v1624_v17, %v1626_v53 }
 0x287   :  { %v1849_v19 = vpop.permute.xlu0 %1848  ;;  %1179 = vrot.lane.b32.xlu1 %v7652_v40, %s10911_s22  ;;  %2831 = vmatpush1.bf16.msra.mxu1 %v1646_v18 }
 0x288   :  { %v1871_v29 = vsel %vm10920_vm6, %v1849_v19, %v1851_v58 }
 0x289   :  { %1331 = vrot.lane.b32.xlu0 %v7654_v43, %s7207_s24  ;;  %v7948_v21 = vpop.permute.xlu1 %1702 }
 0x28a   :  { %v1722_v8 = vsel %vm10921_vm4, %v1701_v52, %v7948_v21  ;;  %vm10923_vm4 = vcmask 433152  }
 0x28b   :  { %v7952_v22 = vpop.permute.xlu0 %1927  ;;  %1183 = vrot.lane.b32.xlu1 %v7656_v39, %s10911_s22  ;;  %2832 = vmatprep.subr.bf16.mxu1 %v1722_v8  ;;  %s10974_s22 = smov 52  }
 0x28c   :  { %2833 = vmatpush1.bf16.msra.mxu1 %v1721_v27 }
 0x28d   :  { %1335 = vrot.lane.b32.xlu0 %v7658_v41, %s7207_s24  ;;  %v1776_v3 = vpop.permute.xlu1 %1775 }
 0x28e   :  { %v1797_v6 = vsel %vm10919_vm5, %v1776_v3, %v7930_v16 }
 0x28f   :  { %v2001_v23 = vpop.permute.xlu0 %2000  ;;  %1254 = vrot.lane.b32.xlu1 %v7652_v40, %s7206_s23  ;;  %2834 = vmatprep.subr.bf16.mxu1 %v1797_v6 }
 0x291   :  { %1406 = vrot.lane.b32.xlu0 %v7654_v43, %s7208_s25  ;;  %v1774_v33 = vpop.permute.xlu1 %1773 }
 0x292   :  { %v1796_v9 = vsel %vm10919_vm5, %v1774_v33, %v1776_v3  ;;  %vm10922_vm5 = vcmask 441344  }
 0x293   :  { %v1999_v25 = vpop.permute.xlu0 %1998  ;;  %1258 = vrot.lane.b32.xlu1 %v7656_v39, %s7206_s23  ;;  %2835 = vmatpush1.bf16.msra.mxu1 %v1796_v9 }
 0x294   :  { %v2021_v12 = vsel %vm10923_vm4, %v1999_v25, %v2001_v23 }
 0x295   :  { %1410 = vrot.lane.b32.xlu0 %v7658_v41, %s7208_s25  ;;  %v7980_v20 = vpop.permute.xlu1 %1852 }
 0x296   :  { %v1872_v36 = vsel %vm10920_vm6, %v1851_v58, %v7980_v20  ;;  %2837 = vmatmul.mubr.bf16.vlgmr.msra.gmra.mrb[0].mxu1 %v7969_v14  ;;  %vm2797_vm6 = vcmask 130048  }
 0x297   :  { %v7986_v4 = vpop.permute.xlu0 %2077  ;;  %1329 = vrot.lane.b32.xlu1 %v7652_v40, %s7207_s24  ;;  %2857 = vmatprep.subr.bf16.mxu1 %v1872_v36 }
 0x298   :  { %2858 = vmatpush1.bf16.msra.mxu1 %v1871_v29  ;;  %2846 = vmatprep.mubr.bf16.mxu1 %v7976_v30 }
 0x299   :  { %1481 = vrot.lane.b32.xlu0 %v7654_v43, %s10932_s26  ;;  %v1926_v37 = vpop.permute.xlu1 %1925 }
 0x29a   :  { %v1947_v38 = vsel %vm10922_vm5, %v1926_v37, %v7952_v22 }
 0x29b   :  { %v2151_v54 = vpop.permute.xlu0 %2150  ;;  %1333 = vrot.lane.b32.xlu1 %v7656_v39, %s7207_s24  ;;  %2859 = vmatprep.subr.bf16.mxu1 %v1947_v38 }
 0x29d   :  { %1485 = vrot.lane.b32.xlu0 %v7658_v41, %s10932_s26  ;;  %v1924_v50 = vpop.permute.xlu1 %1923 }
 0x29e   :  { %v1946_v44 = vsel %vm10922_vm5, %v1924_v50, %v1926_v37  ;;  %2847 = vmatmul.mubr.bf16.gmra.mrb[4].mxu1 %v7998_v31  ;;  %vm10924_vm5 = vcmask 424960  }
 0x29f   :  { %v2149_v52 = vpop.permute.xlu0 %2148  ;;  %1404 = vrot.lane.b32.xlu1 %v7652_v40, %s7208_s25  ;;  %2860 = vmatpush1.bf16.msra.mxu1 %v1946_v44 }
 0x2a0   :  { %6107 = vmatprep.mubr.msk.bf16.mxu1 %vm2797_vm6, %v8005_v26 }
 0x2a1   :  { %1556 = vrot.lane.b32.xlu0 %v7654_v43, %s10930_s3  ;;  %v8017_v55 = vpop.permute.xlu1 %2002 }
 0x2a2   :  { %v2022_v11 = vsel %vm10923_vm4, %v2001_v23, %v8017_v55  ;;  %vm10925_vm4 = vcmask 261120  }
 0x2a3   :  { %v8022_v15 = vpop.permute.xlu0 %2227  ;;  %1408 = vrot.lane.b32.xlu1 %v7656_v39, %s7208_s25  ;;  %2861 = vmatprep.subr.bf16.mxu1 %v2022_v11  ;;  %v2171_v27 = vsel %vm10925_vm4, %v2149_v52, %v2151_v54 }
 0x2a4   :  { %2862 = vmatpush1.bf16.msra.mxu1 %v2021_v12 }
 0x2a5   :  { %1560 = vrot.lane.b32.xlu0 %v7658_v41, %s10930_s3  ;;  %v2076_v59 = vpop.permute.xlu1 %2075 }
 0x2a6   :  { %v2097_v53 = vsel %vm10924_vm5, %v2076_v59, %v7986_v4 }
 0x2a7   :  { %v2301_v57 = vpop.permute.xlu0 %2300  ;;  %1479 = vrot.lane.b32.xlu1 %v7652_v40, %s10932_s26  ;;  %2863 = vmatprep.subr.bf16.mxu1 %v2097_v53 }
 0x2a9   :  { %1631 = vrot.lane.b32.xlu0 %v7654_v43, %s10970_s21  ;;  %v2074_v58 = vpop.permute.xlu1 %2073 }
 0x2aa   :  { %v2096_v17 = vsel %vm10924_vm5, %v2074_v58, %v2076_v59  ;;  %vm10926_vm5 = vcmask 252928  }
 0x2ab   :  { %v2299_v18 = vpop.permute.xlu0 %2298  ;;  %1483 = vrot.lane.b32.xlu1 %v7656_v39, %s10932_s26  ;;  %2864 = vmatpush1.bf16.msra.mxu1 %v2096_v17  ;;  %s10975_s26 = smov 124  }
 0x2ad   :  { %1635 = vrot.lane.b32.xlu0 %v7658_v41, %s10970_s21  ;;  %v8039_v19 = vpop.permute.xlu1 %2152 }
 0x2ae   :  { %v2172_v8 = vsel %vm10925_vm4, %v2151_v54, %v8039_v19  ;;  %vm10927_vm4 = vcmask 244736  }
 0x2af   :  { %v8044_v3 = vpop.permute.xlu0 %2377  ;;  %1554 = vrot.lane.b32.xlu1 %v7652_v40, %s10930_s3  ;;  %2865 = vmatprep.subr.bf16.mxu1 %v2172_v8  ;;  %v2321_v38 = vsel %vm10927_vm4, %v2299_v18, %v2301_v57  ;;  %v8095_v18 = vld [vmem:[%s10889_s4 + $0x8] ss:$16 sps:$4 sm:$0xff]  }
 0x2b0   :  { %2866 = vmatpush1.bf16.msra.mxu1 %v2171_v27 }
 0x2b1   :  { %1706 = vrot.lane.b32.xlu0 %v7654_v43, %s10928_s30  ;;  %v2226_v6 = vpop.permute.xlu1 %2225 }
 0x2b2   :  { %v2247_v23 = vsel %vm10926_vm5, %v2226_v6, %v8022_v15 }
 0x2b3   :  { %v2451_v33 = vpop.permute.xlu0 %2450  ;;  %1558 = vrot.lane.b32.xlu1 %v7656_v39, %s10930_s3  ;;  %2867 = vmatprep.subr.bf16.mxu1 %v2247_v23  ;;  %v8106_v23 = vld [vmem:[%s10889_s4 + $0x2c] ss:$16 sps:$4 sm:$0xff]   ;;  %s10976_s3 = smov 104  }
 0x2b5   :  { %1710 = vrot.lane.b32.xlu0 %v7658_v41, %s10928_s30  ;;  %v2224_v9 = vpop.permute.xlu1 %2223 }
 0x2b6   :  { %v2246_v25 = vsel %vm10926_vm5, %v2224_v9, %v2226_v6  ;;  %vm2395_vm5 = vcmask 236544  }
 0x2b7   :  { %v2449_v36 = vpop.permute.xlu0 %2448  ;;  %1629 = vrot.lane.b32.xlu1 %v7652_v40, %s10970_s21  ;;  %2868 = vmatpush1.bf16.msra.mxu1 %v2246_v25 }
 0x2b9   :  { %1781 = vrot.lane.b32.xlu0 %v7654_v43, %s10971_s0  ;;  %v8061_v29 = vpop.permute.xlu1 %2302 }
 0x2ba   :  { %v2322_v37 = vsel %vm10927_vm4, %v2301_v57, %v8061_v29  ;;  %vm2470_vm4 = vcmask 228352  }
 0x2bb   :  { %v732_v54 = vpop.permute.xlu0 %731  ;;  %1633 = vrot.lane.b32.xlu1 %v7656_v39, %s10970_s21  ;;  %2869 = vmatprep.subr.bf16.mxu1 %v2322_v37  ;;  %v2471_v58 = vsel %vm2470_vm4, %v2449_v36, %v2451_v33  ;;  %v8126_v37 = vld [vmem:[%s10889_s4 + $0x28] ss:$16 sps:$4 sm:$0xff]  }
 0x2bc   :  { %2870 = vmatpush1.bf16.msra.mxu1 %v2321_v38 }
 0x2bd   :  { %1785 = vrot.lane.b32.xlu0 %v7658_v41, %s10971_s0  ;;  %v2376_v50 = vpop.permute.xlu1 %2375 }
 0x2be   :  { %v2397_v44 = vsel %vm2395_vm5, %v2376_v50, %v8044_v3 }
 0x2bf   :  { %v8072_v52 = vpop.permute.xlu0 %735  ;;  %1704 = vrot.lane.b32.xlu1 %v7652_v40, %s10928_s30  ;;  %2871 = vmatprep.subr.bf16.mxu1 %v2397_v44 }
 0x2c1   :  { %1856 = vrot.lane.b32.xlu0 %v7654_v43, %s10972_s2  ;;  %v2374_v11 = vpop.permute.xlu1 %2373 }
 0x2c2   :  { %v2396_v12 = vsel %vm2395_vm5, %v2374_v11, %v2376_v50 }
 0x2c3   :  { %v807_v59 = vpop.permute.xlu0 %806  ;;  %1708 = vrot.lane.b32.xlu1 %v7656_v39, %s10928_s30  ;;  %2872 = vmatpush1.bf16.msra.mxu1 %v2396_v12  ;;  %s10973_s30 = smov 53  }
 0x2c5   :  { %1860 = vrot.lane.b32.xlu0 %v7658_v41, %s10972_s2  ;;  %v8083_v53 = vpop.permute.xlu1 %2452 }
 0x2c6   :  { %v2472_v57 = vsel %vm2470_vm4, %v2451_v33, %v8083_v53 }
 0x2c7   :  { %v8088_v17 = vpop.permute.xlu0 %810  ;;  %1779 = vrot.lane.b32.xlu1 %v7652_v40, %s10971_s0  ;;  %2873 = vmatprep.subr.bf16.mxu1 %v2472_v57 }
 0x2c8   :  { %2874 = vmatpush1.bf16.msra.mxu1 %v2471_v58 }
 0x2c9   :  { %1931 = vrot.lane.b32.xlu0 %v7654_v43, %s7215_s20  ;;  %v730_v8 = vpop.permute.xlu1 %729  ;;  %3016 = vmatprep.subr.bf16.mxu1 %v7656_v39 }
 0x2ca   :  { %v749_v27 = vsel %vm745_vm7, %v730_v8, %v732_v54  ;;  %v748_v6 = vsel %vm745_vm7, %v7797_v48, %v730_v8 }
 0x2cb   :  { %v882_v33 = vpop.permute.xlu0 %881  ;;  %1783 = vrot.lane.b32.xlu1 %v7656_v39, %s10971_s0  ;;  %2912 = vmatprep.subr.bf16.mxu0 %v749_v27 }
 0x2cc   :  { %2890 = vmatmul.mubr.bf16.vlgmr.msra.gmra.mrb[0].mxu1 %v8095_v18  ;;  %2913 = vmatpush1.bf16.msra.mxu0 %v748_v6 }
 0x2cd   :  { %1935 = vrot.lane.b32.xlu0 %v7658_v41, %s7215_s20  ;;  %3017 = vmatpush1.bf16.msra.mxu1 %v7654_v43  ;;  %v734_v9 = vpop.permute.xlu1 %733 }
 0x2ce   :  { %v751_v48 = vsel %vm745_vm7, %v734_v9, %v8072_v52  ;;  %v750_v25 = vsel %vm745_vm7, %v732_v54, %v734_v9  ;;  %6108 = vmatprep.mubr.msk.bf16.mxu1 %vm2797_vm6, %v8106_v23 }
 0x2cf   :  { %v8119_v36 = vpop.permute.xlu0 %885  ;;  %1854 = vrot.lane.b32.xlu1 %v7652_v40, %s10972_s2  ;;  %3018 = vmatprep.subr.bf16.mxu1 %v751_v48 }
 0x2d1   :  { %2006 = vrot.lane.b32.xlu0 %v7654_v43, %s10973_s30  ;;  %3019 = vmatpush1.bf16.msra.mxu1 %v750_v25  ;;  %v805_v38 = vpop.permute.xlu1 %804 }
 0x2d2   :  { %v824_v54 = vsel %vm820_vm8, %v805_v38, %v807_v59  ;;  %v823_v50 = vsel %vm820_vm8, %v7816_v46, %v805_v38 }
 0x2d3   :  { %v957_v44 = vpop.permute.xlu0 %956  ;;  %1858 = vrot.lane.b32.xlu1 %v7656_v39, %s10972_s2  ;;  %2914 = vmatprep.subr.bf16.mxu0 %v824_v54 }
 0x2d4   :  { %2915 = vmatpush1.bf16.msra.mxu0 %v823_v50  ;;  %2900 = vmatmul.mubr.bf16.gmra.mrb[4].mxu1 %v8126_v37 }
 0x2d5   :  { %2010 = vrot.lane.b32.xlu0 %v7658_v41, %s10973_s30  ;;  %v809_v11 = vpop.permute.xlu1 %808  ;;  %3048 = vmatprep.mubr.bf16.mxu1 %v7763_v42 }
 0x2d6   :  { %v826_v12 = vsel %vm820_vm8, %v809_v11, %v8088_v17  ;;  %v825_v57 = vsel %vm820_vm8, %v807_v59, %v809_v11 }
 0x2d7   :  { %v8142_v46 = vpop.permute.xlu0 %960  ;;  %1929 = vrot.lane.b32.xlu1 %v7652_v40, %s7215_s20  ;;  %3020 = vmatprep.subr.bf16.mxu1 %v826_v12 }
 0x2d8   :  { %3021 = vmatpush1.bf16.msra.mxu1 %v825_v57 }
 0x2d9   :  { %2081 = vrot.lane.b32.xlu0 %v7654_v43, %s10974_s22  ;;  %v880_v58 = vpop.permute.xlu1 %879 }
 0x2da   :  { %v899_v8 = vsel %vm895_vm9, %v880_v58, %v882_v33  ;;  %v898_v42 = vsel %vm895_vm9, %v7801_v47, %v880_v58 }
 0x2db   :  { %v1032_v27 = vpop.permute.xlu0 %1031  ;;  %1933 = vrot.lane.b32.xlu1 %v7656_v39, %s7215_s20  ;;  %2916 = vmatprep.subr.bf16.mxu0 %v899_v8 }
 0x2dc   :  { %2917 = vmatpush1.bf16.msra.mxu0 %v898_v42 }
 0x2dd   :  { %2085 = vrot.lane.b32.xlu0 %v7658_v41, %s10974_s22  ;;  %v884_v59 = vpop.permute.xlu1 %883 }
 0x2de   :  { %v901_v6 = vsel %vm895_vm9, %v884_v59, %v8119_v36  ;;  %v900_v9 = vsel %vm895_vm9, %v882_v33, %v884_v59 }
 0x2df   :  { %v8158_v48 = vpop.permute.xlu0 %1035  ;;  %2004 = vrot.lane.b32.xlu1 %v7652_v40, %s10973_s30  ;;  %3022 = vmatprep.subr.bf16.mxu1 %v901_v6 }
 0x2e0   :  { %3023 = vmatpush1.bf16.msra.mxu1 %v900_v9 }
 0x2e1   :  { %2156 = vrot.lane.b32.xlu0 %v7654_v43, %s7218_s19  ;;  %v955_v47 = vpop.permute.xlu1 %954 }
 0x2e2   :  { %v974_v25 = vsel %vm970_vm10, %v955_v47, %v957_v44  ;;  %v973_v38 = vsel %vm970_vm10, %v7838_v56, %v955_v47 }
 0x2e3   :  { %v1107_v54 = vpop.permute.xlu0 %1106  ;;  %2008 = vrot.lane.b32.xlu1 %v7656_v39, %s10973_s30  ;;  %2918 = vmatprep.subr.bf16.mxu0 %v974_v25 }
 0x2e4   :  { %2919 = vmatpush1.bf16.msra.mxu0 %v973_v38 }
 0x2e5   :  { %2160 = vrot.lane.b32.xlu0 %v7658_v41, %s7218_s19  ;;  %v959_v33 = vpop.permute.xlu1 %958 }
 0x2e6   :  { %v976_v50 = vsel %vm970_vm10, %v959_v33, %v8142_v46  ;;  %v975_v11 = vsel %vm970_vm10, %v957_v44, %v959_v33 }
 0x2e7   :  { %v8174_v12 = vpop.permute.xlu0 %1110  ;;  %2079 = vrot.lane.b32.xlu1 %v7652_v40, %s10974_s22  ;;  %3024 = vmatprep.subr.bf16.mxu1 %v976_v50 }
 0x2e8   :  { %3025 = vmatpush1.bf16.msra.mxu1 %v975_v11 }
 0x2e9   :  { %2231 = vrot.lane.b32.xlu0 %v7654_v43, %s7219_s17  ;;  %v1030_v56 = vpop.permute.xlu1 %1029 }
 0x2ea   :  { %v1049_v57 = vsel %vm1045_vm11, %v1030_v56, %v1032_v27  ;;  %v1048_v58 = vsel %vm1045_vm11, %v7820_v10, %v1030_v56 }
 0x2eb   :  { %v1182_v8 = vpop.permute.xlu0 %1181  ;;  %2083 = vrot.lane.b32.xlu1 %v7656_v39, %s10974_s22  ;;  %2920 = vmatprep.subr.bf16.mxu0 %v1049_v57 }
 0x2ec   :  { %2921 = vmatpush1.bf16.msra.mxu0 %v1048_v58 }
 0x2ed   :  { %2235 = vrot.lane.b32.xlu0 %v7658_v41, %s7219_s17  ;;  %v1034_v44 = vpop.permute.xlu1 %1033 }
 0x2ee   :  { %v1051_v42 = vsel %vm1045_vm11, %v1034_v44, %v8158_v48  ;;  %v1050_v59 = vsel %vm1045_vm11, %v1032_v27, %v1034_v44 }
 0x2ef   :  { %v8190_v6 = vpop.permute.xlu0 %1185  ;;  %2154 = vrot.lane.b32.xlu1 %v7652_v40, %s7218_s19  ;;  %3026 = vmatprep.subr.bf16.mxu1 %v1051_v42 }
 0x2f0   :  { %3027 = vmatpush1.bf16.msra.mxu1 %v1050_v59 }
 0x2f1   :  { %2306 = vrot.lane.b32.xlu0 %v7654_v43, %s7220_s16  ;;  %v1105_v10 = vpop.permute.xlu1 %1104 }
 0x2f2   :  { %v1124_v9 = vsel %vm1120_vm12, %v1105_v10, %v1107_v54  ;;  %v1123_v47 = vsel %vm1120_vm12, %v7860_v24, %v1105_v10 }
 0x2f3   :  { %v1257_v25 = vpop.permute.xlu0 %1256  ;;  %2158 = vrot.lane.b32.xlu1 %v7656_v39, %s7218_s19  ;;  %2922 = vmatprep.subr.bf16.mxu0 %v1124_v9 }
 0x2f4   :  { %2923 = vmatpush1.bf16.msra.mxu0 %v1123_v47 }
 0x2f5   :  { %2310 = vrot.lane.b32.xlu0 %v7658_v41, %s7220_s16  ;;  %v1109_v27 = vpop.permute.xlu1 %1108 }
 0x2f6   :  { %v1126_v38 = vsel %vm1120_vm12, %v1109_v27, %v8174_v12  ;;  %v1125_v33 = vsel %vm1120_vm12, %v1107_v54, %v1109_v27 }
 0x2f7   :  { %v8206_v50 = vpop.permute.xlu0 %1260  ;;  %2229 = vrot.lane.b32.xlu1 %v7652_v40, %s7219_s17  ;;  %3028 = vmatprep.subr.bf16.mxu1 %v1126_v38 }
 0x2f8   :  { %3029 = vmatpush1.bf16.msra.mxu1 %v1125_v33 }
 0x2f9   :  { %2381 = vrot.lane.b32.xlu0 %v7654_v43, %s10936_s29  ;;  %v1180_v24 = vpop.permute.xlu1 %1179 }
 0x2fa   :  { %v1199_v11 = vsel %vm1195_vm13, %v1180_v24, %v1182_v8  ;;  %v1198_v56 = vsel %vm1195_vm13, %v7842_v61, %v1180_v24 }
 0x2fb   :  { %v1332_v57 = vpop.permute.xlu0 %1331  ;;  %2233 = vrot.lane.b32.xlu1 %v7656_v39, %s7219_s17  ;;  %2924 = vmatprep.subr.bf16.mxu0 %v1199_v11 }
 0x2fc   :  { %2925 = vmatpush1.bf16.msra.mxu0 %v1198_v56 }
 0x2fd   :  { %2385 = vrot.lane.b32.xlu0 %v7658_v41, %s10936_s29  ;;  %v1184_v54 = vpop.permute.xlu1 %1183 }
 0x2fe   :  { %v1201_v58 = vsel %vm1195_vm13, %v1184_v54, %v8190_v6  ;;  %v1200_v44 = vsel %vm1195_vm13, %v1182_v8, %v1184_v54 }
 0x2ff   :  { %v8222_v42 = vpop.permute.xlu0 %1335  ;;  %2304 = vrot.lane.b32.xlu1 %v7652_v40, %s7220_s16  ;;  %3030 = vmatprep.subr.bf16.mxu1 %v1201_v58 }
 0x300   :  { %3031 = vmatpush1.bf16.msra.mxu1 %v1200_v44 }
 0x301   :  { %2456 = vrot.lane.b32.xlu0 %v7654_v43, %s10934_s18  ;;  %v1255_v61 = vpop.permute.xlu1 %1254 }
 0x302   :  { %v1274_v59 = vsel %vm1270_vm14, %v1255_v61, %v1257_v25  ;;  %v1273_v10 = vsel %vm1270_vm14, %v7882_v35, %v1255_v61 }
 0x303   :  { %v1407_v9 = vpop.permute.xlu0 %1406  ;;  %2308 = vrot.lane.b32.xlu1 %v7656_v39, %s7220_s16  ;;  %2926 = vmatprep.subr.bf16.mxu0 %v1274_v59 }
 0x304   :  { %2927 = vmatpush1.bf16.msra.mxu0 %v1273_v10 }
 0x305   :  { %2460 = vrot.lane.b32.xlu0 %v7658_v41, %s10934_s18  ;;  %v1259_v8 = vpop.permute.xlu1 %1258 }
 0x306   :  { %v1276_v47 = vsel %vm1270_vm14, %v1259_v8, %v8206_v50  ;;  %v1275_v43 = vsel %vm1270_vm14, %v1257_v25, %v1259_v8 }
 0x307   :  { %v8238_v27 = vpop.permute.xlu0 %1410  ;;  %2379 = vrot.lane.b32.xlu1 %v7652_v40, %s10936_s29  ;;  %3032 = vmatprep.subr.bf16.mxu1 %v1276_v47 }
 0x308   :  { %3033 = vmatpush1.bf16.msra.mxu1 %v1275_v43 }
 0x309   :  { %739 = vrot.lane.b32.xlu0 %v7662_v32, %s7199_s27  ;;  %v1330_v35 = vpop.permute.xlu1 %1329 }
 0x30a   :  { %v1349_v38 = vsel %vm1345_vm15, %v1330_v35, %v1332_v57  ;;  %v1348_v33 = vsel %vm1345_vm15, %v7864_v28, %v1330_v35 }
 0x30b   :  { %v1482_v24 = vpop.permute.xlu0 %1481  ;;  %2383 = vrot.lane.b32.xlu1 %v7656_v39, %s10936_s29  ;;  %2928 = vmatprep.subr.bf16.mxu0 %v1349_v38  ;;  %s10978_s29 = smov 102  }
 0x30c   :  { %2929 = vmatpush1.bf16.msra.mxu0 %v1348_v33 }
 0x30d   :  { %814 = vrot.lane.b32.xlu0 %v7662_v32, %s7200_s28  ;;  %v1334_v25 = vpop.permute.xlu1 %1333 }
 0x30e   :  { %v1351_v11 = vsel %vm1345_vm15, %v1334_v25, %v8222_v42  ;;  %v1350_v56 = vsel %vm1345_vm15, %v1332_v57, %v1334_v25 }
 0x30f   :  { %v8254_v54 = vpop.permute.xlu0 %1485  ;;  %2454 = vrot.lane.b32.xlu1 %v7652_v40, %s10934_s18  ;;  %3034 = vmatprep.subr.bf16.mxu1 %v1351_v11 }
 0x310   :  { %3035 = vmatpush1.bf16.msra.mxu1 %v1350_v56 }
 0x311   :  { %889 = vrot.lane.b32.xlu0 %v7662_v32, %s7201_s1  ;;  %v1405_v28 = vpop.permute.xlu1 %1404 }
 0x312   :  { %v1424_v58 = vsel %vm10941_vm0, %v1405_v28, %v1407_v9  ;;  %v1423_v44 = vsel %vm10941_vm0, %v7904_v51, %v1405_v28 }
 0x313   :  { %v1557_v61 = vpop.permute.xlu0 %1556  ;;  %2458 = vrot.lane.b32.xlu1 %v7656_v39, %s10934_s18  ;;  %2930 = vmatprep.subr.bf16.mxu0 %v1424_v58  ;;  %s10977_s18 = smov 103  }
 0x314   :  { %2931 = vmatpush1.bf16.msra.mxu0 %v1423_v44 }
 0x315   :  { %964 = vrot.lane.b32.xlu0 %v7662_v32, %s10975_s26  ;;  %v1409_v40 = vpop.permute.xlu1 %1408 }
 0x316   :  { %v1426_v57 = vsel %vm10941_vm0, %v1409_v40, %v8238_v27  ;;  %v1425_v59 = vsel %vm10941_vm0, %v1407_v9, %v1409_v40 }
 0x317   :  { %v8270_v10 = vpop.permute.xlu0 %1560  ;;  %737 = vrot.lane.b32.xlu1 %v7660_v45, %s7199_s27  ;;  %3036 = vmatprep.subr.bf16.mxu1 %v1426_v57 }
 0x318   :  { %3037 = vmatpush1.bf16.msra.mxu1 %v1425_v59 }
 0x319   :  { %1039 = vrot.lane.b32.xlu0 %v7662_v32, %s10976_s3  ;;  %v1480_v39 = vpop.permute.xlu1 %1479 }
 0x31a   :  { %v1499_v51 = vsel %vm10939_vm1, %v1480_v39, %v1482_v24  ;;  %v1498_v8 = vsel %vm10939_vm1, %v7886_v34, %v1480_v39 }
 0x31b   :  { %v1632_v47 = vpop.permute.xlu0 %1631  ;;  %741 = vrot.lane.b32.xlu1 %v7664_v49, %s7199_s27  ;;  %2932 = vmatprep.subr.bf16.mxu0 %v1499_v51  ;;  %s10987_s27 = smov 79  }
 0x31c   :  { %2933 = vmatpush1.bf16.msra.mxu0 %v1498_v8 }
 0x31d   :  { %1114 = vrot.lane.b32.xlu0 %v7662_v32, %s10977_s18  ;;  %v1484_v9 = vpop.permute.xlu1 %1483 }
 0x31e   :  { %v1501_v43 = vsel %vm10939_vm1, %v1484_v9, %v8254_v54  ;;  %v1500_v35 = vsel %vm10939_vm1, %v1482_v24, %v1484_v9 }
 0x31f   :  { %v8286_v38 = vpop.permute.xlu0 %1635  ;;  %812 = vrot.lane.b32.xlu1 %v7660_v45, %s7200_s28  ;;  %3038 = vmatprep.subr.bf16.mxu1 %v1501_v43 }
 0x320   :  { %3039 = vmatpush1.bf16.msra.mxu1 %v1500_v35 }
 0x321   :  { %1189 = vrot.lane.b32.xlu0 %v7662_v32, %s10978_s29  ;;  %v1555_v34 = vpop.permute.xlu1 %1554 }
 0x322   :  { %v1574_v33 = vsel %vm10938_vm2, %v1555_v34, %v1557_v61  ;;  %v1573_v25 = vsel %vm10938_vm2, %v7926_v13, %v1555_v34 }
 0x323   :  { %v1707_v11 = vpop.permute.xlu0 %1706  ;;  %816 = vrot.lane.b32.xlu1 %v7664_v49, %s7200_s28  ;;  %2934 = vmatprep.subr.bf16.mxu0 %v1574_v33  ;;  %s10992_s28 = smov 78  }
 0x324   :  { %2935 = vmatpush1.bf16.msra.mxu0 %v1573_v25 }
 0x325   :  { %1193 = vrot.lane.b32.xlu0 %v10942_v7, %s10978_s29  ;;  %v1559_v24 = vpop.permute.xlu1 %1558 }
 0x326   :  { %v1576_v56 = vsel %vm10938_vm2, %v1559_v24, %v8270_v10  ;;  %v1575_v28 = vsel %vm10938_vm2, %v1557_v61, %v1559_v24  ;;  %vm10979_vm2 = vcmask 621568  }
 0x327   :  { %v8302_v58 = vpop.permute.xlu0 %1710  ;;  %887 = vrot.lane.b32.xlu1 %v7660_v45, %s7201_s1  ;;  %3040 = vmatprep.subr.bf16.mxu1 %v1576_v56  ;;  %vm10980_vm1 = vmmov %vm10979_vm2 }
 0x328   :  { %3041 = vmatpush1.bf16.msra.mxu1 %v1575_v28  ;;  %vm10982_vm0 = vmmov %vm10980_vm1 }
 0x329   :  { %1264 = vrot.lane.b32.xlu0 %v7662_v32, %s7206_s23  ;;  %v1630_v13 = vpop.permute.xlu1 %1629 }
 0x32a   :  { %v1649_v44 = vsel %vm10940_vm3, %v1630_v13, %v1632_v47  ;;  %v1648_v40 = vsel %vm10940_vm3, %v7908_v1, %v1630_v13 }
 0x32b   :  { %v1782_v57 = vpop.permute.xlu0 %1781  ;;  %891 = vrot.lane.b32.xlu1 %v7664_v49, %s7201_s1  ;;  %2936 = vmatprep.subr.bf16.mxu0 %v1649_v44  ;;  %s11001_s1 = smov 76  }
 0x32c   :  { %2937 = vmatpush1.bf16.msra.mxu0 %v1648_v40 }
 0x32d   :  { %1268 = vrot.lane.b32.xlu0 %v10942_v7, %s7206_s23  ;;  %v1634_v61 = vpop.permute.xlu1 %1633 }
 0x32e   :  { %v1651_v59 = vsel %vm10940_vm3, %v1634_v61, %v8286_v38  ;;  %v1650_v39 = vsel %vm10940_vm3, %v1632_v47, %v1634_v61  ;;  %vm10981_vm3 = vmmov %vm10980_vm1 }
 0x32f   :  { %v8318_v51 = vpop.permute.xlu0 %1785  ;;  %962 = vrot.lane.b32.xlu1 %v7660_v45, %s10975_s26  ;;  %3042 = vmatprep.subr.bf16.mxu1 %v1651_v59 }
 0x330   :  { %3043 = vmatpush1.bf16.msra.mxu1 %v1650_v39 }
 0x331   :  { %1339 = vrot.lane.b32.xlu0 %v7662_v32, %s7207_s24  ;;  %v1705_v1 = vpop.permute.xlu1 %1704 }
 0x332   :  { %v1724_v8 = vsel %vm10979_vm2, %v1705_v1, %v1707_v11  ;;  %v1723_v9 = vsel %vm10980_vm1, %v7948_v21, %v1705_v1  ;;  %vm10983_vm1 = vcmask 457728  }
 0x333   :  { %v1857_v43 = vpop.permute.xlu0 %1856  ;;  %966 = vrot.lane.b32.xlu1 %v7664_v49, %s10975_s26  ;;  %2938 = vmatprep.subr.bf16.mxu0 %v1724_v8  ;;  %vm10984_vm2 = vmmov %vm10983_vm1 }
 0x334   :  { %2939 = vmatpush1.bf16.msra.mxu0 %v1723_v9 }
 0x335   :  { %1343 = vrot.lane.b32.xlu0 %v10942_v7, %s7207_s24  ;;  %v1709_v47 = vpop.permute.xlu1 %1708 }
 0x336   :  { %v1726_v35 = vsel %vm10981_vm3, %v1709_v47, %v8302_v58  ;;  %v1725_v34 = vsel %vm10982_vm0, %v1707_v11, %v1709_v47  ;;  %vm10985_vm0 = vmmov %vm10983_vm1 }
 0x337   :  { %v8334_v33 = vpop.permute.xlu0 %1860  ;;  %1037 = vrot.lane.b32.xlu1 %v7660_v45, %s10976_s3  ;;  %3044 = vmatprep.subr.bf16.mxu1 %v1726_v35  ;;  %vm10986_vm3 = vmmov %vm10985_vm0 }
 0x338   :  { %3045 = vmatpush1.bf16.msra.mxu1 %v1725_v34 }
 0x339   :  { %1414 = vrot.lane.b32.xlu0 %v7662_v32, %s7208_s25  ;;  %v1780_v21 = vpop.permute.xlu1 %1779 }
 0x33a   :  { %v1799_v25 = vsel %vm10983_vm1, %v1780_v21, %v1782_v57  ;;  %v1798_v24 = vsel %vm10984_vm2, %v7930_v16, %v1780_v21  ;;  %vm10988_vm1 = vcmask 449536  }
 0x33b   :  { %v1932_v56 = vpop.permute.xlu0 %1931  ;;  %1041 = vrot.lane.b32.xlu1 %v7664_v49, %s10976_s3  ;;  %2940 = vmatprep.subr.bf16.mxu0 %v1799_v25  ;;  %vm10989_vm2 = vmmov %vm10988_vm1 }
 0x33c   :  { %2941 = vmatpush1.bf16.msra.mxu0 %v1798_v24 }
 0x33d   :  { %1418 = vrot.lane.b32.xlu0 %v10942_v7, %s7208_s25  ;;  %v1784_v11 = vpop.permute.xlu1 %1783 }
 0x33e   :  { %v1801_v28 = vsel %vm10985_vm0, %v1784_v11, %v8318_v51  ;;  %v1800_v13 = vsel %vm10986_vm3, %v1782_v57, %v1784_v11  ;;  %vm10990_vm0 = vmmov %vm10988_vm1 }
 0x33f   :  { %v8350_v44 = vpop.permute.xlu0 %1935  ;;  %1112 = vrot.lane.b32.xlu1 %v7660_v45, %s10977_s18  ;;  %3046 = vmatprep.subr.bf16.mxu1 %v1801_v28  ;;  %vm10991_vm3 = vmmov %vm10990_vm0 }
 0x340   :  { %3047 = vmatpush1.bf16.msra.mxu1 %v1800_v13  ;;  %2943 = vmatmul.mubr.bf16.vlgmr.msra.gmra.mrb[20].mxu0 %v7969_v14 }
 0x341   :  { %1489 = vrot.lane.b32.xlu0 %v7662_v32, %s10987_s27  ;;  %v1855_v16 = vpop.permute.xlu1 %1854  ;;  %2952 = vmatprep.mubr.bf16.mxu0 %v7976_v30 }
 0x342   :  { %v1874_v40 = vsel %vm10988_vm1, %v1855_v16, %v1857_v43  ;;  %v1873_v57 = vsel %vm10989_vm2, %v7980_v20, %v1855_v16  ;;  %vm10993_vm1 = vcmask 441344  }
 0x343   :  { %v2007_v61 = vpop.permute.xlu0 %2006  ;;  %1116 = vrot.lane.b32.xlu1 %v7664_v49, %s10977_s18  ;;  %2963 = vmatprep.subr.bf16.mxu0 %v1874_v40  ;;  %vm10994_vm2 = vmmov %vm10993_vm1 }
 0x344   :  { %2964 = vmatpush1.bf16.msra.mxu0 %v1873_v57  ;;  %3049 = vmatmul.mubr.bf16.vlgmr.msra.gmra.mrb[8].mxu1 %v7969_v14 }
 0x345   :  { %1493 = vrot.lane.b32.xlu0 %v10942_v7, %s10987_s27  ;;  %v1859_v59 = vpop.permute.xlu1 %1858  ;;  %3058 = vmatprep.mubr.bf16.mxu1 %v7976_v30 }
 0x346   :  { %v1876_v39 = vsel %vm10990_vm0, %v1859_v59, %v8334_v33  ;;  %v1875_v1 = vsel %vm10991_vm3, %v1857_v43, %v1859_v59  ;;  %vm10995_vm0 = vmmov %vm10993_vm1 }
 0x347   :  { %v8370_v20 = vpop.permute.xlu0 %2010  ;;  %1187 = vrot.lane.b32.xlu1 %v7660_v45, %s10978_s29  ;;  %3069 = vmatprep.subr.bf16.mxu1 %v1876_v39  ;;  %vm10996_vm3 = vmmov %vm10995_vm0 }
 0x348   :  { %3070 = vmatpush1.bf16.msra.mxu1 %v1875_v1  ;;  %2953 = vmatmul.mubr.bf16.gmra.mrb[24].mxu0 %v7998_v31 }
 0x349   :  { %1564 = vrot.lane.b32.xlu0 %v7662_v32, %s10992_s28  ;;  %v1930_v14 = vpop.permute.xlu1 %1929  ;;  %6109 = vmatprep.mubr.msk.bf16.mxu0 %vm2797_vm6, %v8005_v26 }
 0x34a   :  { %v1949_v30 = vsel %vm10993_vm1, %v1930_v14, %v1932_v56  ;;  %v1948_v8 = vsel %vm10994_vm2, %v7952_v22, %v1930_v14  ;;  %vm10997_vm1 = vcmask 433152  }
 0x34b   :  { %v2082_v9 = vpop.permute.xlu0 %2081  ;;  %1191 = vrot.lane.b32.xlu1 %v7664_v49, %s10978_s29  ;;  %2965 = vmatprep.subr.bf16.mxu0 %v1949_v30  ;;  %vm10998_vm2 = vmmov %vm10997_vm1  ;;  %s11019_s29 = smov 28  }
 0x34c   :  { %2966 = vmatpush1.bf16.msra.mxu0 %v1948_v8  ;;  %3059 = vmatmul.mubr.bf16.gmra.mrb[12].mxu1 %v7998_v31 }
 0x34d   :  { %1568 = vrot.lane.b32.xlu0 %v10942_v7, %s10992_s28  ;;  %v1934_v43 = vpop.permute.xlu1 %1933  ;;  %6111 = vmatprep.mubr.msk.bf16.mxu1 %vm2797_vm6, %v8005_v26 }
 0x34e   :  { %v1951_v47 = vsel %vm10995_vm0, %v1934_v43, %v8350_v44  ;;  %v1950_v22 = vsel %vm10996_vm3, %v1932_v56, %v1934_v43  ;;  %vm10999_vm0 = vmmov %vm10997_vm1 }
 0x34f   :  { %v8392_v35 = vpop.permute.xlu0 %2085  ;;  %1262 = vrot.lane.b32.xlu1 %v7660_v45, %s7206_s23  ;;  %3071 = vmatprep.subr.bf16.mxu1 %v1951_v47  ;;  %vm11000_vm3 = vmmov %vm10999_vm0 }
 0x350   :  { %3072 = vmatpush1.bf16.msra.mxu1 %v1950_v22 }
 0x351   :  { %1639 = vrot.lane.b32.xlu0 %v7662_v32, %s10970_s21  ;;  %v2005_v31 = vpop.permute.xlu1 %2004 }
 0x352   :  { %v2024_v34 = vsel %vm10997_vm1, %v2005_v31, %v2007_v61  ;;  %v2023_v26 = vsel %vm10998_vm2, %v8017_v55, %v2005_v31  ;;  %vm11002_vm1 = vcmask 424960  }
 0x353   :  { %v2157_v21 = vpop.permute.xlu0 %2156  ;;  %1266 = vrot.lane.b32.xlu1 %v7664_v49, %s7206_s23  ;;  %2967 = vmatprep.subr.bf16.mxu0 %v2024_v34  ;;  %vm11003_vm2 = vmmov %vm11002_vm1  ;;  %s7224_s23 = smov 120  }
 0x354   :  { %2968 = vmatpush1.bf16.msra.mxu0 %v2023_v26 }
 0x355   :  { %1643 = vrot.lane.b32.xlu0 %v10942_v7, %s10970_s21  ;;  %v2009_v25 = vpop.permute.xlu1 %2008 }
 0x356   :  { %v2026_v24 = vsel %vm10999_vm0, %v2009_v25, %v8370_v20  ;;  %v2025_v56 = vsel %vm11000_vm3, %v2007_v61, %v2009_v25  ;;  %vm11004_vm0 = vmmov %vm11002_vm1 }
 0x357   :  { %v8408_v11 = vpop.permute.xlu0 %2160  ;;  %1337 = vrot.lane.b32.xlu1 %v7660_v45, %s7207_s24  ;;  %3073 = vmatprep.subr.bf16.mxu1 %v2026_v24  ;;  %vm11005_vm3 = vmmov %vm11004_vm0 }
 0x358   :  { %3074 = vmatpush1.bf16.msra.mxu1 %v2025_v56 }
 0x359   :  { %1714 = vrot.lane.b32.xlu0 %v7662_v32, %s11001_s1  ;;  %v2080_v55 = vpop.permute.xlu1 %2079 }
 0x35a   :  { %v2099_v28 = vsel %vm11002_vm1, %v2080_v55, %v2082_v9  ;;  %v2098_v13 = vsel %vm11003_vm2, %v7986_v4, %v2080_v55  ;;  %vm11006_vm1 = vcmask 261120  }
 0x35b   :  { %v2232_v16 = vpop.permute.xlu0 %2231  ;;  %1341 = vrot.lane.b32.xlu1 %v7664_v49, %s7207_s24  ;;  %2969 = vmatprep.subr.bf16.mxu0 %v2099_v28  ;;  %vm11007_vm2 = vmmov %vm11006_vm1  ;;  %s7225_s24 = smov [#allocation6]  }
 0x35c   :  { %2970 = vmatpush1.bf16.msra.mxu0 %v2098_v13 }
 0x35d   :  { %1718 = vrot.lane.b32.xlu0 %v10942_v7, %s11001_s1  ;;  %v2084_v40 = vpop.permute.xlu1 %2083 }
 0x35e   :  { %v2101_v57 = vsel %vm11004_vm0, %v2084_v40, %v8392_v35  ;;  %v2100_v61 = vsel %vm11005_vm3, %v2082_v9, %v2084_v40  ;;  %vm11008_vm0 = vmmov %vm11006_vm1 }
 0x35f   :  { %v8424_v59 = vpop.permute.xlu0 %2235  ;;  %1412 = vrot.lane.b32.xlu1 %v7660_v45, %s7208_s25  ;;  %3075 = vmatprep.subr.bf16.mxu1 %v2101_v57  ;;  %vm11009_vm3 = vmmov %vm11008_vm0 }
 0x360   :  { %3076 = vmatpush1.bf16.msra.mxu1 %v2100_v61 }
 0x361   :  { %1789 = vrot.lane.b32.xlu0 %v7662_v32, %s10971_s0  ;;  %v2155_v4 = vpop.permute.xlu1 %2154 }
 0x362   :  { %v2174_v39 = vsel %vm11006_vm1, %v2155_v4, %v2157_v21  ;;  %v2173_v1 = vsel %vm11007_vm2, %v8039_v19, %v2155_v4  ;;  %vm11010_vm1 = vcmask 252928  }
 0x363   :  { %v2307_v14 = vpop.permute.xlu0 %2306  ;;  %1416 = vrot.lane.b32.xlu1 %v7664_v49, %s7208_s25  ;;  %2971 = vmatprep.subr.bf16.mxu0 %v2174_v39  ;;  %vm11011_vm2 = vmmov %vm11010_vm1  ;;  %s11018_s25 = smov 29  }
 0x364   :  { %2972 = vmatpush1.bf16.msra.mxu0 %v2173_v1 }
 0x365   :  { %1793 = vrot.lane.b32.xlu0 %v10942_v7, %s10971_s0  ;;  %v2159_v30 = vpop.permute.xlu1 %2158 }
 0x366   :  { %v2176_v8 = vsel %vm11008_vm0, %v2159_v30, %v8408_v11  ;;  %v2175_v9 = vsel %vm11009_vm3, %v2157_v21, %v2159_v30  ;;  %vm11012_vm0 = vmmov %vm11010_vm1 }
 0x367   :  { %v8440_v43 = vpop.permute.xlu0 %2310  ;;  %1487 = vrot.lane.b32.xlu1 %v7660_v45, %s10987_s27  ;;  %3077 = vmatprep.subr.bf16.mxu1 %v2176_v8  ;;  %vm11013_vm3 = vmmov %vm11012_vm0 }
 0x368   :  { %3078 = vmatpush1.bf16.msra.mxu1 %v2175_v9 }
 0x369   :  { %1864 = vrot.lane.b32.xlu0 %v7662_v32, %s10972_s2  ;;  %v2230_v19 = vpop.permute.xlu1 %2229 }
 0x36a   :  { %v2249_v47 = vsel %vm11010_vm1, %v2230_v19, %v2232_v16  ;;  %v2248_v22 = vsel %vm11011_vm2, %v8022_v15, %v2230_v19  ;;  %vm11014_vm1 = vcmask 244736  }
 0x36b   :  { %v2382_v31 = vpop.permute.xlu0 %2381  ;;  %1491 = vrot.lane.b32.xlu1 %v7664_v49, %s10987_s27  ;;  %2973 = vmatprep.subr.bf16.mxu0 %v2249_v47  ;;  %vm11015_vm2 = vmmov %vm11014_vm1 }
 0x36c   :  { %2974 = vmatpush1.bf16.msra.mxu0 %v2248_v22 }
 0x36d   :  { %1868 = vrot.lane.b32.xlu0 %v10942_v7, %s10972_s2  ;;  %v2234_v34 = vpop.permute.xlu1 %2233 }
 0x36e   :  { %v2251_v26 = vsel %vm11012_vm0, %v2234_v34, %v8424_v59  ;;  %v2250_v21 = vsel %vm11013_vm3, %v2232_v16, %v2234_v34  ;;  %vm11016_vm0 = vmmov %vm11014_vm1 }
 0x36f   :  { %v8456_v25 = vpop.permute.xlu0 %2385  ;;  %1562 = vrot.lane.b32.xlu1 %v7660_v45, %s10992_s28  ;;  %3079 = vmatprep.subr.bf16.mxu1 %v2251_v26  ;;  %vm11017_vm3 = vmmov %vm11016_vm0 }
 0x370   :  { %3080 = vmatpush1.bf16.msra.mxu1 %v2250_v21 }
 0x371   :  { %1939 = vrot.lane.b32.xlu0 %v7662_v32, %s7215_s20  ;;  %v2305_v15 = vpop.permute.xlu1 %2304 }
 0x372   :  { %v2324_v24 = vsel %vm11014_vm1, %v2305_v15, %v2307_v14  ;;  %v2323_v56 = vsel %vm11015_vm2, %v8061_v29, %v2305_v15 }
 0x373   :  { %v2457_v55 = vpop.permute.xlu0 %2456  ;;  %1566 = vrot.lane.b32.xlu1 %v7664_v49, %s10992_s28  ;;  %2975 = vmatprep.subr.bf16.mxu0 %v2324_v24  ;;  %s7223_s28 = smov 8  }
 0x374   :  { %2976 = vmatpush1.bf16.msra.mxu0 %v2323_v56 }
 0x375   :  { %1943 = vrot.lane.b32.xlu0 %v10942_v7, %s7215_s20  ;;  %v2309_v28 = vpop.permute.xlu1 %2308 }
 0x376   :  { %v2326_v13 = vsel %vm11016_vm0, %v2309_v28, %v8440_v43  ;;  %v2325_v16 = vsel %vm11017_vm3, %v2307_v14, %v2309_v28  ;;  %vm11032_vm3 = vcmask 629760  }
 0x377   :  { %v8472_v40 = vpop.permute.xlu0 %2460  ;;  %1637 = vrot.lane.b32.xlu1 %v7660_v45, %s10970_s21  ;;  %3081 = vmatprep.subr.bf16.mxu1 %v2326_v13 }
 0x378   :  { %3082 = vmatpush1.bf16.msra.mxu1 %v2325_v16 }
 0x379   :  { %2014 = vrot.lane.b32.xlu0 %v7662_v32, %s10973_s30  ;;  %v2380_v29 = vpop.permute.xlu1 %2379 }
 0x37a   :  { %v2399_v57 = vsel %vm2395_vm5, %v2380_v29, %v2382_v31  ;;  %v2398_v61 = vsel %vm2395_vm5, %v8044_v3, %v2380_v29 }
 0x37b   :  { %v740_v4 = vpop.permute.xlu0 %739  ;;  %1641 = vrot.lane.b32.xlu1 %v7664_v49, %s10970_s21  ;;  %2977 = vmatprep.subr.bf16.mxu0 %v2399_v57 }
 0x37c   :  { %2978 = vmatpush1.bf16.msra.mxu0 %v2398_v61 }
 0x37d   :  { %2018 = vrot.lane.b32.xlu0 %v10942_v7, %s10973_s30  ;;  %v2384_v39 = vpop.permute.xlu1 %2383 }
 0x37e   :  { %v2401_v1 = vsel %vm2395_vm5, %v2384_v39, %v8456_v25  ;;  %v2400_v14 = vsel %vm2395_vm5, %v2382_v31, %v2384_v39 }
 0x37f   :  { %v815_v30 = vpop.permute.xlu0 %814  ;;  %1712 = vrot.lane.b32.xlu1 %v7660_v45, %s11001_s1  ;;  %3083 = vmatprep.subr.bf16.mxu1 %v2401_v1 }
 0x380   :  { %3084 = vmatpush1.bf16.msra.mxu1 %v2400_v14 }
 0x381   :  { %2089 = vrot.lane.b32.xlu0 %v7662_v32, %s10974_s22  ;;  %v2455_v3 = vpop.permute.xlu1 %2454 }
 0x382   :  { %v2474_v8 = vsel %vm2470_vm4, %v2455_v3, %v2457_v55  ;;  %v2473_v9 = vsel %vm2470_vm4, %v8083_v53, %v2455_v3 }
 0x383   :  { %v8495_v19 = vpop.permute.xlu0 %889  ;;  %1716 = vrot.lane.b32.xlu1 %v7664_v49, %s11001_s1  ;;  %2979 = vmatprep.subr.bf16.mxu0 %v2474_v8 }
 0x384   :  { %2980 = vmatpush1.bf16.msra.mxu0 %v2473_v9 }
 0x385   :  { %2093 = vrot.lane.b32.xlu0 %v10942_v7, %s10974_s22  ;;  %3122 = vmatprep.subr.bf16.mxu0 %v7660_v45  ;;  %v2459_v47 = vpop.permute.xlu1 %2458 }
 0x386   :  { %v2476_v22 = vsel %vm2470_vm4, %v2459_v47, %v8472_v40  ;;  %v2475_v31 = vsel %vm2470_vm4, %v2457_v55, %v2459_v47 }
 0x387   :  { %v8505_v34 = vpop.permute.xlu0 %964  ;;  %1787 = vrot.lane.b32.xlu1 %v7660_v45, %s10971_s0  ;;  %2996 = vmatmul.mubr.bf16.vlgmr.msra.gmra.mrb[20].mxu0 %v8095_v18 }
 0x388   :  { %3085 = vmatprep.subr.bf16.mxu1 %v2476_v22  ;;  %3123 = vmatpush1.bf16.msra.mxu0 %v7658_v41 }
 0x389   :  { %2164 = vrot.lane.b32.xlu0 %v7662_v32, %s7218_s19  ;;  %3086 = vmatpush1.bf16.msra.mxu1 %v2475_v31  ;;  %v738_v53 = vpop.permute.xlu1 %737 }
 0x38a   :  { %3228 = vmatprep.subr.bf16.mxu1 %v7664_v49  ;;  %v753_v26 = vsel %vm745_vm7, %v738_v53, %v740_v4  ;;  %v752_v21 = vsel %vm745_vm7, %v8072_v52, %v738_v53  ;;  %6110 = vmatprep.mubr.msk.bf16.mxu0 %vm2797_vm6, %v8106_v23  ;;  %v3572_v53 = vld [vmem:[%s10890_s5] sm:$0xff] }
 0x38b   :  { %v8519_v15 = vpop.permute.xlu0 %1039  ;;  %1791 = vrot.lane.b32.xlu1 %v7664_v49, %s10971_s0  ;;  %3124 = vmatprep.subr.bf16.mxu0 %v753_v26  ;;  %v3338_v26 = vlaneseq }
 0x38c   :  { %3102 = vmatmul.mubr.bf16.vlgmr.msra.gmra.mrb[8].mxu1 %v8095_v18  ;;  %3125 = vmatpush1.bf16.msra.mxu0 %v752_v21  ;;  %v7015_v18 = vld [vmem:[%s10889_s4 + $0x4] ss:$16 sps:$4 sm:$0xff]  }
 0x38d   :  { %2168 = vrot.lane.b32.xlu0 %v10942_v7, %s7218_s19  ;;  %3229 = vmatpush1.bf16.msra.mxu1 %v7662_v32  ;;  %v742_v41 = vpop.permute.xlu1 %741 }
 0x38e   :  { %v755_v52 = vsel %vm745_vm7, %v742_v41, %v7526_v60  ;;  %v754_v24 = vsel %vm745_vm7, %v740_v4, %v742_v41  ;;  %6112 = vmatprep.mubr.msk.bf16.mxu1 %vm2797_vm6, %v8106_v23  ;;  %v8622_v41 = vshrl.u32 %v3338_v26, 7  ;;  %vm11020_vm7 = vcmask 654336  }
 0x38f   :  { %v8532_v56 = vpop.permute.xlu0 %1114  ;;  %1862 = vrot.lane.b32.xlu1 %v7660_v45, %s10972_s2  ;;  %3006 = vmatmul.mubr.bf16.gmra.mrb[24].mxu0 %v8126_v37 }
 0x390   :  { %3230 = vmatprep.subr.bf16.mxu1 %v755_v52  ;;  %3154 = vmatprep.mubr.bf16.mxu0 %v7015_v18 }
 0x391   :  { %2239 = vrot.lane.b32.xlu0 %v7662_v32, %s7219_s17  ;;  %3231 = vmatpush1.bf16.msra.mxu1 %v754_v24  ;;  %v813_v60 = vpop.permute.xlu1 %812  ;;  %v3725_v24 = vld [vmem:[%s10891_s6 + $0x8] sm:$0xff] }
 0x392   :  { %v828_v23 = vsel %vm820_vm8, %v813_v60, %v815_v30  ;;  %v827_v55 = vsel %vm820_vm8, %v8088_v17, %v813_v60  ;;  %v8636_v60 = vld [vmem:[%s10892_s7] sm:$0xff] }
 0x393   :  { %v8545_v28 = vpop.permute.xlu0 %1189  ;;  %1866 = vrot.lane.b32.xlu1 %v7664_v49, %s10972_s2  ;;  %3126 = vmatprep.subr.bf16.mxu0 %v828_v23  ;;  %v3340_v23 = vsub.s32 0, %v8622_v41 }
 0x394   :  { %3112 = vmatmul.mubr.bf16.gmra.mrb[12].mxu1 %v8126_v37  ;;  %3127 = vmatpush1.bf16.msra.mxu0 %v827_v55  ;;  %v3344_v55 = vsub.s32 1, %v8622_v41 }
 0x395   :  { %2243 = vrot.lane.b32.xlu0 %v10942_v7, %s7219_s17  ;;  %v817_v13 = vpop.permute.xlu1 %816  ;;  %3260 = vmatprep.mubr.bf16.mxu1 %v7015_v18 }
 0x396   :  { %v830_v16 = vsel %vm820_vm8, %v817_v13, %v7528_v62  ;;  %v829_v29 = vsel %vm820_vm8, %v815_v30, %v817_v13  ;;  %vm11021_vm8 = vmmov %vm11020_vm7 }
 0x397   :  { %v8555_v17 = vpop.permute.xlu0 %1193  ;;  %1937 = vrot.lane.b32.xlu1 %v7660_v45, %s7215_s20  ;;  %3232 = vmatprep.subr.bf16.mxu1 %v830_v16  ;;  %v8649_v16 = vrot.slane %v8636_v60, %v3340_v23 }
 0x398   :  { %3233 = vmatpush1.bf16.msra.mxu1 %v829_v29  ;;  %v8654_v29 = vrot.slane %v8636_v60, %v3344_v55 }
 0x399   :  { %2314 = vrot.lane.b32.xlu0 %v7662_v32, %s7220_s16  ;;  %v888_v37 = vpop.permute.xlu1 %887 }
 0x39a   :  { %v903_v57 = vsel %vm895_vm9, %v888_v37, %v8495_v19  ;;  %v902_v61 = vsel %vm895_vm9, %v8119_v36, %v888_v37 }
 0x39b   :  { %v8565_v62 = vpop.permute.xlu0 %1264  ;;  %1941 = vrot.lane.b32.xlu1 %v7664_v49, %s7215_s20  ;;  %3128 = vmatprep.subr.bf16.mxu0 %v903_v57 }
 0x39c   :  { %3129 = vmatpush1.bf16.msra.mxu0 %v902_v61 }
 0x39d   :  { %2318 = vrot.lane.b32.xlu0 %v10942_v7, %s7220_s16  ;;  %v892_v4 = vpop.permute.xlu1 %891 }
 0x39e   :  { %v905_v39 = vsel %vm895_vm9, %v892_v4, %v7530_v63  ;;  %v904_v1 = vsel %vm895_vm9, %v8495_v19, %v892_v4  ;;  %vm11022_vm9 = vmmov %vm11020_vm7 }
 0x39f   :  { %v8575_v14 = vpop.permute.xlu0 %1268  ;;  %2012 = vrot.lane.b32.xlu1 %v7660_v45, %s10973_s30  ;;  %3234 = vmatprep.subr.bf16.mxu1 %v905_v39  ;;  %v8631_v18 = vpop.f32.mrb[0].mxu1 }
 0x3a0   :  { %3235 = vmatpush1.bf16.msra.mxu1 %v904_v1  ;;  %v3388_v1 = vmul.f32 %v8649_v16, %v8631_v18 }
 0x3a1   :  { %2389 = vrot.lane.b32.xlu0 %v7662_v32, %s11018_s25  ;;  %v963_v36 = vpop.permute.xlu1 %962 }
 0x3a2   :  { %v978_v30 = vsel %vm970_vm10, %v963_v36, %v8505_v34  ;;  %v977_v63 = vsel %vm970_vm10, %v8142_v46, %v963_v36 }
 0x3a3   :  { %v8585_v3 = vpop.permute.xlu0 %1339  ;;  %2016 = vrot.lane.b32.xlu1 %v7664_v49, %s10973_s30  ;;  %3130 = vmatprep.subr.bf16.mxu0 %v978_v30 }
 0x3a4   :  { %3131 = vmatpush1.bf16.msra.mxu0 %v977_v63 }
 0x3a5   :  { %2393 = vrot.lane.b32.xlu0 %v10942_v7, %s11018_s25  ;;  %v967_v8 = vpop.permute.xlu1 %966 }
 0x3a6   :  { %v980_v9 = vsel %vm970_vm10, %v967_v8, %v7532_v0  ;;  %v979_v19 = vsel %vm970_vm10, %v8505_v34, %v967_v8  ;;  %vm11023_vm10 = vmmov %vm11020_vm7 }
 0x3a7   :  { %v8595_v47 = vpop.permute.xlu0 %1343  ;;  %2087 = vrot.lane.b32.xlu1 %v7660_v45, %s10974_s22  ;;  %3236 = vmatprep.subr.bf16.mxu1 %v980_v9 }
 0x3a8   :  { %3237 = vmatpush1.bf16.msra.mxu1 %v979_v19 }
 0x3a9   :  { %2464 = vrot.lane.b32.xlu0 %v7662_v32, %s11019_s29  ;;  %v1038_v46 = vpop.permute.xlu1 %1037 }
 0x3aa   :  { %v1053_v22 = vsel %vm1045_vm11, %v1038_v46, %v8519_v15  ;;  %v1052_v0 = vsel %vm1045_vm11, %v8158_v48, %v1038_v46 }
 0x3ab   :  { %v8605_v31 = vpop.permute.xlu0 %1414  ;;  %2091 = vrot.lane.b32.xlu1 %v7664_v49, %s10974_s22  ;;  %3132 = vmatprep.subr.bf16.mxu0 %v1053_v22 }
 0x3ac   :  { %3133 = vmatpush1.bf16.msra.mxu0 %v1052_v0 }
 0x3ad   :  { %2468 = vrot.lane.b32.xlu0 %v10942_v7, %s11019_s29  ;;  %v1042_v34 = vpop.permute.xlu1 %1041 }
 0x3ae   :  { %v1054_v32 = vsel %vm1045_vm11, %v8519_v15, %v1042_v34  ;;  %v1055_v48 = vsel %vm1045_vm11, %v1042_v34, %v7536_v2  ;;  %vm11024_vm11 = vcmask 646144  }
 0x3af   :  { %v8618_v21 = vpop.permute.xlu0 %1418  ;;  %2162 = vrot.lane.b32.xlu1 %v7660_v45, %s7218_s19  ;;  %3238 = vmatprep.subr.bf16.mxu1 %v1055_v48 }
 0x3b0   :  { %3239 = vmatpush1.bf16.msra.mxu1 %v1054_v32 }
 0x3b1   :  { %3618 = vperm.xlu0 %6716, %v3572_v53   ;;  %v1113_v52 = vpop.permute.xlu1 %1112 }
 0x3b2   :  { %v1127_v15 = vsel %vm1120_vm12, %v8174_v12, %v1113_v52  ;;  %v1128_v2 = vsel %vm1120_vm12, %v1113_v52, %v8532_v56  ;;  %v8644_v12 = vpop.f32.mrb[1].mxu1 }
 0x3b3   :  { %v8640_v13 = vpop.permute.xlu0 %1489  ;;  %2166 = vrot.lane.b32.xlu1 %v7664_v49, %s7218_s19  ;;  %3134 = vmatprep.subr.bf16.mxu0 %v1128_v2  ;;  %v8656_v37 = vpop.f32.mrb[2].mxu1  ;;  %v3389_v36 = vmul.f32 %v8654_v29, %v8644_v12 }
 0x3b4   :  { %3135 = vmatpush1.bf16.msra.mxu0 %v1127_v15  ;;  %v8658_v61 = vpop.f32.mrb[3].mxu1  ;;  %v3398_v63 = vmul.f32 %v8649_v16, %v8656_v37 }
 0x3b5   :  { %3735 = vperm.xlu0 %6716, %v3725_v24   ;;  %v1117_v57 = vpop.permute.xlu1 %1116  ;;  %v8676_v8 = vadd.f32 %v3389_v36, %v3388_v1  ;;  %v3477_v9 = vmul.f32 %v3389_v36, %v3389_v36 }
 0x3b6   :  { %v1129_v4 = vsel %vm1120_vm12, %v8532_v56, %v1117_v57  ;;  %v1130_v39 = vsel %vm1120_vm12, %v1117_v57, %v7540_v5  ;;  %v3399_v56 = vmul.f32 %v8654_v29, %v8658_v61  ;;  %v3476_v5 = vmul.f32 %v3388_v1, %v3388_v1  ;;  %vm11025_vm12 = vmmov %vm11024_vm11 }
 0x3b7   :  { %v8668_v30 = vpop.permute.xlu0 %1493  ;;  %2237 = vrot.lane.b32.xlu1 %v7660_v45, %s7219_s17  ;;  %3240 = vmatprep.subr.bf16.mxu1 %v1130_v39  ;;  %v3486_v46 = vmul.f32 %v3398_v63, %v3398_v63 }
 0x3b8   :  { %3241 = vmatpush1.bf16.msra.mxu1 %v1129_v4  ;;  %v8678_v22 = vadd.f32 %v3399_v56, %v3398_v63  ;;  %v3487_v0 = vmul.f32 %v3399_v56, %v3399_v56  ;;  %v8684_v53 = vadd.f32 %v3477_v9, %v3476_v5 }
 0x3b9   :  { %v1188_v19 = vpop.permute.xlu1 %1187 }
 0x3ba   :  { %v1202_v34 = vsel %vm1195_vm13, %v8190_v6, %v1188_v19  ;;  %v1203_v32 = vsel %vm1195_vm13, %v1188_v19, %v8545_v28  ;;  %v8690_v26 = vadd.f32 %v3487_v0, %v3486_v46 }
 0x3bb   :  { %v8686_v48 = vpop.permute.xlu0 %1564  ;;  %2241 = vrot.lane.b32.xlu1 %v7664_v49, %s7219_s17  ;;  %3136 = vmatprep.subr.bf16.mxu0 %v1203_v32 }
 0x3bc   :  { %3137 = vmatpush1.bf16.msra.mxu0 %v1202_v34 }
 0x3bd   :  { %v1192_v52 = vpop.permute.xlu1 %1191 }
 0x3be   :  { %v1204_v15 = vsel %vm1195_vm13, %v8545_v28, %v1192_v52  ;;  %v1205_v6 = vsel %vm1195_vm13, %v1192_v52, %v8555_v17  ;;  %vm11026_vm13 = vmmov %vm11024_vm11 }
 0x3bf   :  { %v8696_v24 = vpop.permute.xlu0 %1568  ;;  %2312 = vrot.lane.b32.xlu1 %v7660_v45, %s7220_s16  ;;  %3242 = vmatprep.subr.bf16.mxu1 %v1205_v6 }
 0x3c0   :  { %3243 = vmatpush1.bf16.msra.mxu1 %v1204_v15 }
 0x3c1   :  { %v1263_v2 = vpop.permute.xlu1 %1262 }
 0x3c2   :  { %v1277_v57 = vsel %vm1270_vm14, %v8206_v50, %v1263_v2  ;;  %v1278_v4 = vsel %vm1270_vm14, %v1263_v2, %v8565_v62 }
 0x3c3   :  { %v8704_v39 = vpop.permute.xlu0 %1639  ;;  %2316 = vrot.lane.b32.xlu1 %v7664_v49, %s7220_s16  ;;  %3138 = vmatprep.subr.bf16.mxu0 %v1278_v4 }
 0x3c4   :  { %3139 = vmatpush1.bf16.msra.mxu0 %v1277_v57 }
 0x3c5   :  { %v1267_v28 = vpop.permute.xlu1 %1266 }
 0x3c6   :  { %v1279_v17 = vsel %vm1270_vm14, %v8565_v62, %v1267_v28  ;;  %v1280_v1 = vsel %vm1270_vm14, %v1267_v28, %v8575_v14  ;;  %v8724_v62 = vpop.f32.mrb[4].mxu1  ;;  %vm11027_vm14 = vmmov %vm11024_vm11 }
 0x3c7   :  { %v8712_v36 = vpop.permute.xlu0 %1643  ;;  %2387 = vrot.lane.b32.xlu1 %v7660_v45, %s11018_s25  ;;  %3244 = vmatprep.subr.bf16.mxu1 %v1280_v1  ;;  %v3408_v14 = vmul.f32 %v8649_v16, %v8724_v62  ;;  %v8728_v9 = vpop.f32.mrb[5].mxu1 }
 0x3c8   :  { %3245 = vmatpush1.bf16.msra.mxu1 %v1279_v17  ;;  %v8732_v46 = vpop.f32.mrb[6].mxu1 }
 0x3c9   :  { %v1338_v50 = vpop.permute.xlu1 %1337  ;;  %v3496_v32 = vmul.f32 %v3408_v14, %v3408_v14  ;;  %v3418_v52 = vmul.f32 %v8649_v16, %v8732_v46  ;;  %v8746_v57 = vpop.f32.mrb[7].mxu1 }
 0x3ca   :  { %v1352_v63 = vsel %vm1345_vm15, %v8222_v42, %v1338_v50  ;;  %v1353_v56 = vsel %vm1345_vm15, %v1338_v50, %v8585_v3  ;;  %v3409_v42 = vmul.f32 %v8654_v29, %v8728_v9 }
 0x3cb   :  { %v8720_v5 = vpop.permute.xlu0 %1714  ;;  %2391 = vrot.lane.b32.xlu1 %v7664_v49, %s11018_s25  ;;  %3140 = vmatprep.subr.bf16.mxu0 %v1353_v56  ;;  %s6048_s25 = sshll.u32 %s7225_s24, 4  ;;  %s6049_s25 = int_to_ptr.vmem [resolvable:$true] %s6048_s25 }
 0x3cc   :  { %3141 = vmatpush1.bf16.msra.mxu0 %v1352_v63  ;;  %v8744_v6 = vadd.f32 %v3409_v42, %v3408_v14  ;;  %v3497_v2 = vmul.f32 %v3409_v42, %v3409_v42  ;;  %p7132_p1 = scmp.lt.s32.totalorder %s6049_s25, %s6049_s25 }
 0x3cd   :  { %v1342_v19 = vpop.permute.xlu1 %1341 }
 0x3ce   :  { %v1354_v0 = vsel %vm1345_vm15, %v8585_v3, %v1342_v19  ;;  %v1355_v34 = vsel %vm1345_vm15, %v1342_v19, %v8595_v47  ;;  %v3506_v3 = vmul.f32 %v3418_v52, %v3418_v52  ;;  %v3419_v47 = vmul.f32 %v8654_v29, %v8746_v57  ;;  %v3573_v29 = vld [vmem:[%s10890_s5 + $0x8] sm:$0xff] }
 0x3cf   :  { %v8740_v15 = vpop.permute.xlu0 %1718  ;;  %2462 = vrot.lane.b32.xlu1 %v7660_v45, %s11019_s29  ;;  %3246 = vmatprep.subr.bf16.mxu1 %v1355_v34  ;;  %v8750_v28 = vadd.f32 %v3497_v2, %v3496_v32  ;;  %vm11028_vm15 = vcmask 637952  }
 0x3d0   :  { %3247 = vmatpush1.bf16.msra.mxu1 %v1354_v0  ;;  %v8756_v17 = vadd.f32 %v3419_v47, %v3418_v52  ;;  %v3507_v1 = vmul.f32 %v3419_v47, %v3419_v47  ;;  %vm11029_vm1 = vmmov %vm11028_vm15 }
 0x3d1   :  { %v1413_v4 = vpop.permute.xlu1 %1412  ;;  %vm11030_vm2 = vmmov %vm11029_vm1 }
 0x3d2   :  { %v1427_v16 = vsel %vm11020_vm7, %v8238_v27, %v1413_v4  ;;  %v1428_v45 = vsel %vm11021_vm8, %v1413_v4, %v8605_v31  ;;  %v8763_v50 = vadd.f32 %v3507_v1, %v3506_v3  ;;  %vm11031_vm0 = vmmov %vm11029_vm1 }
 0x3d3   :  { %2466 = vrot.lane.b32.xlu1 %v7664_v49, %s11019_s29  ;;  %3142 = vmatprep.subr.bf16.mxu0 %v1428_v45  ;;  %v1790_v63 = vpop.permute.xlu0 %1789  ;;  %v3724_v49 = vld [vmem:[%s10891_s6] sm:$0xff]  ;;  %vm11033_vm7 = vmmov %vm11032_vm3  ;;  %s7127_s29 = scalar_lea.vmem %s6049_s25, 32 }
 0x3d4   :  { %3143 = vmatpush1.bf16.msra.mxu0 %v1427_v16  ;;  %vm11034_vm8 = vmmov %vm11032_vm3  ;;  %p7128_p0 = scmp.ne.s32.totalorder %s6049_s25, %s7127_s29  ;;  %p7133_p2 = scmp.lt.s32.totalorder %s7127_s29, %s7127_s29 }
 0x3d5   :  { %v1417_v56 = vpop.permute.xlu1 %1416 }
 0x3d6   :  { %v1429_v27 = vsel %vm11022_vm9, %v8605_v31, %v1417_v56  ;;  %v1430_v14 = vsel %vm11023_vm10, %v1417_v56, %v8618_v21  ;;  %vm11035_vm9 = vmmov %vm11032_vm3  ;;  %vm11036_vm10 = vcmask 621568   ;;  %p7134_p3 = por %p7133_p2, %p7132_p1 }
 0x3d7   :  { %3623 = vperm.xlu1 %6717, %v3573_v29   ;;  %3248 = vmatprep.subr.bf16.mxu1 %v1430_v14  ;;  %v1794_v34 = vpop.permute.xlu0 %1793 }
 0x3d8   :  { %3249 = vmatpush1.bf16.msra.mxu1 %v1429_v27  ;;  %p7135_p4 = pnand %p7134_p3, %p7128_p0 }
 0x3d9   :  { %v1488_v19 = vpop.permute.xlu1 %1487 }
 0x3da   :  { %v1502_v42 = vsel %vm11024_vm11, %v8254_v54, %v1488_v19  ;;  %v1503_v0 = vsel %vm11025_vm12, %v1488_v19, %v8640_v13  ;;  %vm11037_vm11 = vmmov %vm11036_vm10 }
 0x3db   :  { %3730 = vperm.xlu1 %6717, %v3724_v49   ;;  %3144 = vmatprep.subr.bf16.mxu0 %v1503_v0  ;;  %v1865_v52 = vpop.permute.xlu0 %1864  ;;  %vm11038_vm12 = vmmov %vm11036_vm10 }
 0x3dc   :  { %3145 = vmatpush1.bf16.msra.mxu0 %v1502_v42 }
 0x3dd   :  { %v1492_v31 = vpop.permute.xlu1 %1491 }
 0x3de   :  { %v1504_v21 = vsel %vm11026_vm13, %v8640_v13, %v1492_v31  ;;  %v1505_v32 = vsel %vm11027_vm14, %v1492_v31, %v8668_v30  ;;  %vm11039_vm13 = vmmov %vm11036_vm10  ;;  %vm11040_vm14 = vcmask 457728  }
 0x3df   :  { %3250 = vmatprep.subr.bf16.mxu1 %v1505_v32  ;;  %v1869_v30 = vpop.permute.xlu0 %1868 }
 0x3e0   :  { %3251 = vmatpush1.bf16.msra.mxu1 %v1504_v21 }
 0x3e1   :  { %v1563_v2 = vpop.permute.xlu1 %1562 }
 0x3e2   :  { %v1577_v54 = vsel %vm11028_vm15, %v8270_v10, %v1563_v2  ;;  %v1578_v3 = vsel %vm11029_vm1, %v1563_v2, %v8686_v48  ;;  %vm11041_vm15 = vmmov %vm11040_vm14 }
 0x3e3   :  { %3146 = vmatprep.subr.bf16.mxu0 %v1578_v3  ;;  %v1940_v1 = vpop.permute.xlu0 %1939  ;;  %vm11042_vm1 = vmmov %vm11040_vm14 }
 0x3e4   :  { %3147 = vmatpush1.bf16.msra.mxu0 %v1577_v54 }
 0x3e5   :  { %v1567_v47 = vpop.permute.xlu1 %1566 }
 0x3e6   :  { %v1579_v4 = vsel %vm11030_vm2, %v8686_v48, %v1567_v47  ;;  %v1580_v13 = vsel %vm11031_vm0, %v1567_v47, %v8696_v24  ;;  %vm11043_vm2 = vmmov %vm11042_vm1  ;;  %vm11044_vm0 = vcmask 449536  }
 0x3e7   :  { %3252 = vmatprep.subr.bf16.mxu1 %v1580_v13  ;;  %v1944_v14 = vpop.permute.xlu0 %1943  ;;  %v7018_v13 = vld [vmem:[%s10889_s4 + $0x20] ss:$16 sps:$4 sm:$0xff]  }
 0x3e8   :  { %3253 = vmatpush1.bf16.msra.mxu1 %v1579_v4 }
 0x3e9   :  { %v1638_v16 = vpop.permute.xlu1 %1637 }
 0x3ea   :  { %v1652_v45 = vsel %vm11032_vm3, %v8286_v38, %v1638_v16  ;;  %v1653_v10 = vsel %vm11033_vm7, %v1638_v16, %v8704_v39  ;;  %vm11045_vm3 = vmmov %vm11044_vm0 }
 0x3eb   :  { %3148 = vmatprep.subr.bf16.mxu0 %v1653_v10  ;;  %vm11046_vm7 = vmmov %vm11044_vm0 }
 0x3ec   :  { %3149 = vmatpush1.bf16.msra.mxu0 %v1652_v45 }
 0x3ed   :  { %v1642_v29 = vpop.permute.xlu1 %1641 }
 0x3ee   :  { %v1654_v48 = vsel %vm11034_vm8, %v8704_v39, %v1642_v29  ;;  %v1655_v24 = vsel %vm11035_vm9, %v1642_v29, %v8712_v36  ;;  %v2015_v36 = vpop.permute.xlu0 %2014  ;;  %vm11047_vm8 = vmmov %vm11044_vm0  ;;  %vm11048_vm9 = vcmask 441344  }
 0x3ef   :  { %3254 = vmatprep.subr.bf16.mxu1 %v1655_v24 }
 0x3f0   :  { %3255 = vmatpush1.bf16.msra.mxu1 %v1654_v48 }
 0x3f1   :  { %v1713_v56 = vpop.permute.xlu1 %1712 }
 0x3f2   :  { %v1727_v27 = vsel %vm11036_vm10, %v8302_v58, %v1713_v56  ;;  %v1728_v38 = vsel %vm11037_vm11, %v1713_v56, %v8720_v5  ;;  %vm11049_vm10 = vmmov %vm11048_vm9 }
 0x3f3   :  { %3150 = vmatprep.subr.bf16.mxu0 %v1728_v38  ;;  %vm11050_vm11 = vmmov %vm11048_vm9 }
 0x3f4   :  { %3151 = vmatpush1.bf16.msra.mxu0 %v1727_v27 }
 0x3f5   :  { %v1717_v49 = vpop.permute.xlu1 %1716 }
 0x3f6   :  { %v1729_v19 = vsel %vm11038_vm12, %v8720_v5, %v1717_v49  ;;  %v1730_v39 = vsel %vm11039_vm13, %v1717_v49, %v8740_v15  ;;  %v2019_v5 = vpop.permute.xlu0 %2018  ;;  %v7016_v15 = vld [vmem:[%s10889_s4] ss:$16 sps:$4 sm:$0xff]   ;;  %vm11051_vm12 = vmmov %vm11048_vm9  ;;  %vm11052_vm13 = vcmask 433152  }
 0x3f7   :  { %3256 = vmatprep.subr.bf16.mxu1 %v1730_v39 }
 0x3f8   :  { %3257 = vmatpush1.bf16.msra.mxu1 %v1729_v19 }
 0x3f9   :  { %v1788_v42 = vpop.permute.xlu1 %1787 }
 0x3fa   :  { %v1802_v58 = vsel %vm11040_vm14, %v8318_v51, %v1788_v42  ;;  %v1803_v0 = vsel %vm11041_vm15, %v1788_v42, %v1790_v63  ;;  %v7017_v51 = vld [vmem:[%s10889_s4 + $0x24] ss:$16 sps:$4 sm:$0xff]   ;;  %vm11053_vm14 = vmmov %vm11052_vm13 }
 0x3fb   :  { %3152 = vmatprep.subr.bf16.mxu0 %v1803_v0  ;;  %vm11054_vm15 = vmmov %vm11052_vm13 }
 0x3fc   :  { %3153 = vmatpush1.bf16.msra.mxu0 %v1802_v58 }
 0x3fd   :  { %v1792_v31 = vpop.permute.xlu1 %1791 }
 0x3fe   :  { %v1804_v21 = vsel %vm11042_vm1, %v1790_v63, %v1792_v31  ;;  %v1805_v32 = vsel %vm11043_vm2, %v1792_v31, %v1794_v34  ;;  %v2090_v34 = vpop.permute.xlu0 %2089  ;;  %vm11055_vm1 = vmmov %vm11052_vm13  ;;  %vm11056_vm2 = vcmask 424960  }
 0x3ff   :  { %3258 = vmatprep.subr.bf16.mxu1 %v1805_v32  ;;  %3155 = vmatmul.mubr.bf16.vlgmr.msra.gmra.mrb[28].mxu0 %v7016_v15 }
 0x400   :  { %3259 = vmatpush1.bf16.msra.mxu1 %v1804_v21  ;;  %3164 = vmatprep.mubr.bf16.mxu0 %v7017_v51 }
 0x401   :  { %v1863_v2 = vpop.permute.xlu1 %1862 }
 0x402   :  { %v1877_v54 = vsel %vm11044_vm0, %v8334_v33, %v1863_v2  ;;  %v1878_v63 = vsel %vm11045_vm3, %v1863_v2, %v1865_v52  ;;  %v7019_v33 = vld [vmem:[%s10889_s4 + $0xc] ss:$16 sps:$4 sm:$0xff]   ;;  %vm11057_vm0 = vmmov %vm11056_vm2 }
 0x403   :  { %3175 = vmatprep.subr.bf16.mxu0 %v1878_v63  ;;  %3261 = vmatmul.mubr.bf16.vlgmr.msra.gmra.mrb[16].mxu1 %v7016_v15  ;;  %vm11058_vm3 = vmmov %vm11057_vm0 }
 0x404   :  { %3176 = vmatpush1.bf16.msra.mxu0 %v1877_v54  ;;  %3270 = vmatprep.mubr.bf16.mxu1 %v7017_v51 }
 0x405   :  { %v1867_v3 = vpop.permute.xlu1 %1866 }
 0x406   :  { %v1879_v47 = vsel %vm11046_vm7, %v1865_v52, %v1867_v3  ;;  %v1880_v4 = vsel %vm11047_vm8, %v1867_v3, %v1869_v30  ;;  %v2094_v30 = vpop.permute.xlu0 %2093  ;;  %vm11059_vm7 = vmmov %vm11057_vm0  ;;  %vm11060_vm8 = vcmask 261120  }
 0x407   :  { %3281 = vmatprep.subr.bf16.mxu1 %v1880_v4  ;;  %3165 = vmatmul.mubr.bf16.gmra.mrb[32].mxu0 %v7018_v13 }
 0x408   :  { %3282 = vmatpush1.bf16.msra.mxu1 %v1879_v47  ;;  %6113 = vmatprep.mubr.msk.bf16.mxu0 %vm2797_vm6, %v7019_v33 }
 0x409   :  { %v1938_v16 = vpop.permute.xlu1 %1937 }
 0x40a   :  { %v1952_v45 = vsel %vm11048_vm9, %v8350_v44, %v1938_v16  ;;  %v1953_v52 = vsel %vm11049_vm10, %v1938_v16, %v1940_v1  ;;  %v2165_v24 = vpop.permute.xlu0 %2164  ;;  %vm11061_vm9 = vmmov %vm11060_vm8 }
 0x40b   :  { %3177 = vmatprep.subr.bf16.mxu0 %v1953_v52  ;;  %3271 = vmatmul.mubr.bf16.gmra.mrb[20].mxu1 %v7018_v13  ;;  %vm11062_vm10 = vmmov %vm11060_vm8 }
 0x40c   :  { %3178 = vmatpush1.bf16.msra.mxu0 %v1952_v45  ;;  %6115 = vmatprep.mubr.msk.bf16.mxu1 %vm2797_vm6, %v7019_v33 }
 0x40d   :  { %v1942_v10 = vpop.permute.xlu1 %1941 }
 0x40e   :  { %v1954_v29 = vsel %vm11050_vm11, %v1940_v1, %v1942_v10  ;;  %v1955_v48 = vsel %vm11051_vm12, %v1942_v10, %v1944_v14  ;;  %v2169_v39 = vpop.permute.xlu0 %2168  ;;  %vm11063_vm11 = vmmov %vm11060_vm8  ;;  %vm11064_vm12 = vcmask 252928  }
 0x40f   :  { %3283 = vmatprep.subr.bf16.mxu1 %v1955_v48 }
 0x410   :  { %3284 = vmatpush1.bf16.msra.mxu1 %v1954_v29 }
 0x411   :  { %v2013_v56 = vpop.permute.xlu1 %2012 }
 0x412   :  { %v2027_v44 = vsel %vm11052_vm13, %v8370_v20, %v2013_v56  ;;  %v2028_v27 = vsel %vm11053_vm14, %v2013_v56, %v2015_v36  ;;  %v2240_v20 = vpop.permute.xlu0 %2239  ;;  %vm11065_vm13 = vmmov %vm11064_vm12 }
 0x413   :  { %3179 = vmatprep.subr.bf16.mxu0 %v2028_v27  ;;  %vm11066_vm14 = vmmov %vm11064_vm12 }
 0x414   :  { %3180 = vmatpush1.bf16.msra.mxu0 %v2027_v44 }
 0x415   :  { %v2017_v38 = vpop.permute.xlu1 %2016 }
 0x416   :  { %v2029_v49 = vsel %vm11054_vm15, %v2015_v36, %v2017_v38  ;;  %v2030_v19 = vsel %vm11055_vm1, %v2017_v38, %v2019_v5  ;;  %v2244_v5 = vpop.permute.xlu0 %2243  ;;  %vm11067_vm15 = vmmov %vm11064_vm12  ;;  %vm11068_vm1 = vcmask 244736  }
 0x417   :  { %3285 = vmatprep.subr.bf16.mxu1 %v2030_v19 }
 0x418   :  { %3286 = vmatpush1.bf16.msra.mxu1 %v2029_v49 }
 0x419   :  { %v2088_v1 = vpop.permute.xlu1 %2087 }
 0x41a   :  { %v2102_v14 = vsel %vm11056_vm2, %v8392_v35, %v2088_v1  ;;  %v2103_v42 = vsel %vm11057_vm0, %v2088_v1, %v2090_v34  ;;  %v2315_v2 = vpop.permute.xlu0 %2314  ;;  %vm11069_vm2 = vmmov %vm11068_vm1 }
 0x41b   :  { %3181 = vmatprep.subr.bf16.mxu0 %v2103_v42  ;;  %vm11070_vm0 = vmmov %vm11068_vm1  ;;  %v7020_v42 = vld [vmem:[%s10889_s4 + $0x8] ss:$16 sps:$4 sm:$0xff]  }
 0x41c   :  { %3182 = vmatpush1.bf16.msra.mxu0 %v2102_v14 }
 0x41d   :  { %v2092_v58 = vpop.permute.xlu1 %2091 }
 0x41e   :  { %v2104_v0 = vsel %vm11058_vm3, %v2090_v34, %v2092_v58  ;;  %v2105_v31 = vsel %vm11059_vm7, %v2092_v58, %v2094_v30  ;;  %v2319_v4 = vpop.permute.xlu0 %2318  ;;  %vm11071_vm3 = vmmov %vm11070_vm0  ;;  %v3348_v58 = vsub.s32 2, %v8622_v41 }
 0x41f   :  { %3287 = vmatprep.subr.bf16.mxu1 %v2105_v31 }
 0x420   :  { %3288 = vmatpush1.bf16.msra.mxu1 %v2104_v0  ;;  %v3352_v0 = vsub.s32 3, %v8622_v41  ;;  %v3349_v31 = vrot.slane %v8636_v60, %v3348_v58 }
 0x421   :  { %v2163_v36 = vpop.permute.xlu1 %2162 }
 0x422   :  { %v2177_v21 = vsel %vm11060_vm8, %v8408_v11, %v2163_v36  ;;  %v2178_v32 = vsel %vm11061_vm9, %v2163_v36, %v2165_v24  ;;  %v3353_v36 = vrot.slane %v8636_v60, %v3352_v0 }
 0x423   :  { %3183 = vmatprep.subr.bf16.mxu0 %v2178_v32  ;;  %v3360_v32 = vsub.s32 5, %v8622_v41 }
 0x424   :  { %3184 = vmatpush1.bf16.msra.mxu0 %v2177_v21  ;;  %v3356_v21 = vsub.s32 4, %v8622_v41 }
 0x425   :  { %v2167_v35 = vpop.permute.xlu1 %2166 }
 0x426   :  { %v2179_v15 = vsel %vm11062_vm10, %v2165_v24, %v2167_v35  ;;  %v2180_v51 = vsel %vm11063_vm11, %v2167_v35, %v2169_v39 }
 0x427   :  { %3289 = vmatprep.subr.bf16.mxu1 %v2180_v51 }
 0x428   :  { %3290 = vmatpush1.bf16.msra.mxu1 %v2179_v15 }
 0x429   :  { %v2238_v54 = vpop.permute.xlu1 %2237 }
 0x42a   :  { %v2252_v63 = vsel %vm11064_vm12, %v8424_v59, %v2238_v54  ;;  %v2253_v34 = vsel %vm11065_vm13, %v2238_v54, %v2240_v20  ;;  %v2390_v59 = vpop.permute.xlu0 %2389  ;;  %v8894_v54 = vrot.slane %v8636_v60, %v3356_v21 }
 0x42b   :  { %3185 = vmatprep.subr.bf16.mxu0 %v2253_v34 }
 0x42c   :  { %3186 = vmatpush1.bf16.msra.mxu0 %v2252_v63 }
 0x42d   :  { %v2242_v11 = vpop.permute.xlu1 %2241 }
 0x42e   :  { %v2254_v3 = vsel %vm11066_vm14, %v2240_v20, %v2242_v11  ;;  %v2255_v47 = vsel %vm11067_vm15, %v2242_v11, %v2244_v5  ;;  %v2394_v24 = vpop.permute.xlu0 %2393  ;;  %v7022_v20 = vld [vmem:[%s10889_s4 + $0x28] ss:$16 sps:$4 sm:$0xff]  }
 0x42f   :  { %3291 = vmatprep.subr.bf16.mxu1 %v2255_v47  ;;  %v3361_v47 = vrot.slane %v8636_v60, %v3360_v32 }
 0x430   :  { %3292 = vmatpush1.bf16.msra.mxu1 %v2254_v3 }
 0x431   :  { %v2313_v13 = vpop.permute.xlu1 %2312 }
 0x432   :  { %v2327_v33 = vsel %vm11068_vm1, %v8440_v43, %v2313_v13  ;;  %v2328_v16 = vsel %vm11069_vm2, %v2313_v13, %v2315_v2  ;;  %v2465_v27 = vpop.permute.xlu0 %2464 }
 0x433   :  { %3187 = vmatprep.subr.bf16.mxu0 %v2328_v16 }
 0x434   :  { %3188 = vmatpush1.bf16.msra.mxu0 %v2327_v33 }
 0x435   :  { %v2317_v45 = vpop.permute.xlu1 %2316 }
 0x436   :  { %v2329_v52 = vsel %vm11070_vm0, %v2315_v2, %v2317_v45  ;;  %v2330_v30 = vsel %vm11071_vm3, %v2317_v45, %v2319_v4 }
 0x437   :  { %3293 = vmatprep.subr.bf16.mxu1 %v2330_v30 }
 0x438   :  { %3294 = vmatpush1.bf16.msra.mxu1 %v2329_v52 }
 0x439   :  { %v2388_v10 = vpop.permute.xlu1 %2387 }
 0x43a   :  { %v2402_v29 = vsel %vm2395_vm5, %v8456_v25, %v2388_v10  ;;  %v2403_v48 = vsel %vm2395_vm5, %v2388_v10, %v2390_v59  ;;  %v2469_v25 = vpop.permute.xlu0 %2468 }
 0x43b   :  { %3189 = vmatprep.subr.bf16.mxu0 %v2403_v48 }
 0x43c   :  { %3190 = vmatpush1.bf16.msra.mxu0 %v2402_v29 }
 0x43d   :  { %v2392_v43 = vpop.permute.xlu1 %2391 }
 0x43e   :  { %v2404_v56 = vsel %vm2395_vm5, %v2390_v59, %v2392_v43  ;;  %v2405_v44 = vsel %vm2395_vm5, %v2392_v43, %v2394_v24 }
 0x43f   :  { %3295 = vmatprep.subr.bf16.mxu1 %v2405_v44 }
 0x440   :  { %3296 = vmatpush1.bf16.msra.mxu1 %v2404_v56 }
 0x441   :  { %v2463_v38 = vpop.permute.xlu1 %2462 }
 0x442   :  { %v2477_v49 = vsel %vm2470_vm4, %v8472_v40, %v2463_v38  ;;  %v2478_v19 = vsel %vm2470_vm4, %v2463_v38, %v2465_v27  ;;  %v7021_v40 = vld [vmem:[%s10889_s4 + $0x2c] ss:$16 sps:$4 sm:$0xff]  }
 0x443   :  { %3191 = vmatprep.subr.bf16.mxu0 %v2478_v19 }
 0x444   :  { %3192 = vmatpush1.bf16.msra.mxu0 %v2477_v49 }
 0x445   :  { %v2467_v39 = vpop.permute.xlu1 %2466 }
 0x446   :  { %v2479_v1 = vsel %vm2470_vm4, %v2465_v27, %v2467_v39  ;;  %v2480_v14 = vsel %vm2470_vm4, %v2467_v39, %v2469_v25 }
 0x447   :  { %3208 = vmatmul.mubr.bf16.vlgmr.msra.gmra.mrb[28].mxu0 %v7020_v42  ;;  %3297 = vmatprep.subr.bf16.mxu1 %v2480_v14 }
 0x448   :  { %3298 = vmatpush1.bf16.msra.mxu1 %v2479_v1  ;;  %6114 = vmatprep.mubr.msk.bf16.mxu0 %vm2797_vm6, %v7021_v40 }
 0x44b   :  { %3314 = vmatmul.mubr.bf16.vlgmr.msra.gmra.mrb[16].mxu1 %v7020_v42 }
 0x44c   :  { %6116 = vmatprep.mubr.msk.bf16.mxu1 %vm2797_vm6, %v7021_v40 }
 0x44f   :  { %3218 = vmatmul.mubr.bf16.gmra.mrb[32].mxu0 %v7022_v20 }
 0x453   :  { %3324 = vmatmul.mubr.bf16.gmra.mrb[20].mxu1 %v7022_v20 }
 0x45a   :  { %v8885_v5 = vpop.f32.mrb[20].mxu0 }
 0x45b   :  { %v3390_v35 = vmul.f32 %v3349_v31, %v8885_v5  ;;  %v8888_v15 = vpop.f32.mrb[21].mxu0 }
 0x45c   :  { %v3391_v51 = vmul.f32 %v3353_v36, %v8888_v15  ;;  %v8891_v2 = vpop.f32.mrb[22].mxu0 }
 0x45d   :  { %v3429_v63 = vadd.f32 %v8676_v8, %v3390_v35  ;;  %v3478_v34 = vmul.f32 %v3390_v35, %v3390_v35  ;;  %v3400_v11 = vmul.f32 %v3349_v31, %v8891_v2  ;;  %v8898_v3 = vpop.f32.mrb[23].mxu0 }
 0x45e   :  { %v3479_v4 = vmul.f32 %v3391_v51, %v3391_v51  ;;  %v3401_v13 = vmul.f32 %v3353_v36, %v8898_v3 }
 0x45f   :  { %v3517_v33 = vadd.f32 %v8684_v53, %v3478_v34  ;;  %v3430_v16 = vadd.f32 %v3429_v63, %v3391_v51  ;;  %v3440_v59 = vadd.f32 %v8678_v22, %v3400_v11  ;;  %v3488_v45 = vmul.f32 %v3400_v11, %v3400_v11  ;;  %v8904_v52 = vpop.f32.mrb[8].mxu1 }
 0x460   :  { %v3489_v30 = vmul.f32 %v3401_v13, %v3401_v13  ;;  %v3392_v8 = vmul.f32 %v8894_v54, %v8904_v52  ;;  %v8908_v10 = vpop.f32.mrb[9].mxu1 }
 0x461   :  { %v3518_v29 = vadd.f32 %v3517_v33, %v3479_v4  ;;  %v3528_v48 = vadd.f32 %v8690_v26, %v3488_v45  ;;  %v3441_v24 = vadd.f32 %v3440_v59, %v3401_v13  ;;  %v3393_v43 = vmul.f32 %v3361_v47, %v8908_v10  ;;  %v8912_v56 = vpop.f32.mrb[10].mxu1 }
 0x462   :  { %v3431_v53 = vadd.f32 %v3430_v16, %v3392_v8  ;;  %v3480_v44 = vmul.f32 %v3392_v8, %v3392_v8  ;;  %v3402_v22 = vmul.f32 %v8894_v54, %v8912_v56  ;;  %v8916_v27 = vpop.f32.mrb[24].mxu0  ;;  %v8918_v38 = vpop.f32.mrb[11].mxu1 }
 0x463   :  { %11072 = vst [vmem:[#allocation11_spill] sm:$0xff] %v8916_v27  ;;  %v3529_v49 = vadd.f32 %v3528_v48, %v3489_v30  ;;  %v3481_v19 = vmul.f32 %v3393_v43, %v3393_v43  ;;  %v3410_v25 = vmul.f32 %v3349_v31, %v8916_v27  ;;  %v3403_v26 = vmul.f32 %v3361_v47, %v8918_v38  ;;  %v8922_v39 = vpop.f32.mrb[25].mxu0 }
 0x464   :  { %v3519_v1 = vadd.f32 %v3518_v29, %v3480_v44  ;;  %v8924_v14 = vadd.f32 %v3431_v53, %v3393_v43  ;;  %v3442_v42 = vadd.f32 %v3441_v24, %v3402_v22  ;;  %v3490_v40 = vmul.f32 %v3402_v22, %v3402_v22  ;;  %v8926_v20 = vpop.f32.mrb[26].mxu0 }
 0x465   :  { %11073 = vst [vmem:[#allocation12_spill] sm:$0xff] %v8926_v20  ;;  %v3451_v58 = vadd.f32 %v8744_v6, %v3410_v25  ;;  %v3498_v0 = vmul.f32 %v3410_v25, %v3410_v25  ;;  %v3491_v21 = vmul.f32 %v3403_v26, %v3403_v26  ;;  %v3411_v32 = vmul.f32 %v3353_v36, %v8922_v39  ;;  %v8930_v35 = vpop.f32.mrb[27].mxu0 }
 0x466   :  { %v8932_v51 = vadd.f32 %v3519_v1, %v3481_v19  ;;  %v3530_v63 = vadd.f32 %v3529_v49, %v3490_v40  ;;  %v8934_v34 = vadd.f32 %v3442_v42, %v3403_v26  ;;  %v3420_v11 = vmul.f32 %v3349_v31, %v8926_v20 }
 0x467   :  { %v3539_v4 = vadd.f32 %v8750_v28, %v3498_v0  ;;  %v3452_v13 = vadd.f32 %v3451_v58, %v3411_v32  ;;  %v3499_v33 = vmul.f32 %v3411_v32, %v3411_v32  ;;  %v3421_v16 = vmul.f32 %v3353_v36, %v8930_v35  ;;  %v8939_v6 = vpop.f32.mrb[12].mxu1 }
 0x468   :  { %v8941_v59 = vadd.f32 %v3530_v63, %v3491_v21  ;;  %v3462_v45 = vadd.f32 %v8756_v17, %v3420_v11  ;;  %v3508_v30 = vmul.f32 %v3420_v11, %v3420_v11  ;;  %v3412_v8 = vmul.f32 %v8894_v54, %v8939_v6  ;;  %v8946_v29 = vpop.f32.mrb[13].mxu1  ;;  %v6764_v63 = vld [vmem:[%s10893_s8 + $0x8] ss:$16 sps:$4 sm:$0xff]   ;;  %v6766_v11 = vld [vmem:[%s10893_s8 + $0xc] ss:$16 sps:$4 sm:$0xff]  }
 0x469   :  { %v3540_v48 = vadd.f32 %v3539_v4, %v3499_v33  ;;  %v3509_v31 = vmul.f32 %v3421_v16, %v3421_v16  ;;  %v3413_v28 = vmul.f32 %v3361_v47, %v8946_v29  ;;  %v8949_v24 = vpop.f32.mrb[14].mxu1  ;;  %v6769_v4 = vld [vmem:[%s10893_s8 + $0x24] ss:$16 sps:$4 sm:$0xff]   ;;  %5037 = vmatprep.subr.bf16.mxu1 %v6766_v11  ;;  %v6767_v33 = vld [vmem:[%s10893_s8 + $0x20] ss:$16 sps:$4 sm:$0xff]  }
 0x46a   :  { %v3550_v36 = vadd.f32 %v8763_v50, %v3508_v30  ;;  %v3463_v43 = vadd.f32 %v3462_v45, %v3421_v16  ;;  %v3453_v53 = vadd.f32 %v3452_v13, %v3412_v8  ;;  %v3500_v44 = vmul.f32 %v3412_v8, %v3412_v8  ;;  %v8952_v22 = vpop.f32.mrb[15].mxu1  ;;  %v6772_v13 = vld [vmem:[%s10893_s8 + $0x2c] ss:$16 sps:$4 sm:$0xff]   ;;  %5038 = vmatpush1.bf16.msra.mxu1 %v6764_v63  ;;  %v6770_v16 = vld [vmem:[%s10893_s8 + $0x28] ss:$16 sps:$4 sm:$0xff]  }
 0x46b   :  { %v3501_v17 = vmul.f32 %v3413_v28, %v3413_v28  ;;  %v3422_v49 = vmul.f32 %v8894_v54, %v8949_v24  ;;  %v3423_v19 = vmul.f32 %v3361_v47, %v8952_v22  ;;  %v6761_v54 = vld [vmem:[%s10893_s8] ss:$16 sps:$4 sm:$0xff]   ;;  %v6763_v47 = vld [vmem:[%s10893_s8 + $0x4] ss:$16 sps:$4 sm:$0xff]   ;;  %5039 = vmatprep.subr.bf16.mxu1 %v6772_v13  ;;  %v6778_v30 = vld [vmem:[%s10893_s8 + $0x4c] ss:$16 sps:$4 sm:$0xff]  }
 0x46c   :  { %v3551_v25 = vadd.f32 %v3550_v36, %v3509_v31  ;;  %v3541_v26 = vadd.f32 %v3540_v48, %v3500_v44  ;;  %v8957_v1 = vadd.f32 %v3453_v53, %v3413_v28  ;;  %4878 = vmatprep.subr.bf16.mxu0 %v6763_v47  ;;  %v6775_v45 = vld [vmem:[%s10893_s8 + $0x44] ss:$16 sps:$4 sm:$0xff]   ;;  %v6773_v8 = vld [vmem:[%s10893_s8 + $0x40] ss:$16 sps:$4 sm:$0xff]   ;;  %v6776_v48 = vld [vmem:[%s10893_s8 + $0x48] ss:$16 sps:$4 sm:$0xff]  }
 0x46d   :  { %v3464_v42 = vadd.f32 %v3463_v43, %v3422_v49  ;;  %v3510_v40 = vmul.f32 %v3422_v49, %v3422_v49  ;;  %v3511_v58 = vmul.f32 %v3423_v19, %v3423_v19  ;;  %4879 = vmatpush1.bf16.msra.mxu0 %v6761_v54  ;;  %v6781_v31 = vld [vmem:[%s10893_s8 + $0x64] ss:$16 sps:$4 sm:$0xff]   ;;  %v6784_v28 = vld [vmem:[%s10893_s8 + $0x6c] ss:$16 sps:$4 sm:$0xff]   ;;  %v6779_v36 = vld [vmem:[%s10893_s8 + $0x60] ss:$16 sps:$4 sm:$0xff]  }
 0x46e   :  { %v8959_v0 = vadd.f32 %v3541_v26, %v3501_v17  ;;  %4880 = vmatprep.subr.bf16.mxu0 %v6769_v4  ;;  %5040 = vmatpush1.bf16.msra.mxu1 %v6770_v16  ;;  %v6782_v43 = vld [vmem:[%s10893_s8 + $0x68] ss:$16 sps:$4 sm:$0xff]   ;;  %v6787_v53 = vld [vmem:[%s10893_s8 + $0x84] ss:$16 sps:$4 sm:$0xff]   ;;  %v6790_v44 = vld [vmem:[%s10893_s8 + $0x8c] ss:$16 sps:$4 sm:$0xff]  }
 0x46f   :  { %v3552_v50 = vadd.f32 %v3551_v25, %v3510_v40  ;;  %v8961_v21 = vadd.f32 %v3464_v42, %v3423_v19  ;;  %5041 = vmatprep.subr.bf16.mxu1 %v6778_v30  ;;  %v6785_v17 = vld [vmem:[%s10893_s8 + $0x80] ss:$16 sps:$4 sm:$0xff]   ;;  %v6788_v49 = vld [vmem:[%s10893_s8 + $0x88] ss:$16 sps:$4 sm:$0xff]   ;;  %v6793_v19 = vld [vmem:[%s10893_s8 + $0xa4] ss:$16 sps:$4 sm:$0xff]  }
 0x470   :  { %v6796_v25 = vld [vmem:[%s10893_s8 + $0xac] ss:$16 sps:$4 sm:$0xff]   ;;  %v6791_v26 = vld [vmem:[%s10893_s8 + $0xa0] ss:$16 sps:$4 sm:$0xff]   ;;  %v6794_v42 = vld [vmem:[%s10893_s8 + $0xa8] ss:$16 sps:$4 sm:$0xff]  }
 0x471   :  { %v8963_v32 = vadd.f32 %v3552_v50, %v3511_v58  ;;  %4881 = vmatpush1.bf16.msra.mxu0 %v6767_v33  ;;  %v6799_v40 = vld [vmem:[%s10893_s8 + $0xc4] ss:$16 sps:$4 sm:$0xff]   ;;  %v6802_v58 = vld [vmem:[%s10893_s8 + $0xcc] ss:$16 sps:$4 sm:$0xff]   ;;  %v6797_v50 = vld [vmem:[%s10893_s8 + $0xc0] ss:$16 sps:$4 sm:$0xff]  }
 0x472   :  { %4882 = vmatprep.subr.bf16.mxu0 %v6775_v45  ;;  %5042 = vmatpush1.bf16.msra.mxu1 %v6776_v48  ;;  %v6800_v54 = vld [vmem:[%s10893_s8 + $0xc8] ss:$16 sps:$4 sm:$0xff]   ;;  %v6805_v47 = vld [vmem:[%s10893_s8 + $0xe4] ss:$16 sps:$4 sm:$0xff]   ;;  %v3364_v63 = vsub.s32 6, %v8622_v41  ;;  %v3368_v4 = vsub.s32 7, %v8622_v41 }
 0x473   :  { %5043 = vmatprep.subr.bf16.mxu1 %v6784_v28  ;;  %v6808_v11 = vld [vmem:[%s10893_s8 + $0xec] ss:$16 sps:$4 sm:$0xff]   ;;  %v6803_v13 = vld [vmem:[%s10893_s8 + $0xe0] ss:$16 sps:$4 sm:$0xff]   ;;  %v6806_v33 = vld [vmem:[%s10893_s8 + $0xe8] ss:$16 sps:$4 sm:$0xff]  }
 0x474   :  { %v3365_v16 = vrot.slane %v8636_v60, %v3364_v63  ;;  %v3369_v45 = vrot.slane %v8636_v60, %v3368_v4  ;;  %v3335_v30 = vld [vmem:[%s10892_s7 + $0x8] sm:$0x3] }
 0x475   :  { %4883 = vmatpush1.bf16.msra.mxu0 %v6773_v8  ;;  %v9082_v60 = vrot.slane %v3335_v30, %v3344_v55 }
 0x476   :  { %4884 = vmatprep.subr.bf16.mxu0 %v6781_v31  ;;  %5044 = vmatpush1.bf16.msra.mxu1 %v6782_v43  ;;  %v9078_v43 = vrot.slane %v3335_v30, %v3340_v23 }
 0x477   :  { %5045 = vmatprep.subr.bf16.mxu1 %v6790_v44 }
 0x479   :  { %4885 = vmatpush1.bf16.msra.mxu0 %v6779_v36 }
 0x47a   :  { %4886 = vmatprep.subr.bf16.mxu0 %v6787_v53  ;;  %5046 = vmatpush1.bf16.msra.mxu1 %v6788_v49 }
 0x47b   :  { %5047 = vmatprep.subr.bf16.mxu1 %v6796_v25 }
 0x47d   :  { %4887 = vmatpush1.bf16.msra.mxu0 %v6785_v17 }
 0x47e   :  { %4888 = vmatprep.subr.bf16.mxu0 %v6793_v19  ;;  %5048 = vmatpush1.bf16.msra.mxu1 %v6794_v42 }
 0x47f   :  { %5049 = vmatprep.subr.bf16.mxu1 %v6802_v58 }
 0x481   :  { %4889 = vmatpush1.bf16.msra.mxu0 %v6791_v26 }
 0x482   :  { %4890 = vmatprep.subr.bf16.mxu0 %v6799_v40  ;;  %5050 = vmatpush1.bf16.msra.mxu1 %v6800_v54 }
 0x483   :  { %5051 = vmatprep.subr.bf16.mxu1 %v6808_v11 }
 0x485   :  { %4891 = vmatpush1.bf16.msra.mxu0 %v6797_v50 }
 0x486   :  { %4892 = vmatprep.subr.bf16.mxu0 %v6805_v47  ;;  %5052 = vmatpush1.bf16.msra.mxu1 %v6806_v33 }
 0x489   :  { %4893 = vmatpush1.bf16.msra.mxu0 %v6803_v13 }
 0x51a   :  { %v9068_v8 = vpop.f32.mrb[28].mxu0 }
 0x51b   :  { %v3394_v48 = vmul.f32 %v3365_v16, %v9068_v8  ;;  %v9071_v31 = vpop.f32.mrb[29].mxu0 }
 0x51c   :  { %v3395_v28 = vmul.f32 %v3369_v45, %v9071_v31  ;;  %v9074_v36 = vpop.f32.mrb[30].mxu0 }
 0x51d   :  { %v3433_v53 = vadd.f32 %v8924_v14, %v3394_v48  ;;  %v3482_v44 = vmul.f32 %v3394_v48, %v3394_v48  ;;  %v3404_v17 = vmul.f32 %v3365_v16, %v9074_v36  ;;  %v9086_v49 = vpop.f32.mrb[31].mxu0 }
 0x51e   :  { %v3483_v19 = vmul.f32 %v3395_v28, %v3395_v28  ;;  %v3405_v25 = vmul.f32 %v3369_v45, %v9086_v49  ;;  %v9089_v26 = vpop.f32.mrb[16].mxu1 }
 0x51f   :  { %v3521_v42 = vadd.f32 %v8932_v51, %v3482_v44  ;;  %v3434_v23 = vadd.f32 %v3433_v53, %v3395_v28  ;;  %v3444_v40 = vadd.f32 %v8934_v34, %v3404_v17  ;;  %v3492_v41 = vmul.f32 %v3404_v17, %v3404_v17  ;;  %v9093_v55 = vpop.f32.mrb[17].mxu1 }
 0x520   :  { %v3493_v58 = vmul.f32 %v3405_v25, %v3405_v25  ;;  %v3396_v14 = vmul.f32 %v9078_v43, %v9089_v26  ;;  %v3397_v50 = vmul.f32 %v9082_v60, %v9093_v55  ;;  %v9099_v54 = vpop.f32.mrb[18].mxu1 }
 0x521   :  { %v3522_v47 = vadd.f32 %v3521_v42, %v3483_v19  ;;  %v3532_v63 = vadd.f32 %v8941_v59, %v3492_v41  ;;  %v3445_v11 = vadd.f32 %v3444_v40, %v3405_v25  ;;  %v3406_v51 = vmul.f32 %v9078_v43, %v9099_v54  ;;  %v9104_v34 = vpop.f32.mrb[19].mxu1 }
 0x522   :  { %v3435_v4 = vadd.f32 %v3434_v23, %v3396_v14  ;;  %v3484_v13 = vmul.f32 %v3396_v14, %v3396_v14  ;;  %v3485_v33 = vmul.f32 %v3397_v50, %v3397_v50  ;;  %v3407_v30 = vmul.f32 %v9082_v60, %v9104_v34  ;;  %v9108_v48 = vpop.f32.mrb[32].mxu0 }
 0x523   :  { %v3533_v28 = vadd.f32 %v3532_v63, %v3493_v58  ;;  %v3446_v53 = vadd.f32 %v3445_v11, %v3406_v51  ;;  %v3494_v44 = vmul.f32 %v3406_v51, %v3406_v51  ;;  %v3414_v17 = vmul.f32 %v3365_v16, %v9108_v48  ;;  %v9111_v59 = vpop.f32.mrb[33].mxu0 }
 0x524   :  { %v3523_v19 = vadd.f32 %v3522_v47, %v3484_v13  ;;  %v3436_v25 = vadd.f32 %v3435_v4, %v3397_v50  ;;  %v3495_v42 = vmul.f32 %v3407_v30, %v3407_v30  ;;  %v3415_v40 = vmul.f32 %v3369_v45, %v9111_v59  ;;  %v9114_v23 = vpop.f32.mrb[34].mxu0 }
 0x525   :  { %v3534_v41 = vadd.f32 %v3533_v28, %v3494_v44  ;;  %v3447_v14 = vadd.f32 %v3446_v53, %v3407_v30  ;;  %v3455_v7 = vadd.f32 %v8957_v1, %v3414_v17  ;;  %v3502_v20 = vmul.f32 %v3414_v17, %v3414_v17  ;;  %v9117_v27 = vpop.f32.mrb[35].mxu0 }
 0x526   :  { %v3503_v58 = vmul.f32 %v3415_v40, %v3415_v40  ;;  %v3424_v63 = vmul.f32 %v3365_v16, %v9114_v23  ;;  %v3425_v11 = vmul.f32 %v3369_v45, %v9117_v27  ;;  %3437 = vadd.xlane.f32.xlu1 %v3436_v25  ;;  %v9121_v47 = vpop.f32.mrb[20].mxu1  ;;  %v3524_v50 = vadd.f32 %v3523_v19, %v3485_v33 }
 0x527   :  { %v3543_v51 = vadd.f32 %v8959_v0, %v3502_v20  ;;  %v3456_v4 = vadd.f32 %v3455_v7, %v3415_v40  ;;  %v3416_v13 = vmul.f32 %v9078_v43, %v9121_v47  ;;  %3448 = vadd.xlane.f32.xlu0 %v3447_v14  ;;  %v9126_v1 = vpop.f32.mrb[21].mxu1  ;;  %v3535_v30 = vadd.f32 %v3534_v41, %v3495_v42 }
 0x528   :  { %v3466_v28 = vadd.f32 %v8961_v21, %v3424_v63  ;;  %v3512_v53 = vmul.f32 %v3424_v63, %v3424_v63  ;;  %v3513_v16 = vmul.f32 %v3425_v11, %v3425_v11  ;;  %v3417_v45 = vmul.f32 %v9082_v60, %v9126_v1  ;;  %v9131_v44 = vpop.f32.mrb[22].mxu1 }
 0x529   :  { %v3544_v33 = vadd.f32 %v3543_v51, %v3503_v58  ;;  %v3457_v17 = vadd.f32 %v3456_v4, %v3416_v13  ;;  %v3504_v20 = vmul.f32 %v3416_v13, %v3416_v13  ;;  %v3426_v7 = vmul.f32 %v9078_v43, %v9131_v44  ;;  %v9135_v0 = vpop.f32.mrb[23].mxu1 }
 0x52a   :  { %v3554_v19 = vadd.f32 %v8963_v32, %v3512_v53  ;;  %v3467_v25 = vadd.f32 %v3466_v28, %v3425_v11  ;;  %v3505_v42 = vmul.f32 %v3417_v45, %v3417_v45  ;;  %3536 = vadd.xlane.f32.xlu1 %v3535_v30  ;;  %v3427_v21 = vmul.f32 %v9082_v60, %v9135_v0  ;;  %v6809_v11 = vld [vmem:[%s10893_s8 + $0x100] ss:$16 sps:$4 sm:$0xff]   ;;  %v6811_v60 = vld [vmem:[%s10893_s8 + $0x104] ss:$16 sps:$4 sm:$0xff]   ;;  %v6814_v30 = vld [vmem:[%s10893_s8 + $0x10c] ss:$16 sps:$4 sm:$0xff]  }
 0x52b   :  { %v3545_v40 = vadd.f32 %v3544_v33, %v3504_v20  ;;  %v9140_v41 = vadd.f32 %v3457_v17, %v3417_v45  ;;  %v3514_v14 = vmul.f32 %v3426_v7, %v3426_v7  ;;  %3525 = vadd.xlane.f32.xlu0 %v3524_v50  ;;  %v6812_v50 = vld [vmem:[%s10893_s8 + $0x108] ss:$16 sps:$4 sm:$0xff]   ;;  %4894 = vmatprep.subr.bf16.mxu0 %v6811_v60  ;;  %v6817_v53 = vld [vmem:[%s10893_s8 + $0x124] ss:$16 sps:$4 sm:$0xff]   ;;  %v6815_v45 = vld [vmem:[%s10893_s8 + $0x120] ss:$16 sps:$4 sm:$0xff]  }
 0x52c   :  { %v3555_v58 = vadd.f32 %v3554_v19, %v3513_v16  ;;  %v3468_v63 = vadd.f32 %v3467_v25, %v3426_v7  ;;  %v3515_v51 = vmul.f32 %v3427_v21, %v3427_v21  ;;  %5053 = vmatprep.subr.bf16.mxu1 %v6814_v30  ;;  %4895 = vmatpush1.bf16.msra.mxu0 %v6809_v11  ;;  %v3575_v28 = vld [vmem:[%s10890_s5 + $0x18] sm:$0xff]  ;;  %v6823_v17 = vld [vmem:[%s10893_s8 + $0x144] ss:$16 sps:$4 sm:$0xff]   ;;  %v6821_v7 = vld [vmem:[%s10893_s8 + $0x140] ss:$16 sps:$4 sm:$0xff]  }
 0x52d   :  { %v9142_v4 = vadd.f32 %v3545_v40, %v3505_v42  ;;  %5054 = vmatpush1.bf16.msra.mxu1 %v6812_v50  ;;  %v6820_v16 = vld [vmem:[%s10893_s8 + $0x12c] ss:$16 sps:$4 sm:$0xff]   ;;  %v6818_v33 = vld [vmem:[%s10893_s8 + $0x128] ss:$16 sps:$4 sm:$0xff]   ;;  %4896 = vmatprep.subr.bf16.mxu0 %v6817_v53  ;;  %v3574_v25 = vld [vmem:[%s10890_s5 + $0x10] sm:$0xff] }
 0x52e   :  { %v3556_v43 = vadd.f32 %v3555_v58, %v3514_v14  ;;  %v9144_v13 = vadd.f32 %v3468_v63, %v3427_v21  ;;  %5055 = vmatprep.subr.bf16.mxu1 %v6820_v16  ;;  %v6826_v20 = vld [vmem:[%s10893_s8 + $0x14c] ss:$16 sps:$4 sm:$0xff]   ;;  %v6824_v19 = vld [vmem:[%s10893_s8 + $0x148] ss:$16 sps:$4 sm:$0xff]   ;;  %v6827_v42 = vld [vmem:[%s10893_s8 + $0x160] ss:$16 sps:$4 sm:$0xff]  }
 0x52f   :  { %v6829_v21 = vld [vmem:[%s10893_s8 + $0x164] ss:$16 sps:$4 sm:$0xff]   ;;  %v6830_v40 = vld [vmem:[%s10893_s8 + $0x168] ss:$16 sps:$4 sm:$0xff]   ;;  %v6832_v14 = vld [vmem:[%s10893_s8 + $0x16c] ss:$16 sps:$4 sm:$0xff]  }
 0x530   :  { %v9146_v32 = vadd.f32 %v3556_v43, %v3515_v51  ;;  %4897 = vmatpush1.bf16.msra.mxu0 %v6815_v45  ;;  %v6835_v58 = vld [vmem:[%s10893_s8 + $0x184] ss:$16 sps:$4 sm:$0xff]   ;;  %v6838_v63 = vld [vmem:[%s10893_s8 + $0x18c] ss:$16 sps:$4 sm:$0xff]   ;;  %v6833_v51 = vld [vmem:[%s10893_s8 + $0x180] ss:$16 sps:$4 sm:$0xff]  }
 0x531   :  { %5056 = vmatpush1.bf16.msra.mxu1 %v6818_v33  ;;  %4898 = vmatprep.subr.bf16.mxu0 %v6823_v17  ;;  %v6836_v43 = vld [vmem:[%s10893_s8 + $0x188] ss:$16 sps:$4 sm:$0xff]   ;;  %v6841_v11 = vld [vmem:[%s10893_s8 + $0x1a4] ss:$16 sps:$4 sm:$0xff]   ;;  %v6844_v60 = vld [vmem:[%s10893_s8 + $0x1ac] ss:$16 sps:$4 sm:$0xff]  }
 0x532   :  { %5057 = vmatprep.subr.bf16.mxu1 %v6826_v20  ;;  %v6839_v50 = vld [vmem:[%s10893_s8 + $0x1a0] ss:$16 sps:$4 sm:$0xff]   ;;  %v6842_v30 = vld [vmem:[%s10893_s8 + $0x1a8] ss:$16 sps:$4 sm:$0xff]   ;;  %v6850_v53 = vld [vmem:[%s10893_s8 + $0x1cc] ss:$16 sps:$4 sm:$0xff]  }
 0x533   :  { %v6845_v16 = vld [vmem:[%s10893_s8 + $0x1c0] ss:$16 sps:$4 sm:$0xff]   ;;  %v6848_v45 = vld [vmem:[%s10893_s8 + $0x1c8] ss:$16 sps:$4 sm:$0xff]   ;;  %v6853_v33 = vld [vmem:[%s10893_s8 + $0x1e4] ss:$16 sps:$4 sm:$0xff]  }
 0x534   :  { %4899 = vmatpush1.bf16.msra.mxu0 %v6821_v7  ;;  %v6856_v17 = vld [vmem:[%s10893_s8 + $0x1ec] ss:$16 sps:$4 sm:$0xff]   ;;  %v6851_v20 = vld [vmem:[%s10893_s8 + $0x1e0] ss:$16 sps:$4 sm:$0xff]   ;;  %v6854_v7 = vld [vmem:[%s10893_s8 + $0x1e8] ss:$16 sps:$4 sm:$0xff]  }
 0x535   :  { %5058 = vmatpush1.bf16.msra.mxu1 %v6824_v19  ;;  %4900 = vmatprep.subr.bf16.mxu0 %v6829_v21  ;;  %v6859_v19 = vld [vmem:[%s10893_s8 + $0x204] ss:$16 sps:$4 sm:$0xff]   ;;  %v3727_v21 = vld [vmem:[%s10891_s6 + $0x18] sm:$0xff] }
 0x536   :  { %5059 = vmatprep.subr.bf16.mxu1 %v6832_v14  ;;  %v3619_v14 = vpop.permute.xlu0 %3618 }
 0x538   :  { %4901 = vmatpush1.bf16.msra.mxu0 %v6827_v42  ;;  %v3726_v42 = vld [vmem:[%s10891_s6 + $0x10] sm:$0xff] }
 0x539   :  { %5060 = vmatpush1.bf16.msra.mxu1 %v6830_v40  ;;  %4902 = vmatprep.subr.bf16.mxu0 %v6835_v58  ;;  %v3624_v40 = vpop.permute.xlu1 %3623 }
 0x53a   :  { %5061 = vmatprep.subr.bf16.mxu1 %v6838_v63 }
 0x53b   :  { %3633 = vperm.xlu1 %6717, %v3575_v28   ;;  %v6847_v28 = vld [vmem:[%s10893_s8 + $0x1c4] ss:$16 sps:$4 sm:$0xff]  }
 0x53c   :  { %4903 = vmatpush1.bf16.msra.mxu0 %v6833_v51 }
 0x53d   :  { %5062 = vmatpush1.bf16.msra.mxu1 %v6836_v43  ;;  %4904 = vmatprep.subr.bf16.mxu0 %v6841_v11  ;;  %v9266_v58 = vpop.permute.xlu1 %3730 }
 0x53e   :  { %5063 = vmatprep.subr.bf16.mxu1 %v6844_v60 }
 0x540   :  { %4905 = vmatpush1.bf16.msra.mxu0 %v6839_v50 }
 0x541   :  { %3628 = vperm.xlu0 %6716, %v3574_v25   ;;  %5064 = vmatpush1.bf16.msra.mxu1 %v6842_v30  ;;  %v6862_v25 = vld [vmem:[%s10893_s8 + $0x20c] ss:$16 sps:$4 sm:$0xff]  }
 0x542   :  { %4906 = vmatprep.subr.bf16.mxu0 %v6847_v28  ;;  %5065 = vmatprep.subr.bf16.mxu1 %v6850_v53 }
 0x544   :  { %4907 = vmatpush1.bf16.msra.mxu0 %v6845_v16 }
 0x545   :  { %5066 = vmatpush1.bf16.msra.mxu1 %v6848_v45  ;;  %4908 = vmatprep.subr.bf16.mxu0 %v6853_v33 }
 0x546   :  { %5067 = vmatprep.subr.bf16.mxu1 %v6856_v17 }
 0x548   :  { %4909 = vmatpush1.bf16.msra.mxu0 %v6851_v20 }
 0x549   :  { %5068 = vmatpush1.bf16.msra.mxu1 %v6854_v7  ;;  %4931 = vmatprep.subr.bf16.mxu0 %v6859_v19 }
 0x54a   :  { %5090 = vmatprep.subr.bf16.mxu1 %v6862_v25 }
 0x55f   :  { %3459 = vadd.xlane.f32.xlu1 %v9140_v41  ;;  %v9268_v41 = vpop.permute.xlu0 %3735 }
 0x560   :  { %3470 = vadd.xlane.f32.xlu0 %v9144_v13 }
 0x563   :  { %3558 = vadd.xlane.f32.xlu1 %v9146_v32 }
 0x564   :  { %3547 = vadd.xlane.f32.xlu0 %v9142_v4 }
 0x574   :  { %3740 = vperm.xlu1 %6717, %v3726_v42  }
 0x57a   :  { %3745 = vperm.xlu0 %6716, %v3727_v21  }
 0x5b3   :  { %v3438_v13 = vpop.xlane.xlu1 %3437 }
 0x5b4   :  { %v3472_v32 = vmul.f32 0.00125, %v3438_v13  ;;  %v3449_v63 = vpop.xlane.xlu0 %3448 }
 0x5b5   :  { %v3473_v4 = vmul.f32 0.00125, %v3449_v63 }
 0x5b6   :  { %v3579_v51 = vsub.f32 %v8888_v15, %v3472_v32  ;;  %v3564_v28 = vmul.f32 %v3472_v32, %v3472_v32  ;;  %v3578_v45 = vsub.f32 %v8885_v5, %v3472_v32  ;;  %v3580_v17 = vsub.f32 %v8904_v52, %v3472_v32 }
 0x5b7   :  { %v3537_v43 = vpop.xlane.xlu1 %3536  ;;  %v3565_v11 = vmul.f32 %v3473_v4, %v3473_v4  ;;  %v3589_v60 = vsub.f32 %v8898_v3, %v3473_v4  ;;  %v3588_v33 = vsub.f32 %v8891_v2, %v3473_v4  ;;  %v3590_v7 = vsub.f32 %v8912_v56, %v3473_v4 }
 0x5b8   :  { %v3561_v50 = vmul.f32 0.00125, %v3537_v43  ;;  %v3526_v30 = vpop.xlane.xlu0 %3525  ;;  %v3582_v15 = vsub.f32 %v9068_v8, %v3472_v32  ;;  %v3592_v19 = vsub.f32 %v9074_v36, %v3473_v4  ;;  %v3581_v42 = vsub.f32 %v8908_v10, %v3472_v32 }
 0x5b9   :  { %v3560_v53 = vmul.f32 0.00125, %v3526_v30  ;;  %v3591_v21 = vsub.f32 %v8918_v38, %v3473_v4  ;;  %v3584_v5 = vsub.f32 %v9089_v26, %v3472_v32  ;;  %v3594_v2 = vsub.f32 %v9099_v54, %v3473_v4 }
 0x5ba   :  { %v3569_v16 = vsub.f32 %v3561_v50, %v3565_v11  ;;  %v3583_v52 = vsub.f32 %v9071_v31, %v3472_v32  ;;  %v3593_v56 = vsub.f32 %v9086_v49, %v3473_v4  ;;  %v3577_v8 = vsub.f32 %v8644_v12, %v3472_v32 }
 0x5bb   :  { %v3568_v20 = vsub.f32 %v3560_v53, %v3564_v28  ;;  %v3587_v36 = vsub.f32 %v8658_v61, %v3473_v4  ;;  %v3576_v13 = vsub.f32 %v8631_v18, %v3472_v32  ;;  %v3585_v63 = vsub.f32 %v9093_v55, %v3472_v32 }
 0x5bc   :  { %v3677_v25 = vadd.f32 1e-05, %v3569_v16  ;;  %v3586_v10 = vsub.f32 %v8656_v37, %v3473_v4  ;;  %v3595_v38 = vsub.f32 %v9104_v34, %v3473_v4  ;;  %v3637_v26 = vmul.f32 %v3619_v14, %v3577_v8 }
 0x5bd   :  { %v3676_v3 = vadd.f32 1e-05, %v3568_v20  ;;  %v3647_v43 = vmul.f32 %v3624_v40, %v3587_v36  ;;  %v3636_v11 = vmul.f32 %v3619_v14, %v3576_v13  ;;  %v3639_v54 = vmul.f32 %v3619_v14, %v3579_v51 }
 0x5be   :  { %7005 = vrsqrt.f32 %v3677_v25  ;;  %v3646_v50 = vmul.f32 %v3624_v40, %v3586_v10  ;;  %v3649_v31 = vmul.f32 %v3624_v40, %v3589_v60  ;;  %v3638_v30 = vmul.f32 %v3619_v14, %v3578_v45 }
 0x5bf   :  { %7007 = vrsqrt.f32 %v3676_v3  ;;  %v3648_v49 = vmul.f32 %v3624_v40, %v3588_v33  ;;  %v3640_v28 = vmul.f32 %v3619_v14, %v3580_v17  ;;  %v3650_v12 = vmul.f32 %v3624_v40, %v3590_v7 }
 0x5c0   :  { %v9290_v53 = vmul.f32 %v3619_v14, %v3582_v15  ;;  %v9292_v61 = vmul.f32 %v3624_v40, %v3592_v19  ;;  %v9294_v18 = vmul.f32 %v3619_v14, %v3581_v42  ;;  %v9296_v55 = vmul.f32 %v3624_v40, %v3591_v21 }
 0x5c1   :  { %v9298_v37 = vmul.f32 %v3619_v14, %v3584_v5  ;;  %v9300_v34 = vmul.f32 %v3624_v40, %v3594_v2  ;;  %v9304_v4 = vmul.f32 %v3619_v14, %v3583_v52  ;;  %v9306_v51 = vmul.f32 %v3624_v40, %v3593_v56 }
 0x5c2   :  { %v9308_v60 = vmul.f32 %v3619_v14, %v3585_v63  ;;  %v9310_v16 = vmul.f32 %v3624_v40, %v3595_v38 }
 0x5c8   :  { %v9302_v32 = vpop.eup %7005 }
 0x5c9   :  { %v9312_v45 = vpop.eup %7007  ;;  %v3695_v33 = vmul.f32 %v9302_v32, %v3647_v43  ;;  %v3694_v17 = vmul.f32 %v9302_v32, %v3646_v50  ;;  %v3697_v20 = vmul.f32 %v9302_v32, %v3649_v31  ;;  %v3696_v7 = vmul.f32 %v9302_v32, %v3648_v49  ;;  %v6860_v49 = vld [vmem:[%s10893_s8 + $0x208] ss:$16 sps:$4 sm:$0xff]  }
 0x5ca   :  { %v3685_v15 = vmul.f32 %v9312_v45, %v3637_v26  ;;  %v3684_v19 = vmul.f32 %v9312_v45, %v3636_v11  ;;  %v3687_v25 = vmul.f32 %v9312_v45, %v3639_v54  ;;  %v3686_v14 = vmul.f32 %v9312_v45, %v3638_v30  ;;  %v6857_v11 = vld [vmem:[%s10893_s8 + $0x200] ss:$16 sps:$4 sm:$0xff]  }
 0x5cb   :  { %v3759_v40 = vadd.f32 %v9268_v41, %v3695_v33  ;;  %v3758_v3 = vadd.f32 %v9268_v41, %v3694_v17  ;;  %v3761_v42 = vadd.f32 %v9268_v41, %v3697_v20  ;;  %v3760_v21 = vadd.f32 %v9268_v41, %v3696_v7  ;;  %v6865_v33 = vld [vmem:[%s10893_s8 + $0x224] ss:$16 sps:$4 sm:$0xff]   ;;  %v6868_v17 = vld [vmem:[%s10893_s8 + $0x22c] ss:$16 sps:$4 sm:$0xff]  }
 0x5cc   :  { %v3749_v5 = vadd.f32 %v9266_v58, %v3685_v15  ;;  %v3748_v2 = vadd.f32 %v9266_v58, %v3684_v19  ;;  %v3751_v52 = vadd.f32 %v9266_v58, %v3687_v25  ;;  %v3750_v56 = vadd.f32 %v9266_v58, %v3686_v14 }
 0x5cd   :  { %vm3799_vm4 = vcmp.gt.f32.partialorder %v3759_v40, 0.0  ;;  %v3839_v8 = vmul.f32 0.01, %v3759_v40  ;;  %vm3798_vm5 = vcmp.gt.f32.partialorder %v3758_v3, 0.0  ;;  %v3838_v36 = vmul.f32 0.01, %v3758_v3 }
 0x5ce   :  { %vm3789_vm7 = vcmp.gt.f32.partialorder %v3749_v5, 0.0  ;;  %v3829_v13 = vmul.f32 0.01, %v3749_v5  ;;  %vm3788_vm8 = vcmp.gt.f32.partialorder %v3748_v2, 0.0  ;;  %v3828_v63 = vmul.f32 0.01, %v3748_v2 }
 0x5cf   :  { %v3879_v10 = vsel %vm3799_vm4, %v3759_v40, %v3839_v8  ;;  %v3878_v38 = vsel %vm3798_vm5, %v3758_v3, %v3838_v36  ;;  %vm3791_vm9 = vcmp.gt.f32.partialorder %v3751_v52, 0.0  ;;  %vm3801_vm10 = vcmp.gt.f32.partialorder %v3761_v42, 0.0 }
 0x5d0   :  { %v3869_v26 = vsel %vm3789_vm7, %v3749_v5, %v3829_v13  ;;  %v3868_v43 = vsel %vm3788_vm8, %v3748_v2, %v3828_v63  ;;  %v3831_v54 = vmul.f32 0.01, %v3751_v52  ;;  %v3841_v50 = vmul.f32 0.01, %v3761_v42 }
 0x5d1   :  { %v3909_v31 = vpack.c.bf16 %v3879_v10, %v3869_v26  ;;  %v3908_v30 = vpack.c.bf16 %v3878_v38, %v3868_v43  ;;  %vm3790_vm11 = vcmp.gt.f32.partialorder %v3750_v56, 0.0  ;;  %vm3800_vm12 = vcmp.gt.f32.partialorder %v3760_v21, 0.0 }
 0x5d2   :  { %v3871_v20 = vsel %vm3791_vm9, %v3751_v52, %v3831_v54  ;;  %v3881_v7 = vsel %vm3801_vm10, %v3761_v42, %v3841_v50  ;;  %v3830_v15 = vmul.f32 0.01, %v3750_v56  ;;  %v3840_v19 = vmul.f32 0.01, %v3760_v21  ;;  %v6863_v42 = vld [vmem:[%s10893_s8 + $0x220] ss:$16 sps:$4 sm:$0xff]  }
 0x5d3   :  { %4910 = vmatprep.mubr.bf16.mxu0 %v3909_v31  ;;  %5069 = vmatprep.mubr.bf16.mxu1 %v3909_v31  ;;  %v9342_v25 = vpack.c.bf16 %v3881_v7, %v3871_v20  ;;  %v3688_v14 = vmul.f32 %v9312_v45, %v3640_v28  ;;  %v3698_v40 = vmul.f32 %v9302_v32, %v3650_v12  ;;  %v6866_v52 = vld [vmem:[%s10893_s8 + $0x228] ss:$16 sps:$4 sm:$0xff]  }
 0x5d4   :  { %4911 = vmatmul.mubr.bf16.vlgmr.msra.gmra.mrb[36].mxu0 %v3908_v30  ;;  %5070 = vmatmul.mubr.bf16.vlgmr.msra.gmra.mrb[24].mxu1 %v3908_v30  ;;  %v3870_v3 = vsel %vm3790_vm11, %v3750_v56, %v3830_v15  ;;  %v3880_v5 = vsel %vm3800_vm12, %v3760_v21, %v3840_v19  ;;  %v3690_v2 = vmul.f32 %v9312_v45, %v9290_v53  ;;  %v6871_v53 = vld [vmem:[%s10893_s8 + $0x244] ss:$16 sps:$4 sm:$0xff]   ;;  %v6874_v21 = vld [vmem:[%s10893_s8 + $0x24c] ss:$16 sps:$4 sm:$0xff]   ;;  %v6875_v15 = vld [vmem:[%s10893_s8 + $0x260] ss:$16 sps:$4 sm:$0xff]  }
 0x5d5   :  { %4932 = vmatpush1.bf16.msra.mxu0 %v6857_v11  ;;  %5091 = vmatpush1.bf16.msra.mxu1 %v6860_v49  ;;  %v9354_v28 = vpack.c.bf16 %v3880_v5, %v3870_v3  ;;  %v3752_v12 = vadd.f32 %v9266_v58, %v3688_v14  ;;  %v3762_v56 = vadd.f32 %v9268_v41, %v3698_v40  ;;  %v6877_v11 = vld [vmem:[%s10893_s8 + $0x264] ss:$16 sps:$4 sm:$0xff]  }
 0x5d6   :  { %4933 = vmatprep.subr.bf16.mxu0 %v6865_v33  ;;  %5092 = vmatprep.subr.bf16.mxu1 %v6868_v17  ;;  %v3700_v8 = vmul.f32 %v9302_v32, %v9292_v61  ;;  %v3754_v36 = vadd.f32 %v9266_v58, %v3690_v2  ;;  %v3689_v13 = vmul.f32 %v9312_v45, %v9294_v18  ;;  %v6869_v61 = vld [vmem:[%s10893_s8 + $0x240] ss:$16 sps:$4 sm:$0xff]   ;;  %v6872_v18 = vld [vmem:[%s10893_s8 + $0x248] ss:$16 sps:$4 sm:$0xff]  }
 0x5d7   :  { %vm3792_vm13 = vcmp.gt.f32.partialorder %v3752_v12, 0.0  ;;  %vm3802_vm14 = vcmp.gt.f32.partialorder %v3762_v56, 0.0  ;;  %v3832_v63 = vmul.f32 0.01, %v3752_v12  ;;  %v3842_v10 = vmul.f32 0.01, %v3762_v56 }
 0x5d8   :  { %v3764_v38 = vadd.f32 %v9268_v41, %v3700_v8  ;;  %vm3794_vm15 = vcmp.gt.f32.partialorder %v3754_v36, 0.0  ;;  %v3834_v26 = vmul.f32 0.01, %v3754_v36  ;;  %v3699_v43 = vmul.f32 %v9302_v32, %v9296_v55  ;;  %v9385_v55 = vld [vmem:[%s10893_s8 + $0x26c] ss:$16 sps:$4 sm:$0xff]  }
 0x5d9   :  { %4934 = vmatpush1.bf16.msra.mxu0 %v6863_v42  ;;  %5093 = vmatpush1.bf16.msra.mxu1 %v6866_v52  ;;  %v3872_v54 = vsel %vm3792_vm13, %v3752_v12, %v3832_v63  ;;  %v3882_v50 = vsel %vm3802_vm14, %v3762_v56, %v3842_v10  ;;  %v3753_v31 = vadd.f32 %v9266_v58, %v3689_v13  ;;  %v6881_v56 = vld [vmem:[%s10893_s8 + $0x280] ss:$16 sps:$4 sm:$0xff]   ;;  %v9432_v13 = vld [vmem:[%s10893_s8 + $0x288] ss:$16 sps:$4 sm:$0xff]  }
 0x5da   :  { %4935 = vmatprep.subr.bf16.mxu0 %v6871_v53  ;;  %5094 = vmatprep.subr.bf16.mxu1 %v6874_v21  ;;  %v9387_v30 = vpack.c.bf16 %v3882_v50, %v3872_v54  ;;  %vm3804_vm1 = vcmp.gt.f32.partialorder %v3764_v38, 0.0  ;;  %v3844_v49 = vmul.f32 0.01, %v3764_v38  ;;  %v3874_v33 = vsel %vm3794_vm15, %v3754_v36, %v3834_v26  ;;  %v6887_v54 = vld [vmem:[%s10893_s8 + $0x2a0] ss:$16 sps:$4 sm:$0xff]  }
 0x5db   :  { %v3763_v17 = vadd.f32 %v9268_v41, %v3699_v43  ;;  %vm3793_vm2 = vcmp.gt.f32.partialorder %v3753_v31, 0.0  ;;  %v3833_v20 = vmul.f32 0.01, %v3753_v31  ;;  %v3692_v7 = vmul.f32 %v9312_v45, %v9298_v37  ;;  %v9405_v37 = vld [vmem:[%s10893_s8 + $0x268] ss:$16 sps:$4 sm:$0xff]  }
 0x5dc   :  { %v3884_v19 = vsel %vm3804_vm1, %v3764_v38, %v3844_v49  ;;  %v3702_v14 = vmul.f32 %v9302_v32, %v9300_v34  ;;  %v3691_v40 = vmul.f32 %v9312_v45, %v9304_v4  ;;  %v3701_v3 = vmul.f32 %v9302_v32, %v9306_v51  ;;  %v6883_v34 = vld [vmem:[%s10893_s8 + $0x284] ss:$16 sps:$4 sm:$0xff]   ;;  %v9416_v4 = vld [vmem:[%s10893_s8 + $0x28c] ss:$16 sps:$4 sm:$0xff]  }
 0x5dd   :  { %4936 = vmatpush1.bf16.msra.mxu0 %v6869_v61  ;;  %5095 = vmatpush1.bf16.msra.mxu1 %v6872_v18  ;;  %v9407_v5 = vpack.c.bf16 %v3884_v19, %v3874_v33  ;;  %vm3803_vm0 = vcmp.gt.f32.partialorder %v3763_v17, 0.0  ;;  %v3843_v2 = vmul.f32 0.01, %v3763_v17  ;;  %v3873_v42 = vsel %vm3793_vm2, %v3753_v31, %v3833_v20  ;;  %v9469_v20 = vld [vmem:[%s10893_s8 + $0x2cc] ss:$16 sps:$4 sm:$0xff]   ;;  %v9471_v19 = vpop.permute.xlu1 %3633 }
 0x5de   :  { %4937 = vmatprep.subr.bf16.mxu0 %v6877_v11  ;;  %5096 = vmatprep.subr.bf16.mxu1 %v9385_v55  ;;  %v3756_v51 = vadd.f32 %v9266_v58, %v3692_v7  ;;  %v3766_v52 = vadd.f32 %v9268_v41, %v3702_v14  ;;  %v3755_v12 = vadd.f32 %v9266_v58, %v3691_v40  ;;  %v9475_v40 = vpop.permute.xlu0 %3628 }
 0x5df   :  { %v3883_v53 = vsel %vm3803_vm0, %v3763_v17, %v3843_v2  ;;  %v3765_v21 = vadd.f32 %v9268_v41, %v3701_v3  ;;  %v3693_v8 = vmul.f32 %v9312_v45, %v9308_v60  ;;  %v3703_v36 = vmul.f32 %v9302_v32, %v9310_v16  ;;  %v6889_v32 = vld [vmem:[%s10893_s8 + $0x2a4] ss:$16 sps:$4 sm:$0xff]   ;;  %v9444_v16 = vld [vmem:[%s10893_s8 + $0x2ac] ss:$16 sps:$4 sm:$0xff]   ;;  %v6893_v3 = vld [vmem:[%s10893_s8 + $0x2c0] ss:$16 sps:$4 sm:$0xff]  }
 0x5e0   :  { %v9434_v63 = vpack.c.bf16 %v3883_v53, %v3873_v42  ;;  %vm3796_vm3 = vcmp.gt.f32.partialorder %v3756_v51, 0.0  ;;  %vm3806_vm4 = vcmp.gt.f32.partialorder %v3766_v52, 0.0  ;;  %v3836_v10 = vmul.f32 0.01, %v3756_v51  ;;  %v6895_v17 = vld [vmem:[%s10893_s8 + $0x2c4] ss:$16 sps:$4 sm:$0xff]  }
 0x5e1   :  { %4938 = vmatpush1.bf16.msra.mxu0 %v6875_v15  ;;  %5097 = vmatpush1.bf16.msra.mxu1 %v9405_v37  ;;  %v3846_v38 = vmul.f32 0.01, %v3766_v52  ;;  %vm3795_vm5 = vcmp.gt.f32.partialorder %v3755_v12, 0.0  ;;  %vm3805_vm7 = vcmp.gt.f32.partialorder %v3765_v21, 0.0  ;;  %v3835_v60 = vmul.f32 0.01, %v3755_v12 }
 0x5e2   :  { %4939 = vmatprep.subr.bf16.mxu0 %v6883_v34  ;;  %5098 = vmatprep.subr.bf16.mxu1 %v9416_v4  ;;  %v3876_v45 = vsel %vm3796_vm3, %v3756_v51, %v3836_v10  ;;  %v3845_v26 = vmul.f32 0.01, %v3765_v21  ;;  %v3757_v43 = vadd.f32 %v9266_v58, %v3693_v8  ;;  %v3767_v61 = vadd.f32 %v9268_v41, %v3703_v36  ;;  %v9458_v58 = vld [vmem:[%s10893_s8 + $0x2a8] ss:$16 sps:$4 sm:$0xff]   ;;  %v6901_v42 = vld [vmem:[%s10893_s8 + $0x2e4] ss:$16 sps:$4 sm:$0xff]  }
 0x5e3   :  { %v3886_v18 = vsel %vm3806_vm4, %v3766_v52, %v3846_v38  ;;  %v3875_v11 = vsel %vm3795_vm5, %v3755_v12, %v3835_v60  ;;  %v9484_v2 = vld [vmem:[%s10893_s8 + $0x2c8] ss:$16 sps:$4 sm:$0xff]   ;;  %v9493_v34 = vld [vmem:[%s10893_s8 + $0x2ec] ss:$16 sps:$4 sm:$0xff]   ;;  %v6899_v12 = vld [vmem:[%s10893_s8 + $0x2e0] ss:$16 sps:$4 sm:$0xff]  }
 0x5e4   :  { %v9452_v50 = vpack.c.bf16 %v3886_v18, %v3876_v45  ;;  %v3885_v31 = vsel %vm3805_vm7, %v3765_v21, %v3845_v26  ;;  %vm3797_vm8 = vcmp.gt.f32.partialorder %v3757_v43, 0.0  ;;  %vm3807_vm9 = vcmp.gt.f32.partialorder %v3767_v61, 0.0  ;;  %v6907_v53 = vld [vmem:[%s10893_s8 + $0x304] ss:$16 sps:$4 sm:$0xff]   ;;  %v9515_v36 = vld [vmem:[%s10893_s8 + $0x30c] ss:$16 sps:$4 sm:$0xff]  }
 0x5e5   :  { %4940 = vmatpush1.bf16.msra.mxu0 %v6881_v56  ;;  %5099 = vmatpush1.bf16.msra.mxu1 %v9432_v13  ;;  %v9460_v41 = vpack.c.bf16 %v3885_v31, %v3875_v11  ;;  %v3837_v49 = vmul.f32 0.01, %v3757_v43  ;;  %v3847_v33 = vmul.f32 0.01, %v3767_v61  ;;  %v9502_v56 = vld [vmem:[%s10893_s8 + $0x2e8] ss:$16 sps:$4 sm:$0xff]  }
 0x5e6   :  { %4941 = vmatprep.subr.bf16.mxu0 %v6889_v32  ;;  %5100 = vmatprep.subr.bf16.mxu1 %v9444_v16  ;;  %v6905_v45 = vld [vmem:[%s10893_s8 + $0x300] ss:$16 sps:$4 sm:$0xff]   ;;  %v9526_v26 = vld [vmem:[%s10893_s8 + $0x308] ss:$16 sps:$4 sm:$0xff]   ;;  %v6913_v18 = vld [vmem:[%s10893_s8 + $0x324] ss:$16 sps:$4 sm:$0xff]  }
 0x5e7   :  { %11074 = vst [vmem:[#allocation13_spill] sm:$0xff] %v9460_v41  ;;  %v3877_v7 = vsel %vm3797_vm8, %v3757_v43, %v3837_v49  ;;  %v3887_v15 = vsel %vm3807_vm9, %v3767_v61, %v3847_v33  ;;  %v9537_v11 = vld [vmem:[%s10893_s8 + $0x32c] ss:$16 sps:$4 sm:$0xff]  }
 0x5e8   :  { %v9473_v14 = vpack.c.bf16 %v3887_v15, %v3877_v7 }
 0x5e9   :  { %4942 = vmatpush1.bf16.msra.mxu0 %v6887_v54  ;;  %5101 = vmatpush1.bf16.msra.mxu1 %v9458_v58 }
 0x5ea   :  { %11075 = vst [vmem:[#allocation14_spill] sm:$0xff] %v9473_v14  ;;  %4943 = vmatprep.subr.bf16.mxu0 %v6895_v17  ;;  %5102 = vmatprep.subr.bf16.mxu1 %v9469_v20 }
 0x5ec   :  { %v3460_v51 = vpop.xlane.xlu1 %3459 }
 0x5ed   :  { %4944 = vmatpush1.bf16.msra.mxu0 %v6893_v3  ;;  %5103 = vmatpush1.bf16.msra.mxu1 %v9484_v2  ;;  %v3471_v52 = vpop.xlane.xlu0 %3470  ;;  %v9507_v21 = vmul.f32 0.00125, %v3460_v51  ;;  %v6911_v3 = vld [vmem:[%s10893_s8 + $0x320] ss:$16 sps:$4 sm:$0xff]   ;;  %v9568_v51 = vld [vmem:[%s10893_s8 + $0x34c] ss:$16 sps:$4 sm:$0xff]  }
 0x5ee   :  { %v9509_v8 = vmul.f32 0.00125, %v3471_v52  ;;  %4945 = vmatprep.subr.bf16.mxu0 %v6901_v42  ;;  %5104 = vmatprep.subr.bf16.mxu1 %v9493_v34  ;;  %v6919_v42 = vld [vmem:[%s10893_s8 + $0x344] ss:$16 sps:$4 sm:$0xff]  }
 0x5ef   :  { %v3566_v43 = vmul.f32 %v9507_v21, %v9507_v21  ;;  %v3600_v31 = vsub.f32 %v8939_v6, %v9507_v21  ;;  %v3602_v17 = vsub.f32 %v9108_v48, %v9507_v21  ;;  %v9554_v6 = vld [vmem:[%s10893_s8 + $0x328] ss:$16 sps:$4 sm:$0xff]  }
 0x5f0   :  { %v3559_v10 = vpop.xlane.xlu1 %3558  ;;  %v3567_v38 = vmul.f32 %v9509_v8, %v9509_v8  ;;  %v3610_v33 = vsub.f32 %v8949_v24, %v9509_v8  ;;  %v3612_v7 = vsub.f32 %v9114_v23, %v9509_v8  ;;  %v3597_v24 = vsub.f32 %v8728_v9, %v9507_v21 }
 0x5f1   :  { %v3563_v60 = vmul.f32 0.00125, %v3559_v10  ;;  %4946 = vmatpush1.bf16.msra.mxu0 %v6899_v12  ;;  %5105 = vmatpush1.bf16.msra.mxu1 %v9502_v56  ;;  %v3548_v32 = vpop.xlane.xlu0 %3547  ;;  %v9559_v48 = vmul.f32 %v9475_v40, %v3600_v31  ;;  %v9574_v9 = vmul.f32 %v9475_v40, %v3602_v17  ;;  %v3611_v10 = vsub.f32 %v8952_v22, %v9509_v8  ;;  %v9598_v22 = vld [vmem:[%s10893_s8 + $0x348] ss:$16 sps:$4 sm:$0xff]  }
 0x5f2   :  { %v3562_v61 = vmul.f32 0.00125, %v3548_v32  ;;  %4947 = vmatprep.subr.bf16.mxu0 %v6907_v53  ;;  %5106 = vmatprep.subr.bf16.mxu1 %v9515_v36  ;;  %v9571_v52 = vmul.f32 %v9471_v19, %v3610_v33  ;;  %v9577_v12 = vmul.f32 %v9471_v19, %v3612_v7  ;;  %v3601_v53 = vsub.f32 %v8946_v29, %v9507_v21  ;;  %v6917_v29 = vld [vmem:[%s10893_s8 + $0x340] ss:$16 sps:$4 sm:$0xff]  }
 0x5f3   :  { %v3571_v54 = vsub.f32 %v3563_v60, %v3567_v38  ;;  %v3604_v38 = vsub.f32 %v9121_v47, %v9507_v21  ;;  %v3614_v60 = vsub.f32 %v9131_v44, %v9509_v8  ;;  %v3603_v32 = vsub.f32 %v9111_v59, %v9507_v21  ;;  %v6925_v44 = vld [vmem:[%s10893_s8 + $0x364] ss:$16 sps:$4 sm:$0xff]  }
 0x5f4   :  { %v3570_v49 = vsub.f32 %v3562_v61, %v3566_v43  ;;  %v9601_v47 = vmul.f32 %v9475_v40, %v3601_v53  ;;  %v9604_v59 = vmul.f32 %v9471_v19, %v3611_v10  ;;  %v9616_v43 = vld [vmem:[%s10893_s8 + $0x36c] ss:$16 sps:$4 sm:$0xff]   ;;  %v3596_v31 = vsub.f32 %v8724_v62, %v9507_v21 }
 0x5f5   :  { %v3679_v15 = vadd.f32 1e-05, %v3571_v54  ;;  %4948 = vmatpush1.bf16.msra.mxu0 %v6905_v45  ;;  %5107 = vmatpush1.bf16.msra.mxu1 %v9526_v26  ;;  %v3613_v45 = vsub.f32 %v9117_v27, %v9509_v8  ;;  %v9607_v27 = vmul.f32 %v9475_v40, %v3604_v38  ;;  %v9619_v61 = vmul.f32 %v9471_v19, %v3614_v60  ;;  %v11076_v62 = vld [vmem:[#allocation11_spill] sm:$0xff] }
 0x5f6   :  { %v3678_v23 = vadd.f32 1e-05, %v3570_v49  ;;  %4949 = vmatprep.subr.bf16.mxu0 %v6913_v18  ;;  %5108 = vmatprep.subr.bf16.mxu1 %v9537_v11  ;;  %v9622_v18 = vmul.f32 %v9475_v40, %v3603_v32  ;;  %v3599_v49 = vsub.f32 %v8922_v39, %v9507_v21  ;;  %v3605_v33 = vsub.f32 %v9126_v1, %v9507_v21  ;;  %v6923_v39 = vld [vmem:[%s10893_s8 + $0x360] ss:$16 sps:$4 sm:$0xff]  }
 0x5f7   :  { %7009 = vrsqrt.f32 %v3679_v15  ;;  %v9625_v54 = vmul.f32 %v9471_v19, %v3613_v45  ;;  %v3615_v17 = vsub.f32 %v9135_v0, %v9509_v8  ;;  %v3607_v7 = vsub.f32 %v8746_v57, %v9509_v8  ;;  %v9650_v57 = vld [vmem:[%s10893_s8 + $0x368] ss:$16 sps:$4 sm:$0xff]   ;;  %v6929_v45 = vld [vmem:[%s10893_s8 + $0x380] ss:$16 sps:$4 sm:$0xff]  }
 0x5f8   :  { %7011 = vrsqrt.f32 %v3678_v23  ;;  %v3606_v15 = vsub.f32 %v8732_v46, %v9509_v8  ;;  %v3598_v23 = vsub.f32 %v11076_v62, %v9507_v21  ;;  %v11077_v46 = vld [vmem:[#allocation12_spill] sm:$0xff]  ;;  %v3656_v10 = vmul.f32 %v9475_v40, %v3596_v31 }
 0x5f9   :  { %4950 = vmatpush1.bf16.msra.mxu0 %v6911_v3  ;;  %5109 = vmatpush1.bf16.msra.mxu1 %v9554_v6  ;;  %v3609_v3 = vsub.f32 %v8930_v35, %v9509_v8  ;;  %v3608_v1 = vsub.f32 %v11077_v46, %v9509_v8  ;;  %v9655_v35 = vmul.f32 %v9475_v40, %v3605_v33  ;;  %v6931_v21 = vld [vmem:[%s10893_s8 + $0x384] ss:$16 sps:$4 sm:$0xff]   ;;  %v9708_v46 = vpop.permute.xlu1 %3740 }
 0x5fa   :  { %4951 = vmatprep.subr.bf16.mxu0 %v6919_v42  ;;  %5110 = vmatprep.subr.bf16.mxu1 %v9568_v51  ;;  %v9658_v0 = vmul.f32 %v9471_v19, %v3615_v17  ;;  %v9667_v42 = vld [vmem:[%s10893_s8 + $0x38c] ss:$16 sps:$4 sm:$0xff]   ;;  %v3657_v8 = vmul.f32 %v9475_v40, %v3597_v24  ;;  %v3667_v53 = vmul.f32 %v9471_v19, %v3607_v7  ;;  %v9683_v24 = vld [vmem:[%s10893_s8 + $0x388] ss:$16 sps:$4 sm:$0xff]   ;;  %v6937_v17 = vld [vmem:[%s10893_s8 + $0x3a4] ss:$16 sps:$4 sm:$0xff]  }
 0x5fb   :  { %11078 = vst [vmem:[#allocation11_spill] sm:$0xff] %v9667_v42  ;;  %v3666_v38 = vmul.f32 %v9471_v19, %v3606_v15  ;;  %v3669_v60 = vmul.f32 %v9471_v19, %v3609_v3  ;;  %11079 = vst [vmem:[#allocation12_spill] sm:$0xff] %v9683_v24  ;;  %v3668_v31 = vmul.f32 %v9471_v19, %v3608_v1  ;;  %v9697_v7 = vld [vmem:[%s10893_s8 + $0x3ac] ss:$16 sps:$4 sm:$0xff]   ;;  %v9702_v15 = vpop.permute.xlu0 %3745  ;;  %v6935_v1 = vld [vmem:[%s10893_s8 + $0x3a0] ss:$16 sps:$4 sm:$0xff]  }
 0x5fc   :  { %11080 = vst [vmem:[#allocation15_spill] sm:$0xff] %v9697_v7 }
 0x5fd   :  { %4952 = vmatpush1.bf16.msra.mxu0 %v6917_v29  ;;  %5111 = vmatpush1.bf16.msra.mxu1 %v9598_v22  ;;  %v3659_v29 = vmul.f32 %v9475_v40, %v3599_v49 }
 0x5fe   :  { %4953 = vmatprep.subr.bf16.mxu0 %v6925_v44  ;;  %5112 = vmatprep.subr.bf16.mxu1 %v9616_v43  ;;  %v3658_v44 = vmul.f32 %v9475_v40, %v3598_v23 }
 0x601   :  { %v9674_v32 = vpop.eup %7009  ;;  %4954 = vmatpush1.bf16.msra.mxu0 %v6923_v39  ;;  %5113 = vmatpush1.bf16.msra.mxu1 %v9650_v57 }
 0x602   :  { %v9688_v33 = vpop.eup %7011  ;;  %4955 = vmatprep.subr.bf16.mxu0 %v6931_v21  ;;  %5114 = vmatprep.subr.bf16.mxu1 %v9667_v42  ;;  %v3715_v49 = vmul.f32 %v9674_v32, %v3667_v53  ;;  %v3714_v40 = vmul.f32 %v9674_v32, %v3666_v38  ;;  %v3717_v19 = vmul.f32 %v9674_v32, %v3669_v60  ;;  %v6941_v42 = vld [vmem:[%s10893_s8 + $0x3c0] ss:$16 sps:$4 sm:$0xff]  }
 0x603   :  { %v3705_v3 = vmul.f32 %v9688_v33, %v3657_v8  ;;  %v3704_v62 = vmul.f32 %v9688_v33, %v3656_v10  ;;  %v3707_v23 = vmul.f32 %v9688_v33, %v3659_v29  ;;  %v3706_v39 = vmul.f32 %v9688_v33, %v3658_v44  ;;  %v9721_v10 = vld [vmem:[%s10893_s8 + $0x3a8] ss:$16 sps:$4 sm:$0xff]   ;;  %v6943_v29 = vld [vmem:[%s10893_s8 + $0x3c4] ss:$16 sps:$4 sm:$0xff]   ;;  %v9730_v44 = vld [vmem:[%s10893_s8 + $0x3cc] ss:$16 sps:$4 sm:$0xff]  }
 0x604   :  { %v3779_v21 = vadd.f32 %v9702_v15, %v3715_v49  ;;  %v3778_v53 = vadd.f32 %v9702_v15, %v3714_v40  ;;  %v3781_v38 = vadd.f32 %v9702_v15, %v3717_v19  ;;  %v3716_v8 = vmul.f32 %v9674_v32, %v3668_v31 }
 0x605   :  { %4956 = vmatpush1.bf16.msra.mxu0 %v6929_v45  ;;  %5115 = vmatpush1.bf16.msra.mxu1 %v9683_v24  ;;  %v3769_v60 = vadd.f32 %v9708_v46, %v3705_v3  ;;  %v3768_v45 = vadd.f32 %v9708_v46, %v3704_v62  ;;  %v3771_v31 = vadd.f32 %v9708_v46, %v3707_v23 }
 0x606   :  { %4957 = vmatprep.subr.bf16.mxu0 %v6937_v17  ;;  %5116 = vmatprep.subr.bf16.mxu1 %v9697_v7  ;;  %vm3819_vm10 = vcmp.gt.f32.partialorder %v3779_v21, 0.0  ;;  %v3859_v49 = vmul.f32 0.01, %v3779_v21  ;;  %vm3818_vm11 = vcmp.gt.f32.partialorder %v3778_v53, 0.0  ;;  %v3858_v40 = vmul.f32 0.01, %v3778_v53 }
 0x607   :  { %vm3809_vm12 = vcmp.gt.f32.partialorder %v3769_v60, 0.0  ;;  %v3849_v19 = vmul.f32 0.01, %v3769_v60  ;;  %vm3808_vm13 = vcmp.gt.f32.partialorder %v3768_v45, 0.0  ;;  %v3848_v3 = vmul.f32 0.01, %v3768_v45 }
 0x608   :  { %v3899_v14 = vsel %vm3819_vm10, %v3779_v21, %v3859_v49  ;;  %v3898_v41 = vsel %vm3818_vm11, %v3778_v53, %v3858_v40  ;;  %vm3811_vm14 = vcmp.gt.f32.partialorder %v3771_v31, 0.0  ;;  %vm3821_vm15 = vcmp.gt.f32.partialorder %v3781_v38, 0.0  ;;  %v9742_v21 = vld [vmem:[%s10893_s8 + $0x3c8] ss:$16 sps:$4 sm:$0xff]  }
 0x609   :  { %4958 = vmatpush1.bf16.msra.mxu0 %v6935_v1  ;;  %5117 = vmatpush1.bf16.msra.mxu1 %v9721_v10  ;;  %v3889_v62 = vsel %vm3809_vm12, %v3769_v60, %v3849_v19  ;;  %v3888_v23 = vsel %vm3808_vm13, %v3768_v45, %v3848_v3  ;;  %v3851_v17 = vmul.f32 0.01, %v3771_v31  ;;  %v3861_v24 = vmul.f32 0.01, %v3781_v38  ;;  %v6949_v60 = vld [vmem:[%s10893_s8 + $0x3e4] ss:$16 sps:$4 sm:$0xff]  }
 0x60a   :  { %v3914_v7 = vpack.c.bf16 %v3899_v14, %v3889_v62  ;;  %4959 = vmatprep.subr.bf16.mxu0 %v6943_v29  ;;  %5118 = vmatprep.subr.bf16.mxu1 %v9730_v44  ;;  %v3913_v1 = vpack.c.bf16 %v3898_v41, %v3888_v23  ;;  %v3770_v53 = vadd.f32 %v9708_v46, %v3706_v39  ;;  %v9757_v41 = vld [vmem:[%s10893_s8 + $0x3ec] ss:$16 sps:$4 sm:$0xff]  }
 0x60b   :  { %v3891_v14 = vsel %vm3811_vm14, %v3771_v31, %v3851_v17  ;;  %v3901_v45 = vsel %vm3821_vm15, %v3781_v38, %v3861_v24  ;;  %v3780_v29 = vadd.f32 %v9702_v15, %v3716_v8  ;;  %v3708_v49 = vmul.f32 %v9688_v33, %v9559_v48  ;;  %v6947_v38 = vld [vmem:[%s10893_s8 + $0x3e0] ss:$16 sps:$4 sm:$0xff]   ;;  %v6955_v8 = vld [vmem:[%s10893_s8 + $0x404] ss:$16 sps:$4 sm:$0xff]  }
 0x60c   :  { %4920 = vmatprep.mubr.bf16.mxu0 %v3914_v7  ;;  %5079 = vmatprep.mubr.bf16.mxu1 %v3914_v7  ;;  %v9759_v39 = vpack.c.bf16 %v3901_v45, %v3891_v14  ;;  %vm3810_vm1 = vcmp.gt.f32.partialorder %v3770_v53, 0.0  ;;  %v3850_v40 = vmul.f32 0.01, %v3770_v53  ;;  %v3718_v31 = vmul.f32 %v9674_v32, %v9571_v52  ;;  %v9773_v52 = vld [vmem:[%s10893_s8 + $0x3e8] ss:$16 sps:$4 sm:$0xff]  }
 0x60d   :  { %4921 = vmatmul.mubr.bf16.gmra.mrb[40].mxu0 %v3913_v1  ;;  %5080 = vmatmul.mubr.bf16.gmra.mrb[28].mxu1 %v3913_v1  ;;  %vm3820_vm2 = vcmp.gt.f32.partialorder %v3780_v29, 0.0  ;;  %v3860_v24 = vmul.f32 0.01, %v3780_v29  ;;  %v3772_v48 = vadd.f32 %v9708_v46, %v3708_v49  ;;  %v3710_v7 = vmul.f32 %v9688_v33, %v9574_v9 }
 0x60e   :  { %4960 = vmatpush1.bf16.msra.mxu0 %v6941_v42  ;;  %5119 = vmatpush1.bf16.msra.mxu1 %v9742_v21  ;;  %v3890_v19 = vsel %vm3810_vm1, %v3770_v53, %v3850_v40  ;;  %v3782_v3 = vadd.f32 %v9702_v15, %v3718_v31  ;;  %v3720_v9 = vmul.f32 %v9674_v32, %v9577_v12  ;;  %v9786_v42 = vld [vmem:[%s10893_s8 + $0x40c] ss:$16 sps:$4 sm:$0xff]   ;;  %vm6008_vm15 = vcmask 1040384  }
 0x60f   :  { %4963 = vmatprep.mubr.bf16.mxu0 %v9342_v25  ;;  %5122 = vmatprep.mubr.bf16.mxu1 %v9342_v25  ;;  %v3900_v62 = vsel %vm3820_vm2, %v3780_v29, %v3860_v24  ;;  %vm3812_vm0 = vcmp.gt.f32.partialorder %v3772_v48, 0.0  ;;  %v3852_v23 = vmul.f32 0.01, %v3772_v48  ;;  %v3774_v17 = vadd.f32 %v9708_v46, %v3710_v7  ;;  %v6953_v25 = vld [vmem:[%s10893_s8 + $0x400] ss:$16 sps:$4 sm:$0xff]  }
 0x610   :  { %4961 = vmatprep.subr.bf16.mxu0 %v6949_v60  ;;  %5120 = vmatprep.subr.bf16.mxu1 %v9757_v41  ;;  %v9790_v1 = vpack.c.bf16 %v3900_v62, %v3890_v19  ;;  %vm3822_vm3 = vcmp.gt.f32.partialorder %v3782_v3, 0.0  ;;  %v3862_v12 = vmul.f32 0.01, %v3782_v3  ;;  %v3784_v53 = vadd.f32 %v9702_v15, %v3720_v9  ;;  %v9802_v60 = vld [vmem:[%s10893_s8 + $0x408] ss:$16 sps:$4 sm:$0xff]  }
 0x611   :  { %v3892_v14 = vsel %vm3812_vm0, %v3772_v48, %v3852_v23  ;;  %vm3814_vm4 = vcmp.gt.f32.partialorder %v3774_v17, 0.0  ;;  %v3854_v45 = vmul.f32 0.01, %v3774_v17  ;;  %v3709_v29 = vmul.f32 %v9688_v33, %v9601_v47  ;;  %v9813_v7 = vld [vmem:[%s10893_s8 + $0x424] ss:$16 sps:$4 sm:$0xff]  }
 0x612   :  { %4962 = vmatpush1.bf16.msra.mxu0 %v6947_v38  ;;  %5121 = vmatpush1.bf16.msra.mxu1 %v9773_v52  ;;  %v3902_v49 = vsel %vm3822_vm3, %v3782_v3, %v3862_v12  ;;  %vm3824_vm5 = vcmp.gt.f32.partialorder %v3784_v53, 0.0  ;;  %v3864_v40 = vmul.f32 0.01, %v3784_v53  ;;  %v3719_v31 = vmul.f32 %v9674_v32, %v9604_v59  ;;  %v9818_v38 = vld [vmem:[%s10893_s8 + $0x42c] ss:$16 sps:$4 sm:$0xff]  }
 0x613   :  { %4984 = vmatprep.subr.bf16.mxu0 %v6955_v8  ;;  %5143 = vmatprep.subr.bf16.mxu1 %v9786_v42  ;;  %v9807_v24 = vpack.c.bf16 %v3902_v49, %v3892_v14  ;;  %v3894_v47 = vsel %vm3814_vm4, %v3774_v17, %v3854_v45  ;;  %v3773_v48 = vadd.f32 %v9708_v46, %v3709_v29  ;;  %v9830_v9 = vld [vmem:[%s10893_s8 + $0x420] ss:$16 sps:$4 sm:$0xff]  }
 0x614   :  { %v3904_v19 = vsel %vm3824_vm5, %v3784_v53, %v3864_v40  ;;  %v3783_v59 = vadd.f32 %v9702_v15, %v3719_v31  ;;  %v3712_v8 = vmul.f32 %v9688_v33, %v9607_v27  ;;  %v3722_v3 = vmul.f32 %v9674_v32, %v9619_v61  ;;  %v9840_v27 = vld [vmem:[%s10893_s8 + $0x428] ss:$16 sps:$4 sm:$0xff]   ;;  %v9854_v53 = vld [vmem:[%s10893_s8 + $0x44c] ss:$16 sps:$4 sm:$0xff]   ;;  %v9864_v49 = vld [vmem:[%s10893_s8 + $0x440] ss:$16 sps:$4 sm:$0xff]  }
 0x615   :  { %4964 = vmatmul.mubr.bf16.vlgmr.msra.gmra.mrb[36].mxu0 %v9354_v28  ;;  %5123 = vmatmul.mubr.bf16.vlgmr.msra.gmra.mrb[24].mxu1 %v9354_v28  ;;  %v9832_v62 = vpack.c.bf16 %v3904_v19, %v3894_v47  ;;  %vm3813_vm7 = vcmp.gt.f32.partialorder %v3773_v48, 0.0  ;;  %v3853_v23 = vmul.f32 0.01, %v3773_v48  ;;  %v3711_v17 = vmul.f32 %v9688_v33, %v9622_v18  ;;  %v9849_v18 = vld [vmem:[%s10893_s8 + $0x444] ss:$16 sps:$4 sm:$0xff]  }
 0x616   :  { %4985 = vmatpush1.bf16.msra.mxu0 %v6953_v25  ;;  %5144 = vmatpush1.bf16.msra.mxu1 %v9802_v60  ;;  %vm3823_vm8 = vcmp.gt.f32.partialorder %v3783_v59, 0.0  ;;  %v3863_v28 = vmul.f32 0.01, %v3783_v59  ;;  %v3776_v61 = vadd.f32 %v9708_v46, %v3712_v8  ;;  %v3786_v12 = vadd.f32 %v9702_v15, %v3722_v3  ;;  %v9874_v47 = vld [vmem:[%s10893_s8 + $0x448] ss:$16 sps:$4 sm:$0xff]  }
 0x617   :  { %4973 = vmatprep.mubr.bf16.mxu0 %v9759_v39  ;;  %5132 = vmatprep.mubr.bf16.mxu1 %v9759_v39  ;;  %v3893_v25 = vsel %vm3813_vm7, %v3773_v48, %v3853_v23  ;;  %v3721_v14 = vmul.f32 %v9674_v32, %v9625_v54  ;;  %v3775_v45 = vadd.f32 %v9708_v46, %v3711_v17  ;;  %v9879_v48 = vld [vmem:[%s10893_s8 + $0x464] ss:$16 sps:$4 sm:$0xff]   ;;  %v9890_v23 = vld [vmem:[%s10893_s8 + $0x46c] ss:$16 sps:$4 sm:$0xff]  }
 0x618   :  { %4986 = vmatprep.subr.bf16.mxu0 %v9813_v7  ;;  %5145 = vmatprep.subr.bf16.mxu1 %v9818_v38  ;;  %v3903_v39 = vsel %vm3823_vm8, %v3783_v59, %v3863_v28  ;;  %vm3816_vm9 = vcmp.gt.f32.partialorder %v3776_v61, 0.0  ;;  %vm3826_vm10 = vcmp.gt.f32.partialorder %v3786_v12, 0.0  ;;  %v3856_v29 = vmul.f32 0.01, %v3776_v61 }
 0x619   :  { %v9866_v40 = vpack.c.bf16 %v3903_v39, %v3893_v25  ;;  %v3866_v31 = vmul.f32 0.01, %v3786_v12  ;;  %v3785_v54 = vadd.f32 %v9702_v15, %v3721_v14  ;;  %vm3815_vm11 = vcmp.gt.f32.partialorder %v3775_v45, 0.0  ;;  %v9919_v25 = vld [vmem:[%s10893_s8 + $0x484] ss:$16 sps:$4 sm:$0xff]  }
 0x61a   :  { %4987 = vmatpush1.bf16.msra.mxu0 %v9830_v9  ;;  %5146 = vmatpush1.bf16.msra.mxu1 %v9840_v27  ;;  %v3896_v19 = vsel %vm3816_vm9, %v3776_v61, %v3856_v29  ;;  %v3855_v59 = vmul.f32 0.01, %v3775_v45  ;;  %v3713_v8 = vmul.f32 %v9688_v33, %v9655_v35  ;;  %v3723_v3 = vmul.f32 %v9674_v32, %v9658_v0  ;;  %v9903_v32 = vld [vmem:[%s10893_s8 + $0x460] ss:$16 sps:$4 sm:$0xff]   ;;  %v9924_v14 = vld [vmem:[%s10893_s8 + $0x48c] ss:$16 sps:$4 sm:$0xff]  }
 0x61b   :  { %4988 = vmatprep.subr.bf16.mxu0 %v9849_v18  ;;  %5147 = vmatprep.subr.bf16.mxu1 %v9854_v53  ;;  %v3906_v17 = vsel %vm3826_vm10, %v3786_v12, %v3866_v31  ;;  %vm3825_vm12 = vcmp.gt.f32.partialorder %v3785_v54, 0.0  ;;  %v3865_v28 = vmul.f32 0.01, %v3785_v54  ;;  %11081 = vst [vmem:[#allocation16_spill] sm:$0xff] %v9903_v32  ;;  %11082 = vst [vmem:[#allocation17_spill] sm:$0xff] %v9919_v25  ;;  %v11083_v39 = vmov 0  }
 0x61c   :  { %v9893_v61 = vpack.c.bf16 %v3906_v17, %v3896_v19  ;;  %v3895_v35 = vsel %vm3815_vm11, %v3775_v45, %v3855_v59  ;;  %v3777_v33 = vadd.f32 %v9708_v46, %v3713_v8  ;;  %v3787_v0 = vadd.f32 %v9702_v15, %v3723_v3  ;;  %v9910_v46 = vld [vmem:[%s10893_s8 + $0x468] ss:$16 sps:$4 sm:$0xff]   ;;  %v9947_v8 = vld [vmem:[%s10893_s8 + $0x4a4] ss:$16 sps:$4 sm:$0xff]   ;;  %v9952_v3 = vld [vmem:[%s10893_s8 + $0x4ac] ss:$16 sps:$4 sm:$0xff]  }
 0x61d   :  { %4974 = vmatmul.mubr.bf16.gmra.mrb[40].mxu0 %v9790_v1  ;;  %5133 = vmatmul.mubr.bf16.gmra.mrb[28].mxu1 %v9790_v1  ;;  %v3905_v12 = vsel %vm3825_vm12, %v3785_v54, %v3865_v28  ;;  %v9933_v54 = vld [vmem:[%s10893_s8 + $0x480] ss:$16 sps:$4 sm:$0xff]   ;;  %v9938_v19 = vld [vmem:[%s10893_s8 + $0x488] ss:$16 sps:$4 sm:$0xff]   ;;  %11085 = vst [vmem:[#allocation19_spill] sm:$0xff] %v9947_v8 }
 0x61e   :  { %4989 = vmatpush1.bf16.msra.mxu0 %v9864_v49  ;;  %5148 = vmatpush1.bf16.msra.mxu1 %v9874_v47  ;;  %v9912_v15 = vpack.c.bf16 %v3905_v12, %v3895_v35  ;;  %vm3817_vm13 = vcmp.gt.f32.partialorder %v3777_v33, 0.0  ;;  %vm3827_vm14 = vcmp.gt.f32.partialorder %v3787_v0, 0.0  ;;  %v3857_v1 = vmul.f32 0.01, %v3777_v33  ;;  %11084 = vst [vmem:[#allocation18_spill] sm:$0xff] %v9933_v54 }
 0x61f   :  { %4990 = vmatprep.subr.bf16.mxu0 %v9879_v48  ;;  %5149 = vmatprep.subr.bf16.mxu1 %v9890_v23  ;;  %v3867_v45 = vmul.f32 0.01, %v3787_v0  ;;  %v9959_v17 = vld [vmem:[%s10893_s8 + $0x4a0] ss:$16 sps:$4 sm:$0xff]   ;;  %v9964_v28 = vld [vmem:[%s10893_s8 + $0x4a8] ss:$16 sps:$4 sm:$0xff]  }
 0x620   :  { %5016 = vmatprep.mubr.bf16.mxu0 %v11083_v39  ;;  %5175 = vmatprep.mubr.bf16.mxu1 %v11083_v39  ;;  %v3897_v29 = vsel %vm3817_vm13, %v3777_v33, %v3857_v1  ;;  %11086 = vst [vmem:[#allocation20_spill] sm:$0xff] %v9959_v17  ;;  %v9971_v35 = vld [vmem:[%s10893_s8 + $0x4c4] ss:$16 sps:$4 sm:$0xff]   ;;  %v9976_v33 = vld [vmem:[%s10893_s8 + $0x4cc] ss:$16 sps:$4 sm:$0xff]  }
 0x621   :  { %v3907_v31 = vsel %vm3827_vm14, %v3787_v0, %v3867_v45  ;;  %11087 = vst [vmem:[#allocation21_spill] sm:$0xff] %v9971_v35  ;;  %v9983_v0 = vld [vmem:[%s10893_s8 + $0x4c0] ss:$16 sps:$4 sm:$0xff]   ;;  %v9988_v12 = vld [vmem:[%s10893_s8 + $0x4c8] ss:$16 sps:$4 sm:$0xff]  }
 0x622   :  { %4991 = vmatpush1.bf16.msra.mxu0 %v9903_v32  ;;  %5150 = vmatpush1.bf16.msra.mxu1 %v9910_v46  ;;  %v9940_v59 = vpack.c.bf16 %v3907_v31, %v3897_v29  ;;  %11088 = vst [vmem:[#allocation22_spill] sm:$0xff] %v9983_v0  ;;  %v9995_v1 = vld [vmem:[%s10893_s8 + $0x4e4] ss:$16 sps:$4 sm:$0xff]   ;;  %v10000_v45 = vld [vmem:[%s10893_s8 + $0x4ec] ss:$16 sps:$4 sm:$0xff]  }
 0x623   :  { %4992 = vmatprep.subr.bf16.mxu0 %v9919_v25  ;;  %5151 = vmatprep.subr.bf16.mxu1 %v9924_v14  ;;  %11089 = vst [vmem:[#allocation23_spill] sm:$0xff] %v9995_v1  ;;  %v10007_v29 = vld [vmem:[%s10893_s8 + $0x4e0] ss:$16 sps:$4 sm:$0xff]   ;;  %v10012_v31 = vld [vmem:[%s10893_s8 + $0x4e8] ss:$16 sps:$4 sm:$0xff]  }
 0x624   :  { %11090 = vst [vmem:[#allocation24_spill] sm:$0xff] %v10007_v29  ;;  %v5231_v25 = vld [vmem:[%s10895_s10 + $0x18] sm:$0xff]  ;;  %v5248_v32 = vld [vmem:[%s10895_s10 + $0xa0] sm:$0xff] }
 0x626   :  { %4993 = vmatpush1.bf16.msra.mxu0 %v9933_v54  ;;  %5152 = vmatpush1.bf16.msra.mxu1 %v9938_v19  ;;  %v7045_v54 = vld [vmem:[%s10893_s8 + $0x16c] ss:$16 sps:$4 sm:$0xff]  }
 0x627   :  { %4994 = vmatprep.subr.bf16.mxu0 %v9947_v8  ;;  %5153 = vmatprep.subr.bf16.mxu1 %v9952_v3  ;;  %v5247_v8 = vld [vmem:[%s10895_s10 + $0x98] sm:$0xff] }
 0x62a   :  { %4995 = vmatpush1.bf16.msra.mxu0 %v9959_v17  ;;  %5154 = vmatpush1.bf16.msra.mxu1 %v9964_v28  ;;  %v5246_v17 = vld [vmem:[%s10895_s10 + $0x90] sm:$0xff] }
 0x62b   :  { %4996 = vmatprep.subr.bf16.mxu0 %v9971_v35  ;;  %5155 = vmatprep.subr.bf16.mxu1 %v9976_v33  ;;  %v7024_v35 = vld [vmem:[%s10893_s8 + $0x8] ss:$16 sps:$4 sm:$0xff]  }
 0x62e   :  { %4997 = vmatpush1.bf16.msra.mxu0 %v9983_v0  ;;  %5156 = vmatpush1.bf16.msra.mxu1 %v9988_v12  ;;  %v7023_v0 = vld [vmem:[%s10893_s8 + $0xc] ss:$16 sps:$4 sm:$0xff]  }
 0x62f   :  { %4998 = vmatprep.subr.bf16.mxu0 %v9995_v1  ;;  %5157 = vmatprep.subr.bf16.mxu1 %v10000_v45 }
 0x632   :  { %4999 = vmatpush1.bf16.msra.mxu0 %v10007_v29  ;;  %5158 = vmatpush1.bf16.msra.mxu1 %v10012_v31  ;;  %v7025_v29 = vld [vmem:[%s10893_s8 + $0x2c] ss:$16 sps:$4 sm:$0xff]  }
 0x633   :  { %5646 = vmatprep.subr.bf16.mxu1 %v7023_v0  ;;  %v7026_v0 = vld [vmem:[%s10893_s8 + $0x28] ss:$16 sps:$4 sm:$0xff]  }
 0x635   :  { %5017 = vmatmul.mubr.bf16.vlgmr.msra.gmra.mrb[36].mxu0 %v9387_v30  ;;  %5176 = vmatmul.mubr.bf16.vlgmr.msra.gmra.mrb[24].mxu1 %v9387_v30  ;;  %v7027_v30 = vld [vmem:[%s10893_s8 + $0x4c] ss:$16 sps:$4 sm:$0xff]  }
 0x636   :  { %5647 = vmatpush1.bf16.msra.mxu1 %v7024_v35  ;;  %5026 = vmatprep.mubr.bf16.mxu0 %v11083_v39  ;;  %v7028_v35 = vld [vmem:[%s10893_s8 + $0x48] ss:$16 sps:$4 sm:$0xff]  }
 0x637   :  { %5648 = vmatprep.subr.bf16.mxu1 %v7025_v29  ;;  %5185 = vmatprep.mubr.bf16.mxu1 %v11083_v39  ;;  %v7029_v29 = vld [vmem:[%s10893_s8 + $0x6c] ss:$16 sps:$4 sm:$0xff]  }
 0x63a   :  { %5649 = vmatpush1.bf16.msra.mxu1 %v7026_v0  ;;  %v7030_v0 = vld [vmem:[%s10893_s8 + $0x68] ss:$16 sps:$4 sm:$0xff]  }
 0x63b   :  { %5650 = vmatprep.subr.bf16.mxu1 %v7027_v30  ;;  %v7032_v30 = vld [vmem:[%s10893_s8 + $0x88] ss:$16 sps:$4 sm:$0xff]  }
 0x63d   :  { %5027 = vmatmul.mubr.bf16.gmra.mrb[40].mxu0 %v9807_v24  ;;  %5186 = vmatmul.mubr.bf16.gmra.mrb[28].mxu1 %v9807_v24  ;;  %v7031_v24 = vld [vmem:[%s10893_s8 + $0x8c] ss:$16 sps:$4 sm:$0xff]  }
 0x63e   :  { %5651 = vmatpush1.bf16.msra.mxu1 %v7028_v35  ;;  %5678 = vmatprep.mubr.bf16.mxu1 %v9407_v5  ;;  %v7033_v35 = vld [vmem:[%s10893_s8 + $0xac] ss:$16 sps:$4 sm:$0xff]  }
 0x63f   :  { %5652 = vmatprep.subr.bf16.mxu1 %v7029_v29  ;;  %v7034_v29 = vld [vmem:[%s10893_s8 + $0xa8] ss:$16 sps:$4 sm:$0xff]  }
 0x642   :  { %5653 = vmatpush1.bf16.msra.mxu1 %v7030_v0  ;;  %v7035_v0 = vld [vmem:[%s10893_s8 + $0xcc] ss:$16 sps:$4 sm:$0xff]  }
 0x643   :  { %5654 = vmatprep.subr.bf16.mxu1 %v7031_v24  ;;  %v7036_v24 = vld [vmem:[%s10893_s8 + $0xc8] ss:$16 sps:$4 sm:$0xff]  }
 0x646   :  { %5655 = vmatpush1.bf16.msra.mxu1 %v7032_v30  ;;  %v7037_v30 = vld [vmem:[%s10893_s8 + $0xec] ss:$16 sps:$4 sm:$0xff]  }
 0x647   :  { %5656 = vmatprep.subr.bf16.mxu1 %v7033_v35  ;;  %v7038_v35 = vld [vmem:[%s10893_s8 + $0xe8] ss:$16 sps:$4 sm:$0xff]  }
 0x64a   :  { %5657 = vmatpush1.bf16.msra.mxu1 %v7034_v29  ;;  %v7039_v29 = vld [vmem:[%s10893_s8 + $0x10c] ss:$16 sps:$4 sm:$0xff]  }
 0x64b   :  { %5658 = vmatprep.subr.bf16.mxu1 %v7035_v0  ;;  %v7040_v0 = vld [vmem:[%s10893_s8 + $0x108] ss:$16 sps:$4 sm:$0xff]  }
 0x64e   :  { %5659 = vmatpush1.bf16.msra.mxu1 %v7036_v24  ;;  %v7041_v24 = vld [vmem:[%s10893_s8 + $0x12c] ss:$16 sps:$4 sm:$0xff]  }
 0x64f   :  { %5660 = vmatprep.subr.bf16.mxu1 %v7037_v30  ;;  %v7042_v30 = vld [vmem:[%s10893_s8 + $0x128] ss:$16 sps:$4 sm:$0xff]  }
 0x652   :  { %5661 = vmatpush1.bf16.msra.mxu1 %v7038_v35  ;;  %v7043_v35 = vld [vmem:[%s10893_s8 + $0x14c] ss:$16 sps:$4 sm:$0xff]  }
 0x653   :  { %5662 = vmatprep.subr.bf16.mxu1 %v7039_v29  ;;  %v5244_v29 = vld [vmem:[%s10895_s10 + $0x80] sm:$0xff] }
 0x656   :  { %5663 = vmatpush1.bf16.msra.mxu1 %v7040_v0  ;;  %v5245_v0 = vld [vmem:[%s10895_s10 + $0x88] sm:$0xff] }
 0x657   :  { %5664 = vmatprep.subr.bf16.mxu1 %v7041_v24  ;;  %v5228_v24 = vld [vmem:[%s10895_s10] sm:$0xff]  ;;  %v10100_v1 = vpack.c.bf16 %v5245_v0, %v5244_v29  ;;  %v10116_v29 = vpack.c.bf16 %v5247_v8, %v5246_v17  ;;  %v5230_v0 = vld [vmem:[%s10895_s10 + $0x10] sm:$0xff]  ;;  %v7046_v17 = vld [vmem:[%s10893_s8 + $0x168] ss:$16 sps:$4 sm:$0xff]  }
 0x658   :  { %v10132_v8 = vpack.c.bf16 %v5231_v25, %v5230_v0  ;;  %v7047_v25 = vld [vmem:[%s10893_s8 + $0x18c] ss:$16 sps:$4 sm:$0xff]   ;;  %v5250_v0 = vld [vmem:[%s10895_s10 + $0xb0] sm:$0xff] }
 0x659   :  { %11091 = vst [vmem:[#allocation25_spill] sm:$0xff] %v10100_v1  ;;  %11093 = vst [vmem:[#allocation27_spill] sm:$0xff] %v10116_v29  ;;  %6454 = vmatprep.subr.bf16.mxu0 %v10100_v1  ;;  %v5233_v1 = vld [vmem:[%s10895_s10 + $0x28] sm:$0xff] }
 0x65a   :  { %5665 = vmatpush1.bf16.msra.mxu1 %v7042_v30  ;;  %v7044_v30 = vld [vmem:[%s10893_s8 + $0x148] ss:$16 sps:$4 sm:$0xff]   ;;  %11094 = vst [vmem:[#allocation28_spill] sm:$0xff] %v10132_v8 }
 0x65b   :  { %5666 = vmatprep.subr.bf16.mxu1 %v7043_v35  ;;  %v5229_v35 = vld [vmem:[%s10895_s10 + $0x8] sm:$0xff] }
 0x65e   :  { %5667 = vmatpush1.bf16.msra.mxu1 %v7044_v30  ;;  %v10114_v30 = vpack.c.bf16 %v5229_v35, %v5228_v24  ;;  %v5232_v35 = vld [vmem:[%s10895_s10 + $0x20] sm:$0xff] }
 0x65f   :  { %5668 = vmatprep.subr.bf16.mxu1 %v7045_v54  ;;  %v5249_v54 = vld [vmem:[%s10895_s10 + $0xa8] sm:$0xff] }
 0x660   :  { %11092 = vst [vmem:[#allocation26_spill] sm:$0xff] %v10114_v30  ;;  %6456 = vmatpush3.bf16.msra.mxu0 %v10114_v30  ;;  %v10138_v24 = vpack.c.bf16 %v5249_v54, %v5248_v32  ;;  %v5251_v32 = vld [vmem:[%s10895_s10 + $0xb8] sm:$0xff]  ;;  %v10156_v54 = vpack.c.bf16 %v5233_v1, %v5232_v35  ;;  %v5252_v35 = vld [vmem:[%s10895_s10 + $0xc0] sm:$0xff] }
 0x661   :  { %6458 = vmatprep.subr.bf16.mxu0 %v10116_v29  ;;  %v5234_v29 = vld [vmem:[%s10895_s10 + $0x30] sm:$0xff]  ;;  %v5235_v30 = vld [vmem:[%s10895_s10 + $0x38] sm:$0xff] }
 0x662   :  { %5669 = vmatpush1.bf16.msra.mxu1 %v7046_v17  ;;  %11095 = vst [vmem:[#allocation29_spill] sm:$0xff] %v10138_v24  ;;  %11096 = vst [vmem:[#allocation30_spill] sm:$0xff] %v10156_v54  ;;  %v7048_v17 = vld [vmem:[%s10893_s8 + $0x188] ss:$16 sps:$4 sm:$0xff]   ;;  %v7049_v1 = vld [vmem:[%s10893_s8 + $0x1ac] ss:$16 sps:$4 sm:$0xff]  }
 0x663   :  { %5670 = vmatprep.subr.bf16.mxu1 %v7047_v25  ;;  %v10162_v25 = vpack.c.bf16 %v5251_v32, %v5250_v0  ;;  %v5253_v0 = vld [vmem:[%s10895_s10 + $0xc8] sm:$0xff]  ;;  %v10180_v32 = vpack.c.bf16 %v5235_v30, %v5234_v29  ;;  %v5254_v29 = vld [vmem:[%s10895_s10 + $0xd0] sm:$0xff] }
 0x664   :  { %6460 = vmatpush3.bf16.msra.mxu0 %v10132_v8  ;;  %v5237_v8 = vld [vmem:[%s10895_s10 + $0x48] sm:$0xff] }
 0x665   :  { %6462 = vmatprep.subr.bf16.mxu0 %v10138_v24  ;;  %11097 = vst [vmem:[#allocation31_spill] sm:$0xff] %v10162_v25  ;;  %v5236_v24 = vld [vmem:[%s10895_s10 + $0x40] sm:$0xff]  ;;  %v7051_v30 = vld [vmem:[%s10893_s8 + $0x1cc] ss:$16 sps:$4 sm:$0xff]  }
 0x666   :  { %5671 = vmatpush1.bf16.msra.mxu1 %v7048_v17  ;;  %v7050_v17 = vld [vmem:[%s10893_s8 + $0x1a8] ss:$16 sps:$4 sm:$0xff]  }
 0x667   :  { %5672 = vmatprep.subr.bf16.mxu1 %v7049_v1  ;;  %v10186_v1 = vpack.c.bf16 %v5253_v0, %v5252_v35  ;;  %v5255_v35 = vld [vmem:[%s10895_s10 + $0xd8] sm:$0xff]  ;;  %v10204_v0 = vpack.c.bf16 %v5237_v8, %v5236_v24  ;;  %v5256_v24 = vld [vmem:[%s10895_s10 + $0xe0] sm:$0xff] }
 0x668   :  { %6464 = vmatpush3.bf16.msra.mxu0 %v10156_v54  ;;  %v5239_v54 = vld [vmem:[%s10895_s10 + $0x58] sm:$0xff] }
 0x669   :  { %6466 = vmatprep.subr.bf16.mxu0 %v10162_v25  ;;  %11098 = vst [vmem:[#allocation32_spill] sm:$0xff] %v10186_v1  ;;  %11099 = vst [vmem:[#allocation33_spill] sm:$0xff] %v10204_v0  ;;  %v5238_v25 = vld [vmem:[%s10895_s10 + $0x50] sm:$0xff]  ;;  %v7053_v8 = vld [vmem:[%s10893_s8 + $0x1ec] ss:$16 sps:$4 sm:$0xff]  }
 0x66a   :  { %5673 = vmatpush1.bf16.msra.mxu1 %v7050_v17  ;;  %v7052_v17 = vld [vmem:[%s10893_s8 + $0x1c8] ss:$16 sps:$4 sm:$0xff]  }
 0x66b   :  { %5674 = vmatprep.subr.bf16.mxu1 %v7051_v30  ;;  %v10210_v30 = vpack.c.bf16 %v5255_v35, %v5254_v29  ;;  %v5257_v29 = vld [vmem:[%s10895_s10 + $0xe8] sm:$0xff]  ;;  %v10228_v35 = vpack.c.bf16 %v5239_v54, %v5238_v25 }
 0x66c   :  { %6468 = vmatpush3.bf16.msra.mxu0 %v10180_v32  ;;  %v7055_v54 = vld [vmem:[%s10893_s8 + $0x20c] ss:$16 sps:$4 sm:$0xff]   ;;  %v10243_v25 = vpack.c.bf16 %v5257_v29, %v5256_v24 }
 0x66d   :  { %6470 = vmatprep.subr.bf16.mxu0 %v10186_v1  ;;  %11100 = vst [vmem:[#allocation34_spill] sm:$0xff] %v10210_v30  ;;  %v5241_v1 = vld [vmem:[%s10895_s10 + $0x68] sm:$0xff]  ;;  %v5259_v29 = vld [vmem:[%s10895_s10 + $0xf8] sm:$0xff] }
 0x66e   :  { %5675 = vmatpush1.bf16.msra.mxu1 %v7052_v17  ;;  %v7054_v17 = vld [vmem:[%s10893_s8 + $0x1e8] ss:$16 sps:$4 sm:$0xff]   ;;  %v7059_v24 = vld [vmem:[%s10893_s8 + $0x24c] ss:$16 sps:$4 sm:$0xff]  }
 0x66f   :  { %5676 = vmatprep.subr.bf16.mxu1 %v7053_v8  ;;  %v5240_v8 = vld [vmem:[%s10895_s10 + $0x60] sm:$0xff] }
 0x670   :  { %6472 = vmatpush3.bf16.msra.mxu0 %v10204_v0  ;;  %v7057_v0 = vld [vmem:[%s10893_s8 + $0x22c] ss:$16 sps:$4 sm:$0xff]  }
 0x671   :  { %6474 = vmatprep.subr.bf16.mxu0 %v10210_v30  ;;  %v7056_v30 = vld [vmem:[%s10893_s8 + $0x208] ss:$16 sps:$4 sm:$0xff]  }
 0x672   :  { %5677 = vmatpush1.bf16.msra.mxu1 %v7054_v17  ;;  %v10247_v17 = vpack.c.bf16 %v5241_v1, %v5240_v8  ;;  %v7058_v1 = vld [vmem:[%s10893_s8 + $0x228] ss:$16 sps:$4 sm:$0xff]  }
 0x673   :  { %5699 = vmatprep.subr.bf16.mxu1 %v7055_v54 }
 0x674   :  { %6476 = vmatpush3.bf16.msra.mxu0 %v10228_v35 }
 0x675   :  { %5679 = vmatmul.mubr.bf16.vlgmr.msra.gmra.mrb[32].mxu1 %v9434_v63  ;;  %6478 = vmatprep.subr.bf16.mxu0 %v10243_v25 }
 0x676   :  { %5688 = vmatprep.mubr.bf16.mxu1 %v9832_v62  ;;  %5700 = vmatpush1.bf16.msra.mxu1 %v7056_v30  ;;  %v5258_v30 = vld [vmem:[%s10895_s10 + $0xf0] sm:$0xff] }
 0x677   :  { %5701 = vmatprep.subr.bf16.mxu1 %v7057_v0  ;;  %v7060_v0 = vld [vmem:[%s10893_s8 + $0x248] ss:$16 sps:$4 sm:$0xff]   ;;  %v10281_v8 = vpack.c.bf16 %v5259_v29, %v5258_v30  ;;  %v5288_v30 = vld [vmem:[%s10895_s10 + $0x1e0] sm:$0xff] }
 0x678   :  { %6480 = vmatpush3.bf16.msra.mxu0 %v10247_v17  ;;  %v5289_v29 = vld [vmem:[%s10895_s10 + $0x1e8] sm:$0xff] }
 0x679   :  { %6482 = vmatprep.subr.bf16.mxu0 %v10281_v8 }
 0x67a   :  { %5702 = vmatpush1.bf16.msra.mxu1 %v7058_v1 }
 0x67b   :  { %5703 = vmatprep.subr.bf16.mxu1 %v7059_v24  ;;  %v5270_v24 = vld [vmem:[%s10895_s10 + $0x150] sm:$0xff] }
 0x67d   :  { %5689 = vmatmul.mubr.bf16.gmra.mrb[36].mxu1 %v9866_v40 }
 0x67e   :  { %5704 = vmatpush1.bf16.msra.mxu1 %v7060_v0  ;;  %5731 = vmatprep.mubr.bf16.mxu1 %v9452_v50  ;;  %v5271_v0 = vld [vmem:[%s10895_s10 + $0x158] sm:$0xff] }
 0x67f   :  { %5705 = vmatprep.subr.bf16.mxu1 %v9385_v55  ;;  %v5242_v55 = vld [vmem:[%s10895_s10 + $0x70] sm:$0xff] }
 0x682   :  { %5706 = vmatpush1.bf16.msra.mxu1 %v9405_v37  ;;  %v5243_v37 = vld [vmem:[%s10895_s10 + $0x78] sm:$0xff] }
 0x683   :  { %5707 = vmatprep.subr.bf16.mxu1 %v9416_v4  ;;  %v10291_v4 = vpack.c.bf16 %v5243_v37, %v5242_v55  ;;  %v10444_v55 = vpack.c.bf16 %v5271_v0, %v5270_v24  ;;  %v10446_v37 = vpack.c.bf16 %v5289_v29, %v5288_v30  ;;  %v10502_v0 = vld [vmem:[%s10894_s9 + $0x40] sm:$0xff] }
 0x685   :  { %6484 = vmatpush3.bf16.msra.mxu0 %v10291_v4 }
 0x686   :  { %5708 = vmatpush1.bf16.msra.mxu1 %v9432_v13  ;;  %v5276_v13 = vld [vmem:[%s10895_s10 + $0x180] sm:$0xff] }
 0x687   :  { %5709 = vmatprep.subr.bf16.mxu1 %v9444_v16  ;;  %v5277_v16 = vld [vmem:[%s10895_s10 + $0x188] sm:$0xff] }
 0x68a   :  { %5710 = vmatpush1.bf16.msra.mxu1 %v9458_v58  ;;  %v6485_v58 = vpack.c.bf16 %v5277_v16, %v5276_v13  ;;  %v5272_v13 = vld [vmem:[%s10895_s10 + $0x160] sm:$0xff]  ;;  %v5273_v16 = vld [vmem:[%s10895_s10 + $0x168] sm:$0xff] }
 0x68b   :  { %5711 = vmatprep.subr.bf16.mxu1 %v9469_v20  ;;  %v11101_v20 = vld [vmem:[#allocation11_spill] sm:$0xff] }
 0x68c   :  { %6486 = vmatprep.subr.bf16.mxu0 %v6485_v58 }
 0x68e   :  { %5712 = vmatpush1.bf16.msra.mxu1 %v9484_v2  ;;  %v11102_v2 = vld [vmem:[#allocation12_spill] sm:$0xff] }
 0x68f   :  { %5713 = vmatprep.subr.bf16.mxu1 %v9493_v34  ;;  %v11103_v34 = vld [vmem:[#allocation15_spill] sm:$0xff] }
 0x692   :  { %5714 = vmatpush1.bf16.msra.mxu1 %v9502_v56  ;;  %v11104_v56 = vld [vmem:[#allocation13_spill] sm:$0xff] }
 0x693   :  { %5715 = vmatprep.subr.bf16.mxu1 %v9515_v36  ;;  %v5260_v36 = vld [vmem:[%s10895_s10 + $0x100] sm:$0xff] }
 0x696   :  { %5716 = vmatpush1.bf16.msra.mxu1 %v9526_v26  ;;  %v5261_v26 = vld [vmem:[%s10895_s10 + $0x108] sm:$0xff] }
 0x697   :  { %5717 = vmatprep.subr.bf16.mxu1 %v9537_v11  ;;  %v5278_v11 = vld [vmem:[%s10895_s10 + $0x190] sm:$0xff] }
 0x69a   :  { %5718 = vmatpush1.bf16.msra.mxu1 %v9554_v6  ;;  %v5279_v6 = vld [vmem:[%s10895_s10 + $0x198] sm:$0xff] }
 0x69b   :  { %5719 = vmatprep.subr.bf16.mxu1 %v9568_v51  ;;  %v10351_v51 = vpack.c.bf16 %v5261_v26, %v5260_v36  ;;  %v5274_v36 = vld [vmem:[%s10895_s10 + $0x170] sm:$0xff]  ;;  %v5275_v26 = vld [vmem:[%s10895_s10 + $0x178] sm:$0xff] }
 0x69e   :  { %5720 = vmatpush1.bf16.msra.mxu1 %v9598_v22  ;;  %v11105_v22 = vld [vmem:[#allocation14_spill] sm:$0xff] }
 0x69f   :  { %5721 = vmatprep.subr.bf16.mxu1 %v9616_v43  ;;  %v10354_v43 = vpack.c.bf16 %v5279_v6, %v5278_v11  ;;  %v6515_v11 = vpack.c.bf16 %v5275_v26, %v5274_v36  ;;  %v10471_v6 = vld [vmem:[%s10894_s9 + $0x8] sm:$0xff] }
 0x6a2   :  { %5722 = vmatpush1.bf16.msra.mxu1 %v9650_v57  ;;  %v5262_v57 = vld [vmem:[%s10895_s10 + $0x110] sm:$0xff] }
 0x6a3   :  { %5723 = vmatprep.subr.bf16.mxu1 %v11101_v20  ;;  %v5291_v20 = vld [vmem:[%s10895_s10 + $0x1f8] sm:$0xff] }
 0x6a6   :  { %5724 = vmatpush1.bf16.msra.mxu1 %v11102_v2  ;;  %v6511_v2 = vpack.c.bf16 %v5273_v16, %v5272_v13 }
 0x6a7   :  { %5725 = vmatprep.subr.bf16.mxu1 %v11103_v34 }
 0x6aa   :  { %5726 = vmatpush1.bf16.msra.mxu1 %v9721_v10  ;;  %v5263_v10 = vld [vmem:[%s10895_s10 + $0x118] sm:$0xff] }
 0x6ab   :  { %5727 = vmatprep.subr.bf16.mxu1 %v9730_v44  ;;  %v5280_v44 = vld [vmem:[%s10895_s10 + $0x1a0] sm:$0xff] }
 0x6ae   :  { %5728 = vmatpush1.bf16.msra.mxu1 %v9742_v21  ;;  %v5281_v21 = vld [vmem:[%s10895_s10 + $0x1a8] sm:$0xff] }
 0x6af   :  { %5729 = vmatprep.subr.bf16.mxu1 %v9757_v41  ;;  %v10371_v41 = vpack.c.bf16 %v5263_v10, %v5262_v57  ;;  %v10476_v10 = vld [vmem:[%s10894_s9] sm:$0xff] }
 0x6b2   :  { %5730 = vmatpush1.bf16.msra.mxu1 %v9773_v52  ;;  %v10373_v52 = vpack.c.bf16 %v5281_v21, %v5280_v44 }
 0x6b3   :  { %5752 = vmatprep.subr.bf16.mxu1 %v9786_v42  ;;  %v5264_v42 = vld [vmem:[%s10895_s10 + $0x120] sm:$0xff] }
 0x6b5   :  { %5732 = vmatmul.mubr.bf16.vlgmr.msra.gmra.mrb[32].mxu1 %v11104_v56 }
 0x6b6   :  { %5741 = vmatprep.mubr.bf16.mxu1 %v9893_v61  ;;  %5753 = vmatpush1.bf16.msra.mxu1 %v9802_v60  ;;  %v5265_v60 = vld [vmem:[%s10895_s10 + $0x128] sm:$0xff] }
 0x6b7   :  { %5754 = vmatprep.subr.bf16.mxu1 %v9818_v38  ;;  %v5282_v38 = vld [vmem:[%s10895_s10 + $0x1b0] sm:$0xff] }
 0x6ba   :  { %5755 = vmatpush1.bf16.msra.mxu1 %v9840_v27  ;;  %v5283_v27 = vld [vmem:[%s10895_s10 + $0x1b8] sm:$0xff] }
 0x6bb   :  { %5756 = vmatprep.subr.bf16.mxu1 %v9854_v53  ;;  %v10389_v53 = vpack.c.bf16 %v5265_v60, %v5264_v42  ;;  %v10481_v60 = vld [vmem:[%s10894_s9 + $0x28] sm:$0xff] }
 0x6bd   :  { %5742 = vmatmul.mubr.bf16.gmra.mrb[36].mxu1 %v9912_v15 }
 0x6be   :  { %5757 = vmatpush1.bf16.msra.mxu1 %v9874_v47  ;;  %5784 = vmatprep.mubr.bf16.mxu1 %v11083_v39  ;;  %v10392_v47 = vpack.c.bf16 %v5283_v27, %v5282_v38 }
 0x6bf   :  { %5758 = vmatprep.subr.bf16.mxu1 %v9890_v23  ;;  %v5266_v23 = vld [vmem:[%s10895_s10 + $0x130] sm:$0xff] }
 0x6c2   :  { %5759 = vmatpush1.bf16.msra.mxu1 %v9910_v46  ;;  %v5267_v46 = vld [vmem:[%s10895_s10 + $0x138] sm:$0xff] }
 0x6c3   :  { %5760 = vmatprep.subr.bf16.mxu1 %v9924_v14  ;;  %v5284_v14 = vld [vmem:[%s10895_s10 + $0x1c0] sm:$0xff] }
 0x6c6   :  { %5761 = vmatpush1.bf16.msra.mxu1 %v9938_v19  ;;  %v5285_v19 = vld [vmem:[%s10895_s10 + $0x1c8] sm:$0xff] }
 0x6c7   :  { %5762 = vmatprep.subr.bf16.mxu1 %v9952_v3  ;;  %v10408_v3 = vpack.c.bf16 %v5267_v46, %v5266_v23 }
 0x6ca   :  { %5763 = vmatpush1.bf16.msra.mxu1 %v9964_v28  ;;  %v10410_v28 = vpack.c.bf16 %v5285_v19, %v5284_v14 }
 0x6cb   :  { %5764 = vmatprep.subr.bf16.mxu1 %v9976_v33  ;;  %v5268_v33 = vld [vmem:[%s10895_s10 + $0x140] sm:$0xff] }
 0x6ce   :  { %5765 = vmatpush1.bf16.msra.mxu1 %v9988_v12  ;;  %v5269_v12 = vld [vmem:[%s10895_s10 + $0x148] sm:$0xff] }
 0x6cf   :  { %5766 = vmatprep.subr.bf16.mxu1 %v10000_v45  ;;  %v5286_v45 = vld [vmem:[%s10895_s10 + $0x1d0] sm:$0xff]  ;;  %v10426_v54 = vpack.c.bf16 %v5269_v12, %v5268_v33  ;;  %v10488_v33 = vld [vmem:[%s10894_s9 + $0x20] sm:$0xff] }
 0x6d2   :  { %5767 = vmatpush1.bf16.msra.mxu1 %v10012_v31  ;;  %v5287_v31 = vld [vmem:[%s10895_s10 + $0x1d8] sm:$0xff] }
 0x6d3   :  { %6550 = vmatprep.subr.bf16.mxu1 %v6485_v58  ;;  %v10428_v1 = vpack.c.bf16 %v5287_v31, %v5286_v45  ;;  %v5290_v58 = vld [vmem:[%s10895_s10 + $0x1f0] sm:$0xff]  ;;  %v10497_v31 = vld [vmem:[%s10894_s9 + $0x48] sm:$0xff] }
 0x6d4   :  { %v6513_v34 = vpack.c.bf16 %v5291_v20, %v5290_v58 }
 0x6d5   :  { %5785 = vmatmul.mubr.bf16.vlgmr.msra.gmra.mrb[32].mxu1 %v11105_v22 }
 0x6d6   :  { %5794 = vmatprep.mubr.bf16.mxu1 %v11083_v39  ;;  %6552 = vmatpush3.bf16.msra.mxu1 %v10351_v51 }
 0x6d7   :  { %6554 = vmatprep.subr.bf16.mxu1 %v10354_v43 }
 0x6da   :  { %6556 = vmatpush3.bf16.msra.mxu1 %v10371_v41 }
 0x6db   :  { %6558 = vmatprep.subr.bf16.mxu1 %v10373_v52 }
 0x6dd   :  { %5795 = vmatmul.mubr.bf16.gmra.mrb[36].mxu1 %v9940_v59 }
 0x6de   :  { %6560 = vmatpush3.bf16.msra.mxu1 %v10389_v53 }
 0x6df   :  { %6562 = vmatprep.subr.bf16.mxu1 %v10392_v47 }
 0x6e2   :  { %6564 = vmatpush3.bf16.msra.mxu1 %v10408_v3 }
 0x6e3   :  { %6566 = vmatprep.subr.bf16.mxu1 %v10410_v28 }
 0x6e6   :  { %6568 = vmatpush3.bf16.msra.mxu1 %v10426_v54 }
 0x6e7   :  { %6570 = vmatprep.subr.bf16.mxu1 %v10428_v1 }
 0x6ea   :  { %6572 = vmatpush3.bf16.msra.mxu1 %v10444_v55 }
 0x6eb   :  { %6574 = vmatprep.subr.bf16.mxu1 %v10446_v37 }
 0x6ee   :  { %6576 = vmatpush3.bf16.msra.mxu1 %v6511_v2 }
 0x6ef   :  { %6578 = vmatprep.subr.bf16.mxu1 %v6513_v34 }
 0x6f2   :  { %6580 = vmatpush3.bf16.msra.mxu1 %v6515_v11 }
 0x708   :  { %v5018_v57 = vpop.f32.mrb[36].mxu0  ;;  %v5177_v44 = vpop.f32.mrb[24].mxu1 }
 0x709   :  { %v5020_v21 = vpop.f32.mrb[37].mxu0  ;;  %v5179_v42 = vpop.f32.mrb[25].mxu1  ;;  %v5212_v46 = vmul.f32 %v10476_v10, %v5018_v57  ;;  %v10516_v57 = vld [vmem:[%s10894_s9 + $0x60] sm:$0xff] }
 0x70a   :  { %v5213_v38 = vmul.f32 %v10471_v6, %v5020_v21  ;;  %v5022_v27 = vpop.f32.mrb[38].mxu0  ;;  %v5181_v23 = vpop.f32.mrb[26].mxu1 }
 0x70b   :  { %v5024_v14 = vpop.f32.mrb[39].mxu0  ;;  %v5183_v19 = vpop.f32.mrb[27].mxu1  ;;  %v5216_v45 = vmul.f32 %v10488_v33, %v5022_v27  ;;  %v7064_v27 = vld [vmem:[%s10893_s8 + $0x20] ss:$16 sps:$4 sm:$0xff]  }
 0x70c   :  { %v5217_v12 = vmul.f32 %v10481_v60, %v5024_v14  ;;  %5356 = vmatprep.mubr.f32.mxu0 %v5213_v38  ;;  %v10587_v14 = vld [vmem:[%s10894_s9 + $0x70] sm:$0xff] }
 0x70d   :  { %5357 = vmatmul.mubr.f32.vlgmr.msra.gmra.mrb[44].mxu0 %v5212_v46  ;;  %v7065_v46 = vld [vmem:[%s10893_s8 + $0x44] ss:$16 sps:$4 sm:$0xff]  }
 0x70e   :  { %6488 = vmatpush3.bf16.msra.mxu0 %v10351_v51  ;;  %5361 = vmatprep.mubr.f32.mxu0 %v5217_v12  ;;  %v10507_v51 = vld [vmem:[%s10894_s9 + $0x68] sm:$0xff]  ;;  %v7066_v12 = vld [vmem:[%s10893_s8 + $0x40] ss:$16 sps:$4 sm:$0xff]  }
 0x70f   :  { %6490 = vmatprep.subr.bf16.mxu0 %v10354_v43 }
 0x710   :  { %v5028_v24 = vpop.f32.mrb[40].mxu0  ;;  %v5187_v30 = vpop.f32.mrb[28].mxu1 }
 0x711   :  { %v5030_v29 = vpop.f32.mrb[41].mxu0  ;;  %v5189_v13 = vpop.f32.mrb[29].mxu1  ;;  %5362 = vmatmul.mubr.f32.gmra.mrb[46].mxu0 %v5216_v45  ;;  %v5220_v20 = vmul.f32 %v10502_v0, %v5028_v24  ;;  %v7067_v24 = vld [vmem:[%s10893_s8 + $0x64] ss:$16 sps:$4 sm:$0xff]  }
 0x712   :  { %v5221_v43 = vmul.f32 %v10497_v31, %v5030_v29  ;;  %6492 = vmatpush3.bf16.msra.mxu0 %v10371_v41  ;;  %v5032_v16 = vpop.f32.mrb[42].mxu0  ;;  %v5191_v58 = vpop.f32.mrb[30].mxu1  ;;  %v10522_v41 = vld [vmem:[%s10894_s9 + $0x18] sm:$0xff]  ;;  %v7069_v29 = vld [vmem:[%s10893_s8 + $0x84] ss:$16 sps:$4 sm:$0xff]  }
 0x713   :  { %v5034_v36 = vpop.f32.mrb[43].mxu0  ;;  %v5193_v26 = vpop.f32.mrb[31].mxu1  ;;  %6494 = vmatprep.subr.bf16.mxu0 %v10373_v52  ;;  %v5224_v38 = vmul.f32 %v10516_v57, %v5032_v16  ;;  %v5215_v52 = vmul.f32 %v10522_v41, %v5179_v42  ;;  %v10575_v42 = vld [vmem:[%s10894_s9 + $0x78] sm:$0xff]  ;;  %v5226_v45 = vmul.f32 %v10587_v14, %v5191_v58  ;;  %v7072_v16 = vld [vmem:[%s10893_s8 + $0xa0] ss:$16 sps:$4 sm:$0xff]  }
 0x714   :  { %v5225_v21 = vmul.f32 %v10507_v51, %v5034_v36  ;;  %5366 = vmatprep.mubr.f32.mxu0 %v5221_v43  ;;  %v7071_v43 = vld [vmem:[%s10893_s8 + $0xa4] ss:$16 sps:$4 sm:$0xff]   ;;  %v7074_v58 = vld [vmem:[%s10893_s8 + $0xc0] ss:$16 sps:$4 sm:$0xff]  }
 0x715   :  { %5367 = vmatmul.mubr.f32.gmra.mrb[48].mxu0 %v5220_v20  ;;  %v7075_v20 = vld [vmem:[%s10893_s8 + $0xe4] ss:$16 sps:$4 sm:$0xff]   ;;  %v7076_v36 = vld [vmem:[%s10893_s8 + $0xe0] ss:$16 sps:$4 sm:$0xff]  }
 0x716   :  { %6496 = vmatpush3.bf16.msra.mxu0 %v10389_v53  ;;  %5371 = vmatprep.mubr.f32.mxu0 %v5225_v21  ;;  %v10537_v53 = vld [vmem:[%s10894_s9 + $0x10] sm:$0xff] }
 0x717   :  { %6498 = vmatprep.subr.bf16.mxu0 %v10392_v47  ;;  %v10542_v47 = vld [vmem:[%s10894_s9 + $0x38] sm:$0xff]  ;;  %v7078_v21 = vld [vmem:[%s10893_s8 + $0x100] ss:$16 sps:$4 sm:$0xff]  }
 0x719   :  { %5372 = vmatmul.mubr.f32.gmra.mrb[50].mxu0 %v5224_v38  ;;  %v7079_v38 = vld [vmem:[%s10893_s8 + $0x124] ss:$16 sps:$4 sm:$0xff]  }
 0x71a   :  { %6500 = vmatpush3.bf16.msra.mxu0 %v10408_v3  ;;  %5441 = vmatprep.mubr.f32.mxu0 %v5215_v52  ;;  %v5214_v3 = vmul.f32 %v10537_v53, %v5177_v44  ;;  %v7080_v52 = vld [vmem:[%s10893_s8 + $0x120] ss:$16 sps:$4 sm:$0xff]  }
 0x71b   :  { %6502 = vmatprep.subr.bf16.mxu0 %v10410_v28  ;;  %v7061_v28 = vld [vmem:[%s10893_s8 + $0x4] ss:$16 sps:$4 sm:$0xff]  }
 0x71e   :  { %6504 = vmatpush3.bf16.msra.mxu0 %v10426_v54  ;;  %v10551_v54 = vld [vmem:[%s10894_s9 + $0x30] sm:$0xff] }
 0x71f   :  { %6506 = vmatprep.subr.bf16.mxu0 %v10428_v1  ;;  %v5219_v1 = vmul.f32 %v10542_v47, %v5183_v19  ;;  %v5227_v19 = vmul.f32 %v10575_v42, %v5193_v26  ;;  %v7077_v26 = vld [vmem:[%s10893_s8 + $0x104] ss:$16 sps:$4 sm:$0xff]  }
 0x722   :  { %6508 = vmatpush3.bf16.msra.mxu0 %v10444_v55  ;;  %v10557_v55 = vld [vmem:[%s10894_s9 + $0x58] sm:$0xff] }
 0x723   :  { %6510 = vmatprep.subr.bf16.mxu0 %v10446_v37  ;;  %v7062_v37 = vld [vmem:[%s10893_s8] ss:$16 sps:$4 sm:$0xff]   ;;  %v5223_v44 = vmul.f32 %v10557_v55, %v5189_v13 }
 0x724   :  { %v7070_v13 = vld [vmem:[%s10893_s8 + $0x80] ss:$16 sps:$4 sm:$0xff]  }
 0x726   :  { %6512 = vmatpush3.bf16.msra.mxu0 %v6511_v2  ;;  %v5218_v2 = vmul.f32 %v10551_v54, %v5181_v23 }
 0x727   :  { %6514 = vmatprep.subr.bf16.mxu0 %v6513_v34  ;;  %v7063_v34 = vld [vmem:[%s10893_s8 + $0x24] ss:$16 sps:$4 sm:$0xff]  }
 0x72a   :  { %6516 = vmatpush3.bf16.msra.mxu0 %v6515_v11  ;;  %v10569_v11 = vld [vmem:[%s10894_s9 + $0x50] sm:$0xff] }
 0x72b   :  { %5487 = vmatprep.subr.bf16.mxu0 %v7061_v28  ;;  %v5222_v23 = vmul.f32 %v10569_v11, %v5187_v30  ;;  %v7068_v30 = vld [vmem:[%s10893_s8 + $0x60] ss:$16 sps:$4 sm:$0xff]  }
 0x72c   :  { %v7082_v28 = vld [vmem:[%s10893_s8 + $0x140] ss:$16 sps:$4 sm:$0xff]  }
 0x72d   :  { %5442 = vmatmul.mubr.f32.vlgmr.msra.gmra.mrb[52].mxu0 %v5214_v3  ;;  %v7081_v3 = vld [vmem:[%s10893_s8 + $0x144] ss:$16 sps:$4 sm:$0xff]  }
 0x72e   :  { %5446 = vmatprep.mubr.f32.mxu0 %v5219_v1  ;;  %5488 = vmatpush1.bf16.msra.mxu0 %v7062_v37  ;;  %v7083_v1 = vld [vmem:[%s10893_s8 + $0x164] ss:$16 sps:$4 sm:$0xff]   ;;  %v7084_v37 = vld [vmem:[%s10893_s8 + $0x160] ss:$16 sps:$4 sm:$0xff]  }
 0x72f   :  { %5489 = vmatprep.subr.bf16.mxu0 %v7063_v34  ;;  %v7086_v34 = vld [vmem:[%s10893_s8 + $0x180] ss:$16 sps:$4 sm:$0xff]  }
 0x731   :  { %5447 = vmatmul.mubr.f32.gmra.mrb[54].mxu0 %v5218_v2  ;;  %v7085_v2 = vld [vmem:[%s10893_s8 + $0x184] ss:$16 sps:$4 sm:$0xff]  }
 0x732   :  { %5451 = vmatprep.mubr.f32.mxu0 %v5223_v44  ;;  %5490 = vmatpush1.bf16.msra.mxu0 %v7064_v27  ;;  %v7087_v44 = vld [vmem:[%s10893_s8 + $0x1a4] ss:$16 sps:$4 sm:$0xff]   ;;  %v7088_v27 = vld [vmem:[%s10893_s8 + $0x1a0] ss:$16 sps:$4 sm:$0xff]  }
 0x733   :  { %5491 = vmatprep.subr.bf16.mxu0 %v7065_v46  ;;  %v7090_v46 = vld [vmem:[%s10893_s8 + $0x1c0] ss:$16 sps:$4 sm:$0xff]  }
 0x735   :  { %5452 = vmatmul.mubr.f32.gmra.mrb[56].mxu0 %v5222_v23  ;;  %v7089_v23 = vld [vmem:[%s10893_s8 + $0x1c4] ss:$16 sps:$4 sm:$0xff]  }
 0x736   :  { %5456 = vmatprep.mubr.f32.mxu0 %v5227_v19  ;;  %5492 = vmatpush1.bf16.msra.mxu0 %v7066_v12  ;;  %v7091_v19 = vld [vmem:[%s10893_s8 + $0x1e4] ss:$16 sps:$4 sm:$0xff]   ;;  %v7092_v12 = vld [vmem:[%s10893_s8 + $0x1e0] ss:$16 sps:$4 sm:$0xff]  }
 0x737   :  { %5493 = vmatprep.subr.bf16.mxu0 %v7067_v24  ;;  %v7094_v24 = vld [vmem:[%s10893_s8 + $0x200] ss:$16 sps:$4 sm:$0xff]  }
 0x739   :  { %5457 = vmatmul.mubr.f32.gmra.mrb[58].mxu0 %v5226_v45  ;;  %v7093_v45 = vld [vmem:[%s10893_s8 + $0x204] ss:$16 sps:$4 sm:$0xff]  }
 0x73a   :  { %5494 = vmatpush1.bf16.msra.mxu0 %v7068_v30  ;;  %5519 = vmatprep.mubr.bf16.mxu0 %v9407_v5  ;;  %v7073_v5 = vld [vmem:[%s10893_s8 + $0xc4] ss:$16 sps:$4 sm:$0xff]  }
 0x73b   :  { %5495 = vmatprep.subr.bf16.mxu0 %v7069_v29  ;;  %v7095_v30 = vld [vmem:[%s10893_s8 + $0x224] ss:$16 sps:$4 sm:$0xff]   ;;  %v7096_v29 = vld [vmem:[%s10893_s8 + $0x220] ss:$16 sps:$4 sm:$0xff]  }
 0x73e   :  { %5496 = vmatpush1.bf16.msra.mxu0 %v7070_v13  ;;  %v7099_v13 = vld [vmem:[%s10893_s8 + $0x264] ss:$16 sps:$4 sm:$0xff]  }
 0x73f   :  { %5497 = vmatprep.subr.bf16.mxu0 %v7071_v43  ;;  %v7100_v43 = vld [vmem:[%s10893_s8 + $0x260] ss:$16 sps:$4 sm:$0xff]  }
 0x742   :  { %5498 = vmatpush1.bf16.msra.mxu0 %v7072_v16  ;;  %v7102_v16 = vld [vmem:[%s10893_s8 + $0x280] ss:$16 sps:$4 sm:$0xff]  }
 0x743   :  { %5499 = vmatprep.subr.bf16.mxu0 %v7073_v5  ;;  %v7104_v5 = vld [vmem:[%s10893_s8 + $0x2a0] ss:$16 sps:$4 sm:$0xff]  }
 0x746   :  { %5500 = vmatpush1.bf16.msra.mxu0 %v7074_v58  ;;  %v7105_v58 = vld [vmem:[%s10893_s8 + $0x2c4] ss:$16 sps:$4 sm:$0xff]  }
 0x747   :  { %5501 = vmatprep.subr.bf16.mxu0 %v7075_v20  ;;  %v7106_v20 = vld [vmem:[%s10893_s8 + $0x2c0] ss:$16 sps:$4 sm:$0xff]  }
 0x74a   :  { %5502 = vmatpush1.bf16.msra.mxu0 %v7076_v36  ;;  %v7107_v36 = vld [vmem:[%s10893_s8 + $0x2e4] ss:$16 sps:$4 sm:$0xff]  }
 0x74b   :  { %5503 = vmatprep.subr.bf16.mxu0 %v7077_v26  ;;  %v7108_v26 = vld [vmem:[%s10893_s8 + $0x2e0] ss:$16 sps:$4 sm:$0xff]  }
 0x74e   :  { %5504 = vmatpush1.bf16.msra.mxu0 %v7078_v21  ;;  %v7109_v21 = vld [vmem:[%s10893_s8 + $0x304] ss:$16 sps:$4 sm:$0xff]  }
 0x74f   :  { %5505 = vmatprep.subr.bf16.mxu0 %v7079_v38  ;;  %v7110_v38 = vld [vmem:[%s10893_s8 + $0x300] ss:$16 sps:$4 sm:$0xff]  }
 0x752   :  { %5506 = vmatpush1.bf16.msra.mxu0 %v7080_v52  ;;  %v7111_v52 = vld [vmem:[%s10893_s8 + $0x324] ss:$16 sps:$4 sm:$0xff]  }
 0x753   :  { %5507 = vmatprep.subr.bf16.mxu0 %v7081_v3  ;;  %v7112_v3 = vld [vmem:[%s10893_s8 + $0x320] ss:$16 sps:$4 sm:$0xff]  }
 0x756   :  { %5508 = vmatpush1.bf16.msra.mxu0 %v7082_v28  ;;  %v7113_v28 = vld [vmem:[%s10893_s8 + $0x344] ss:$16 sps:$4 sm:$0xff]  }
 0x757   :  { %5509 = vmatprep.subr.bf16.mxu0 %v7083_v1  ;;  %v7114_v1 = vld [vmem:[%s10893_s8 + $0x340] ss:$16 sps:$4 sm:$0xff]  }
 0x75a   :  { %5510 = vmatpush1.bf16.msra.mxu0 %v7084_v37  ;;  %v7115_v37 = vld [vmem:[%s10893_s8 + $0x364] ss:$16 sps:$4 sm:$0xff]  }
 0x75b   :  { %5511 = vmatprep.subr.bf16.mxu0 %v7085_v2  ;;  %v7116_v2 = vld [vmem:[%s10893_s8 + $0x360] ss:$16 sps:$4 sm:$0xff]  }
 0x75e   :  { %5512 = vmatpush1.bf16.msra.mxu0 %v7086_v34  ;;  %v7117_v34 = vld [vmem:[%s10893_s8 + $0x384] ss:$16 sps:$4 sm:$0xff]  }
 0x75f   :  { %5513 = vmatprep.subr.bf16.mxu0 %v7087_v44  ;;  %v7118_v44 = vld [vmem:[%s10893_s8 + $0x380] ss:$16 sps:$4 sm:$0xff]  }
 0x762   :  { %5514 = vmatpush1.bf16.msra.mxu0 %v7088_v27  ;;  %v7119_v27 = vld [vmem:[%s10893_s8 + $0x3a4] ss:$16 sps:$4 sm:$0xff]  }
 0x763   :  { %5515 = vmatprep.subr.bf16.mxu0 %v7089_v23  ;;  %v7120_v23 = vld [vmem:[%s10893_s8 + $0x3a0] ss:$16 sps:$4 sm:$0xff]  }
 0x766   :  { %5516 = vmatpush1.bf16.msra.mxu0 %v7090_v46  ;;  %v7121_v46 = vld [vmem:[%s10893_s8 + $0x3c4] ss:$16 sps:$4 sm:$0xff]  }
 0x767   :  { %5517 = vmatprep.subr.bf16.mxu0 %v7091_v19  ;;  %v7122_v19 = vld [vmem:[%s10893_s8 + $0x3c0] ss:$16 sps:$4 sm:$0xff]  }
 0x76a   :  { %5518 = vmatpush1.bf16.msra.mxu0 %v7092_v12  ;;  %v7123_v12 = vld [vmem:[%s10893_s8 + $0x3e4] ss:$16 sps:$4 sm:$0xff]  }
 0x76b   :  { %5540 = vmatprep.subr.bf16.mxu0 %v7093_v45 }
 0x76d   :  { %5520 = vmatmul.mubr.bf16.vlgmr.msra.gmra.mrb[60].mxu0 %v9434_v63  ;;  %v7097_v63 = vld [vmem:[%s10893_s8 + $0x244] ss:$16 sps:$4 sm:$0xff]  }
 0x76e   :  { %5529 = vmatprep.mubr.bf16.mxu0 %v9832_v62  ;;  %5541 = vmatpush1.bf16.msra.mxu0 %v7094_v24  ;;  %v7098_v62 = vld [vmem:[%s10893_s8 + $0x240] ss:$16 sps:$4 sm:$0xff]  }
 0x76f   :  { %5542 = vmatprep.subr.bf16.mxu0 %v7095_v30  ;;  %v7124_v30 = vld [vmem:[%s10893_s8 + $0x3e0] ss:$16 sps:$4 sm:$0xff]  }
 0x772   :  { %5543 = vmatpush1.bf16.msra.mxu0 %v7096_v29 }
 0x773   :  { %5544 = vmatprep.subr.bf16.mxu0 %v7097_v63 }
 0x775   :  { %5530 = vmatmul.mubr.bf16.gmra.mrb[64].mxu0 %v9866_v40  ;;  %v7101_v40 = vld [vmem:[%s10893_s8 + $0x284] ss:$16 sps:$4 sm:$0xff]  }
 0x776   :  { %5545 = vmatpush1.bf16.msra.mxu0 %v7098_v62  ;;  %5572 = vmatprep.mubr.bf16.mxu0 %v9452_v50  ;;  %v7103_v50 = vld [vmem:[%s10893_s8 + $0x2a4] ss:$16 sps:$4 sm:$0xff]  }
 0x777   :  { %5546 = vmatprep.subr.bf16.mxu0 %v7099_v13 }
 0x77a   :  { %5547 = vmatpush1.bf16.msra.mxu0 %v7100_v43  ;;  %v7125_v43 = vld [vmem:[%s10893_s8 + $0x404] ss:$16 sps:$4 sm:$0xff]  }
 0x77b   :  { %5548 = vmatprep.subr.bf16.mxu0 %v7101_v40 }
 0x77e   :  { %5549 = vmatpush1.bf16.msra.mxu0 %v7102_v16 }
 0x77f   :  { %5550 = vmatprep.subr.bf16.mxu0 %v7103_v50 }
 0x782   :  { %5551 = vmatpush1.bf16.msra.mxu0 %v7104_v5 }
 0x783   :  { %5552 = vmatprep.subr.bf16.mxu0 %v7105_v58 }
 0x786   :  { %5553 = vmatpush1.bf16.msra.mxu0 %v7106_v20  ;;  %v11116_v20 = vld [vmem:[#allocation26_spill] sm:$0xff] }
 0x787   :  { %5554 = vmatprep.subr.bf16.mxu0 %v7107_v36  ;;  %v11117_v36 = vld [vmem:[#allocation27_spill] sm:$0xff] }
 0x78a   :  { %5555 = vmatpush1.bf16.msra.mxu0 %v7108_v26  ;;  %v11118_v26 = vld [vmem:[#allocation28_spill] sm:$0xff] }
 0x78b   :  { %5556 = vmatprep.subr.bf16.mxu0 %v7109_v21  ;;  %v11119_v21 = vld [vmem:[#allocation29_spill] sm:$0xff] }
 0x78e   :  { %5557 = vmatpush1.bf16.msra.mxu0 %v7110_v38  ;;  %v11120_v38 = vld [vmem:[#allocation30_spill] sm:$0xff] }
 0x78f   :  { %5558 = vmatprep.subr.bf16.mxu0 %v7111_v52  ;;  %v11121_v52 = vld [vmem:[#allocation31_spill] sm:$0xff] }
 0x792   :  { %5559 = vmatpush1.bf16.msra.mxu0 %v7112_v3  ;;  %v11122_v3 = vld [vmem:[#allocation32_spill] sm:$0xff] }
 0x793   :  { %5560 = vmatprep.subr.bf16.mxu0 %v7113_v28 }
 0x796   :  { %5561 = vmatpush1.bf16.msra.mxu0 %v7114_v1 }
 0x797   :  { %5562 = vmatprep.subr.bf16.mxu0 %v7115_v37 }
 0x79a   :  { %5563 = vmatpush1.bf16.msra.mxu0 %v7116_v2 }
 0x79b   :  { %5564 = vmatprep.subr.bf16.mxu0 %v7117_v34 }
 0x79e   :  { %5565 = vmatpush1.bf16.msra.mxu0 %v7118_v44 }
 0x79f   :  { %5566 = vmatprep.subr.bf16.mxu0 %v7119_v27 }
 0x7a2   :  { %5567 = vmatpush1.bf16.msra.mxu0 %v7120_v23 }
 0x7a3   :  { %5568 = vmatprep.subr.bf16.mxu0 %v7121_v46 }
 0x7a6   :  { %5569 = vmatpush1.bf16.msra.mxu0 %v7122_v19 }
 0x7a7   :  { %5570 = vmatprep.subr.bf16.mxu0 %v7123_v12 }
 0x7a8   :  { %v5786_v45 = vpop.f32.mrb[32].mxu1 }
 0x7a9   :  { %v5788_v24 = vpop.f32.mrb[33].mxu1  ;;  %v5807_v62 = vmul.f32 %v5786_v45, %v10537_v53 }
 0x7aa   :  { %5571 = vmatpush1.bf16.msra.mxu0 %v7124_v30  ;;  %v5808_v29 = vmul.f32 %v5788_v24, %v10522_v41  ;;  %v5790_v63 = vpop.f32.mrb[34].mxu1  ;;  %v7126_v41 = vld [vmem:[%s10893_s8 + $0x400] ss:$16 sps:$4 sm:$0xff]  }
 0x7ab   :  { %v5792_v13 = vpop.f32.mrb[35].mxu1  ;;  %5593 = vmatprep.subr.bf16.mxu0 %v7125_v43  ;;  %v5811_v53 = vmul.f32 %v5790_v63, %v10551_v54  ;;  %v11107_v54 = vld [vmem:[#allocation17_spill] sm:$0xff] }
 0x7ac   :  { %v5812_v40 = vmul.f32 %v5792_v13, %v10542_v47  ;;  %5970 = vmatprep.mubr.f32.mxu1 %v5808_v29 }
 0x7ad   :  { %5573 = vmatmul.mubr.bf16.vlgmr.msra.gmra.mrb[60].mxu0 %v11104_v56  ;;  %5971 = vmatmul.mubr.f32.vlgmr.msra.gmra.mrb[40].mxu1 %v5807_v62 }
 0x7ae   :  { %5582 = vmatprep.mubr.bf16.mxu0 %v9893_v61  ;;  %5594 = vmatpush1.bf16.msra.mxu0 %v7126_v41 }
 0x7af   :  { %5975 = vmatprep.mubr.f32.mxu1 %v5812_v40  ;;  %5595 = vmatprep.subr.bf16.mxu0 %v9813_v7 }
 0x7b0   :  { %v5796_v16 = vpop.f32.mrb[36].mxu1 }
 0x7b1   :  { %v5798_v50 = vpop.f32.mrb[37].mxu1  ;;  %5976 = vmatmul.mubr.f32.gmra.mrb[42].mxu1 %v5811_v53  ;;  %v5815_v61 = vmul.f32 %v5796_v16, %v10569_v11  ;;  %v11111_v11 = vld [vmem:[#allocation21_spill] sm:$0xff] }
 0x7b2   :  { %5596 = vmatpush1.bf16.msra.mxu0 %v9830_v9  ;;  %v5816_v56 = vmul.f32 %v5798_v50, %v10557_v55  ;;  %v5800_v47 = vpop.f32.mrb[38].mxu1  ;;  %v11106_v9 = vld [vmem:[#allocation16_spill] sm:$0xff]  ;;  %v11109_v55 = vld [vmem:[#allocation19_spill] sm:$0xff] }
 0x7b3   :  { %v5802_v5 = vpop.f32.mrb[39].mxu1  ;;  %5597 = vmatprep.subr.bf16.mxu0 %v9849_v18  ;;  %v5819_v7 = vmul.f32 %v5800_v47, %v10587_v14  ;;  %v11108_v18 = vld [vmem:[#allocation18_spill] sm:$0xff]  ;;  %v11115_v14 = vld [vmem:[#allocation25_spill] sm:$0xff] }
 0x7b4   :  { %v5820_v58 = vmul.f32 %v5802_v5, %v10575_v42  ;;  %5980 = vmatprep.mubr.f32.mxu1 %v5816_v56  ;;  %v11113_v42 = vld [vmem:[#allocation23_spill] sm:$0xff] }
 0x7b5   :  { %5583 = vmatmul.mubr.bf16.gmra.mrb[64].mxu0 %v9912_v15  ;;  %5981 = vmatmul.mubr.f32.gmra.mrb[44].mxu1 %v5815_v61  ;;  %v11110_v15 = vld [vmem:[#allocation20_spill] sm:$0xff] }
 0x7b6   :  { %5598 = vmatpush1.bf16.msra.mxu0 %v9864_v49  ;;  %5985 = vmatprep.mubr.f32.mxu1 %v5820_v58  ;;  %v11112_v49 = vld [vmem:[#allocation22_spill] sm:$0xff] }
 0x7b7   :  { %5599 = vmatprep.subr.bf16.mxu0 %v9879_v48  ;;  %5625 = vmatprep.mubr.bf16.mxu0 %v11083_v39  ;;  %v11114_v48 = vld [vmem:[#allocation24_spill] sm:$0xff]  ;;  %v6013_v58 = vld [vmem:[%s10897_s12] sm:$0x3] }
 0x7b8   :  { %6015 = vrot.lane.b32.xlu1 %v6013_v58, %s7223_s28 }
 0x7b9   :  { %5986 = vmatmul.mubr.f32.gmra.mrb[46].mxu1 %v5819_v7 }
 0x7ba   :  { %5600 = vmatpush1.bf16.msra.mxu0 %v11106_v9 }
 0x7bb   :  { %5601 = vmatprep.subr.bf16.mxu0 %v11107_v54 }
 0x7be   :  { %5602 = vmatpush1.bf16.msra.mxu0 %v11108_v18 }
 0x7bf   :  { %5603 = vmatprep.subr.bf16.mxu0 %v11109_v55 }
 0x7c2   :  { %5604 = vmatpush1.bf16.msra.mxu0 %v11110_v15 }
 0x7c3   :  { %5605 = vmatprep.subr.bf16.mxu0 %v11111_v11 }
 0x7c6   :  { %5606 = vmatpush1.bf16.msra.mxu0 %v11112_v49 }
 0x7c7   :  { %5607 = vmatprep.subr.bf16.mxu0 %v11113_v42 }
 0x7ca   :  { %5608 = vmatpush1.bf16.msra.mxu0 %v11114_v48 }
 0x7cb   :  { %6518 = vmatprep.subr.bf16.mxu0 %v11115_v14 }
 0x7cd   :  { %5626 = vmatmul.mubr.bf16.vlgmr.msra.gmra.mrb[60].mxu0 %v11105_v22  ;;  %v11123_v22 = vld [vmem:[#allocation33_spill] sm:$0xff] }
 0x7ce   :  { %5635 = vmatprep.mubr.bf16.mxu0 %v11083_v39  ;;  %6520 = vmatpush3.bf16.msra.mxu0 %v11116_v20  ;;  %v11124_v39 = vld [vmem:[#allocation34_spill] sm:$0xff] }
 0x7cf   :  { %6522 = vmatprep.subr.bf16.mxu0 %v11117_v36 }
 0x7d2   :  { %6524 = vmatpush3.bf16.msra.mxu0 %v11118_v26 }
 0x7d3   :  { %6526 = vmatprep.subr.bf16.mxu0 %v11119_v21 }
 0x7d5   :  { %5636 = vmatmul.mubr.bf16.gmra.mrb[64].mxu0 %v9940_v59 }
 0x7d6   :  { %6528 = vmatpush3.bf16.msra.mxu0 %v11120_v38 }
 0x7d7   :  { %6530 = vmatprep.subr.bf16.mxu0 %v11121_v52 }
 0x7da   :  { %6532 = vmatpush3.bf16.msra.mxu0 %v10180_v32 }
 0x7db   :  { %6534 = vmatprep.subr.bf16.mxu0 %v11122_v3 }
 0x7de   :  { %6536 = vmatpush3.bf16.msra.mxu0 %v11123_v22 }
 0x7df   :  { %6538 = vmatprep.subr.bf16.mxu0 %v11124_v39 }
 0x7e0   :  { %v6309_v28 = vpop.f32.mrb[44].mxu0 }
 0x7e1   :  { %v6310_v1 = vpop.f32.mrb[45].mxu0 }
 0x7e2   :  { %v6311_v37 = vadd.f32 %v6310_v1, %v6309_v28  ;;  %6540 = vmatpush3.bf16.msra.mxu0 %v10228_v35 }
 0x7e3   :  { %6542 = vmatprep.subr.bf16.mxu0 %v10243_v25 }
 0x7e4   :  { %v6312_v59 = vpop.f32.mrb[46].mxu0 }
 0x7e5   :  { %v6313_v2 = vpop.f32.mrb[47].mxu0 }
 0x7e6   :  { %v6314_v34 = vadd.f32 %v6313_v2, %v6312_v59  ;;  %6544 = vmatpush3.bf16.msra.mxu0 %v10247_v17 }
 0x7e7   :  { %6546 = vmatprep.subr.bf16.mxu0 %v10281_v8 }
 0x7e8   :  { %v6315_v32 = vpop.f32.mrb[48].mxu0 }
 0x7e9   :  { %v6316_v44 = vpop.f32.mrb[49].mxu0 }
 0x7ea   :  { %v6317_v27 = vadd.f32 %v6316_v44, %v6315_v32  ;;  %6548 = vmatpush3.bf16.msra.mxu0 %v10291_v4 }
 0x7ec   :  { %v6318_v23 = vpop.f32.mrb[50].mxu0 }
 0x7ed   :  { %v6319_v46 = vpop.f32.mrb[51].mxu0 }
 0x7ee   :  { %v6320_v19 = vadd.f32 %v6319_v46, %v6318_v23 }
 0x800   :  { %v6353_v12 = vpop.f32.mrb[52].mxu0 }
 0x801   :  { %v6354_v45 = vpop.f32.mrb[53].mxu0 }
 0x802   :  { %v6355_v35 = vadd.f32 %v6354_v45, %v6353_v12 }
 0x804   :  { %v5444_v24 = vadd.f32 %v6355_v35, %v6311_v37  ;;  %v6356_v25 = vpop.f32.mrb[54].mxu0 }
 0x805   :  { %v6357_v30 = vpop.f32.mrb[55].mxu0 }
 0x806   :  { %v6358_v29 = vadd.f32 %v6357_v30, %v6356_v25  ;;  %v5462_v8 = vsel %vm2797_vm6, %v5444_v24, 0.0 }
 0x808   :  { %v5449_v63 = vadd.f32 %v6358_v29, %v6314_v34  ;;  %v6359_v62 = vpop.f32.mrb[56].mxu0 }
 0x809   :  { %v6360_v17 = vpop.f32.mrb[57].mxu0 }
 0x80a   :  { %v5463_v13 = vsel %vm2797_vm6, %v5449_v63, 0.0  ;;  %v6361_v43 = vadd.f32 %v6360_v17, %v6359_v62 }
 0x80b   :  { %v5464_v40 = vadd.f32 %v5463_v13, %v5462_v8 }
 0x80c   :  { %v5454_v4 = vadd.f32 %v6361_v43, %v6317_v27  ;;  %v6362_v41 = vpop.f32.mrb[58].mxu0 }
 0x80d   :  { %v6363_v53 = vpop.f32.mrb[59].mxu0 }
 0x80e   :  { %v5465_v16 = vsel %vm2797_vm6, %v5454_v4, 0.0  ;;  %v6364_v50 = vadd.f32 %v6363_v53, %v6362_v41 }
 0x80f   :  { %v5466_v56 = vadd.f32 %v5465_v16, %v5464_v40 }
 0x810   :  { %v5459_v47 = vadd.f32 %v6364_v50, %v6320_v19 }
 0x812   :  { %v5467_v61 = vsel %vm2797_vm6, %v5459_v47, 0.0 }
 0x813   :  { %v5468_v5 = vadd.f32 %v5467_v61, %v5466_v56 }
 0x815   :  { %v5469_v35 = vrot.slane %v5468_v5, 4 }
 0x817   :  { %v5470_v62 = vadd.f32 %v5469_v35, %v5468_v5 }
 0x819   :  { %v5471_v43 = vrot.slane %v5470_v62, 2 }
 0x81b   :  { %v5472_v41 = vadd.f32 %v5471_v43, %v5470_v62 }
 0x81d   :  { %v5473_v50 = vrot.slane %v5472_v41, 1 }
 0x81f   :  { %v5474_v61 = vadd.f32 %v5473_v50, %v5472_v41 }
 0x880   :  { %v6441_v7 = vpop.f32.mrb[40].mxu1 }
 0x881   :  { %v6442_v9 = vpop.f32.mrb[41].mxu1 }
 0x882   :  { %v6443_v54 = vadd.f32 %v6442_v9, %v6441_v7  ;;  %v5475_v7 = vld [vmem:[%s10896_s11] sm:$0x1] }
 0x883   :  { %v5476_v9 = vadd.f32 %v5475_v7, %v5474_v61 }
 0x884   :  { %v6444_v18 = vpop.f32.mrb[42].mxu1 }
 0x885   :  { %v6445_v55 = vpop.f32.mrb[43].mxu1 }
 0x886   :  { %v6446_v15 = vadd.f32 %v6445_v55, %v6444_v18 }
 0x888   :  { %v6447_v11 = vpop.f32.mrb[44].mxu1 }
 0x889   :  { %v6448_v49 = vpop.f32.mrb[45].mxu1 }
 0x88a   :  { %v6449_v42 = vadd.f32 %v6448_v49, %v6447_v11 }
 0x88c   :  { %v6450_v48 = vpop.f32.mrb[46].mxu1 }
 0x88d   :  { %v6451_v14 = vpop.f32.mrb[47].mxu1 }
 0x88e   :  { %v6452_v20 = vadd.f32 %v6451_v14, %v6450_v48 }
 0x8a0   :  { %v5627_v36 = vpop.f32.mrb[60].mxu0 }
 0x8a1   :  { %v5629_v26 = vpop.f32.mrb[61].mxu0  ;;  %v5805_v52 = vmul.f32 %v5627_v36, %v10476_v10 }
 0x8a2   :  { %v5806_v21 = vmul.f32 %v5629_v26, %v10471_v6  ;;  %v5631_v38 = vpop.f32.mrb[62].mxu0 }
 0x8a3   :  { %v5633_v3 = vpop.f32.mrb[63].mxu0  ;;  %v5809_v39 = vmul.f32 %v5631_v38, %v10488_v33 }
 0x8a4   :  { %v5810_v22 = vmul.f32 %v5633_v3, %v10481_v60  ;;  %5885 = vmatprep.mubr.f32.mxu0 %v5806_v21 }
 0x8a5   :  { %5886 = vmatmul.mubr.f32.vlgmr.msra.gmra.mrb[68].mxu0 %v5805_v52 }
 0x8a6   :  { %5890 = vmatprep.mubr.f32.mxu0 %v5810_v22 }
 0x8a8   :  { %v5637_v28 = vpop.f32.mrb[64].mxu0 }
 0x8a9   :  { %v5639_v1 = vpop.f32.mrb[65].mxu0  ;;  %5891 = vmatmul.mubr.f32.gmra.mrb[70].mxu0 %v5809_v39  ;;  %v5813_v2 = vmul.f32 %v5637_v28, %v10502_v0 }
 0x8aa   :  { %v5814_v37 = vmul.f32 %v5639_v1, %v10497_v31  ;;  %v5641_v59 = vpop.f32.mrb[66].mxu0 }
 0x8ab   :  { %v5643_v6 = vpop.f32.mrb[67].mxu0  ;;  %v5817_v10 = vmul.f32 %v5641_v59, %v10516_v57 }
 0x8ac   :  { %v5818_v34 = vmul.f32 %v5643_v6, %v10507_v51  ;;  %5895 = vmatprep.mubr.f32.mxu0 %v5814_v37 }
 0x8ad   :  { %5896 = vmatmul.mubr.f32.gmra.mrb[72].mxu0 %v5813_v2 }
 0x8ae   :  { %5900 = vmatprep.mubr.f32.mxu0 %v5818_v34 }
 0x8b1   :  { %5901 = vmatmul.mubr.f32.gmra.mrb[74].mxu0 %v5817_v10 }
 0x978   :  { %v6397_v60 = vpop.f32.mrb[68].mxu0 }
 0x979   :  { %v6398_v32 = vpop.f32.mrb[69].mxu0 }
 0x97a   :  { %v6399_v33 = vadd.f32 %v6398_v32, %v6397_v60 }
 0x97c   :  { %v5973_v44 = vadd.f32 %v6443_v54, %v6399_v33  ;;  %v6400_v27 = vpop.f32.mrb[70].mxu0 }
 0x97d   :  { %v6401_v23 = vpop.f32.mrb[71].mxu0 }
 0x97e   :  { %v6402_v46 = vadd.f32 %v6401_v23, %v6400_v27  ;;  %v5991_v0 = vsel %vm2797_vm6, %v5973_v44, 0.0 }
 0x980   :  { %v5978_v31 = vadd.f32 %v6446_v15, %v6402_v46  ;;  %v6403_v19 = vpop.f32.mrb[72].mxu0 }
 0x981   :  { %v6404_v12 = vpop.f32.mrb[73].mxu0 }
 0x982   :  { %v5992_v51 = vsel %vm2797_vm6, %v5978_v31, 0.0  ;;  %v6405_v45 = vadd.f32 %v6404_v12, %v6403_v19 }
 0x983   :  { %v5993_v24 = vadd.f32 %v5992_v51, %v5991_v0 }
 0x984   :  { %v5983_v25 = vadd.f32 %v6449_v42, %v6405_v45  ;;  %v6406_v57 = vpop.f32.mrb[74].mxu0 }
 0x985   :  { %v6407_v30 = vpop.f32.mrb[75].mxu0 }
 0x986   :  { %v5994_v29 = vsel %vm2797_vm6, %v5983_v25, 0.0  ;;  %v6408_v63 = vadd.f32 %v6407_v30, %v6406_v57 }
 0x987   :  { %v5995_v17 = vadd.f32 %v5994_v29, %v5993_v24 }
 0x988   :  { %v5988_v8 = vadd.f32 %v6452_v20, %v6408_v63 }
 0x98a   :  { %v5996_v13 = vsel %vm2797_vm6, %v5988_v8, 0.0  ;;  %vm6024_vm6 = vcmask 58368  }
 0x98b   :  { %v5997_v40 = vadd.f32 %v5996_v13, %v5995_v17 }
 0x98d   :  { %v5998_v4 = vrot.slane %v5997_v40, 4 }
 0x98f   :  { %v5999_v53 = vadd.f32 %v5998_v4, %v5997_v40 }
 0x991   :  { %v6000_v16 = vrot.slane %v5999_v53, 2 }
 0x993   :  { %v6001_v56 = vadd.f32 %v6000_v16, %v5999_v53 }
 0x995   :  { %v6002_v47 = vrot.slane %v6001_v56, 1 }
 0x997   :  { %v6003_v58 = vadd.f32 %v6002_v47, %v6001_v56 }
 0x999   :  { %v6004_v5 = vadd.f32 %v6003_v58, %v5475_v7 }
 0x99b   :  { %v6006_v54 = vrot.slane %v6004_v5, 7 }
 0x99d   :  { %v6009_v18 = vsel %vm6008_vm15, %v5476_v9, %v6006_v54 }
 0x99e   :  { %6028 = vrot.lane.b32.xlu1 %v6009_v18, %s7224_s23  ;;  %v6010_v55 = vmul.f32 0.5, %v6009_v18  ;;  %6026 = vst.msk [vmem:[#allocation6] sm:$0x3] %vm6024_vm6, %v6009_v18 }
 0x9a0   :  { %v6011_v15 = vmul.f32 1.442695, %v6010_v55 }
 0x9a2   :  { %7013 = vpow2.f32 %v6011_v15 }
 0x9a3   :  { %7138 = shalt.err (!%p7135_p4)
}
 0x9a4   :  { %s7139_s9 = scalar_lea.hbm %s10899_s14, 32 }
 0x9a5   :  { %p7140_p5 = scmp.ne.s32.totalorder %s10899_s14, %s7139_s9  ;;  %p7143_p6 = scmp.lt.u32.totalorder %s7139_s9, %s10899_s14 }
 0x9a7   :  { %p7145_p7 = pnand %p7143_p6, %p7140_p5 }
 0x9a9   :  { %7148 = shalt.err (!%p7145_p7)
}
 0x9aa   :  { %6051 = dma.vmem_to_hbm [thread:$0]  %s6049_s25, 32, %s10899_s14, [#allocation7]   ;;  %v6016_v11 = vpop.permute.xlu1 %6015 }
 0x9ab   :  { %s7226_s10 = smov [#allocation8]  }
 0x9ac   :  { %v7014_v49 = vpop.eup %7013  ;;  %s6058_s4 = sshll.u32 %s7226_s10, 4  ;;  %s6059_s4 = int_to_ptr.vmem [resolvable:$true] %s6058_s4 }
 0x9ad   :  { %v6018_v42 = vmul.f32 %v7014_v49, %v6016_v11  ;;  %s7149_s30 = scalar_lea.vmem %s6059_s4, 32  ;;  %p7154_p9 = scmp.lt.s32.totalorder %s6059_s4, %s6059_s4 }
 0x9ae   :  { %p7150_p8 = scmp.ne.s32.totalorder %s6059_s4, %s7149_s30  ;;  %p7155_p10 = scmp.lt.s32.totalorder %s7149_s30, %s7149_s30 }
 0x9af   :  { %6020 = vrot.lane.b32.xlu0 %v6018_v42, %s7224_s23 }
 0x9b0   :  { %p7156_p11 = por %p7155_p10, %p7154_p9 }
 0x9b2   :  { %p7157_p12 = pnand %p7156_p11, %p7150_p8 }
 0xa10   :  { %v6029_v48 = vpop.permute.xlu1 %6028 }
 0xa11   :  { %6031 = vst.msk [vmem:[#allocation8] sm:$0x3] %vm6024_vm6, %v6029_v48 }
 0xa12   :  { %7160 = shalt.err (!%p7157_p12)
}
 0xa13   :  { %s7161_s14 = scalar_lea.hbm %s10900_s15, 32 }
 0xa14   :  { %p7162_p13 = scmp.ne.s32.totalorder %s10900_s15, %s7161_s14  ;;  %p7165_p0 = scmp.lt.u32.totalorder %s7161_s14, %s10900_s15 }
 0xa16   :  { %p7167_p1 = pnand %p7165_p0, %p7162_p13 }
 0xa18   :  { %7170 = shalt.err (!%p7167_p1)
}
 0xa19   :  { %6061 = dma.vmem_to_hbm [thread:$0]  %s6059_s4, 32, %s10900_s15, [#allocation7]  }
 0xa1a   :  { %s7227_s27 = smov [#allocation4]  }
 0xa1b   :  { %s6038_s28 = sshll.u32 %s7227_s27, 4  ;;  %s6039_s28 = int_to_ptr.vmem [resolvable:$true] %s6038_s28 }
 0xa1c   :  { %s7171_s12 = scalar_lea.vmem %s6039_s28, 32  ;;  %p7176_p3 = scmp.lt.s32.totalorder %s6039_s28, %s6039_s28 }
 0xa1d   :  { %p7172_p2 = scmp.ne.s32.totalorder %s6039_s28, %s7171_s12  ;;  %p7177_p4 = scmp.lt.s32.totalorder %s7171_s12, %s7171_s12 }
 0xa1f   :  { %p7178_p5 = por %p7177_p4, %p7176_p3 }
 0xa21   :  { %v6021_v14 = vpop.permute.xlu0 %6020  ;;  %p7179_p6 = pnand %p7178_p5, %p7172_p2 }
 0xa22   :  { %v6023_v20 = vadd.f32 %v6021_v14, %v6009_v18 }
 0xa24   :  { %6025 = vst.msk [vmem:[#allocation4] sm:$0x3] %vm6024_vm6, %v6023_v20 }
 0xa25   :  { %7182 = shalt.err (!%p7179_p6)
}
 0xa26   :  { %s7183_s24 = scalar_lea.hbm %s10898_s13, 32 }
 0xa27   :  { %p7184_p7 = scmp.ne.s32.totalorder %s10898_s13, %s7183_s24  ;;  %p7187_p8 = scmp.lt.u32.totalorder %s7183_s24, %s10898_s13 }
 0xa29   :  { %p7189_p9 = pnand %p7187_p8, %p7184_p7 }
 0xa2b   :  { %7192 = shalt.err (!%p7189_p9)
}
 0xa2c   :  { %6041 = dma.vmem_to_hbm [thread:$0]  %s6039_s28, 32, %s10898_s13, [#allocation5]  }
 0xa2d   :  { %7193 = dma.done.wait [#allocation5], 32  }
 0xa2e   :  { %7194 = vsyncadd [#allocation5], 4294967264 }
 0xa2f   :  { %7195 = dma.done.wait [#allocation7], 64  }
 0xa30   :  { %7196 = vsyncadd [#allocation7], 4294967232 }
 0xa31   :  { %6071 = vsyncpa [#allocation5], 1 }
 0xa32   :  { %6072 = vsyncpa [#allocation7], 1 }

</bundles_post_ra>
